<compile_context>
chip_gen: v6e
topology: v6e:2x2x1
jax: 0.10.0
libtpu: 0.0.40
codegen_flags: <defaults>
</compile_context>

<pallas_src>
import functools
import math

import jax
import jax.numpy as jnp
from jax.experimental import pallas as pl
from jax.experimental.pallas import tpu as pltpu

PAD = 6  # one ring of halo per fused conv layer (2 stacks x 3 layers)


# -----------------------------------------------------------------------------
# In-kernel helpers (operate on (channels, rows*Wp) flattened canvas tiles)
# -----------------------------------------------------------------------------
def _apply_act(y, act):
    if act == "relu":
        return jnp.maximum(y, 0.0)
    if act == "sigmoid":
        return jax.nn.sigmoid(y)
    if act == "none":
        return y
    raise ValueError(f"unknown act {act}")


# -----------------------------------------------------------------------------
# Fused kernel: depth stack -> volume rendering -> denoise stack
# -----------------------------------------------------------------------------
def _fused_kernel(x_ref, m_ref,
                  dw1, db1, dw2, db2, dw3, db3,
                  rw1, rb1, rw2, rb2, rw3, rb3,
                  out_ref, *, wp, tile_rows, cat_opa, cdt):
    a0 = x_ref[0, 0]                 # (3, M) satellite RGB canvas, f32
    mask = m_ref[0]                  # (1, M) inside-image mask, f32
    m = a0.shape[1]

    def conv3x3(a, w_ref, b_ref, act):
        """3x3 conv as ONE matmul: (Cout, 9*Cin) x (9*Cin, M)."""
        cin = a.shape[0]
        a_c = a.astype(cdt)
        zpad = jnp.zeros((cin, wp + 1), cdt)
        a_ext = jnp.concatenate([zpad, a_c, zpad], axis=1)      # zero-filled shift source
        taps = []
        for t in range(9):                                      # in-kernel "im2col"
            dy, dx = divmod(t, 3)
            start = (wp + 1) + (dy - 1) * wp + (dx - 1)         # static lane offset
            taps.append(a_ext[:, start:start + m])
        patches = jnp.concatenate(taps, axis=0)                 # (9*Cin, M), bf16
        y = jnp.dot(w_ref[...], patches, preferred_element_type=jnp.float32)
        return _apply_act(y + b_ref[...], act)

    def stack3(a, w1, b1, w2, b2, w3, b3, last_act):
        """Fused 3-layer conv stack; hidden activations stay in VMEM/vregs."""
        h = conv3x3(a, w1, b1, "relu") * mask                   # re-zero image border
        h = conv3x3(h, w2, b2, "relu") * mask
        return conv3x3(h, w3, b3, last_act)

    # ---- depth model -> density along the height bins ----
    sigma = stack3(a0, dw1, db1, dw2, db2, dw3, db3, "relu")    # (N, M)

    # ---- volume rendering (closed form; no serial compositing loop) ----
    n = sigma.shape[0]
    delta = 1.0 / float(n)
    alpha = 1.0 - jnp.exp(-sigma * delta)                       # (N, M), exp -> EUP
    row = jax.lax.broadcasted_iota(jnp.int32, (n, n), 0)
    col = jax.lax.broadcasted_iota(jnp.int32, (n, n), 1)
    lower = jnp.where(col < row, 1.0, 0.0)                      # strictly lower triangular
    excl = jnp.dot(lower, sigma, preferred_element_type=jnp.float32)  # exclusive cumsum
    trans = jnp.exp(-delta * excl)                              # transmittance T_i
    wgt = trans * alpha                                         # (N, M) sample weights
    opa = jnp.sum(wgt, axis=0, keepdims=True)                   # (1, M)
    bin_idx = jnp.sum(lower, axis=1, keepdims=True)             # (N, 1) = [0..N-1]
    centers = (bin_idx + 0.5) * delta
    dep = jnp.sum(wgt * centers, axis=0, keepdims=True)         # (1, M)
    rgb = opa * a0                                              # ray color = sat RGB

    gi = jnp.concatenate([rgb, opa], axis=0) if cat_opa else rgb

    # ---- denoise model on (rgb | opacity) ----
    pred = stack3(gi * mask, rw1, rb1, rw2, rb2, rw3, rb3, "sigmoid")

    # ---- interior-rows-only, channel-stacked, lane-dense store ----
    lo = PAD * wp
    hi = lo + tile_rows * wp
    out_ref[0, 0] = jnp.concatenate(
        [pred[:, lo:hi], gi[:, lo:hi], opa[:, lo:hi], dep[:, lo:hi], sigma[:, lo:hi]],
        axis=0)


# -----------------------------------------------------------------------------
# Wrapper-side layout plumbing (cheap XLA ops, no compute hoisted out of kernel)
# -----------------------------------------------------------------------------
def _round_up(x, k):
    return ((x + k - 1) // k) * k


def _pick_tile_rows(h):
    t = min(h, 64)              # raise toward 128-256 on v5e/v6e for large panos
    while h % t:
        t -= 1
    return t


def _prep_tiles(x_nchw, tile_rows, wp):
    """(B,C,H,W) -> overlapping halo row tiles (B, n_tiles, C, (tile_rows+2P)*wp)."""
    B, C, H, W = x_nchw.shape
    n_tiles = H // tile_rows
    R = tile_rows + 2 * PAD
    xp = jnp.pad(x_nchw, ((0, 0), (0, 0), (PAD, PAD), (PAD, wp - W - PAD)))
    tiles = jnp.stack(
        [xp[:, :, j * tile_rows:j * tile_rows + R, :] for j in range(n_tiles)], axis=1)
    return tiles.reshape(B, n_tiles, C, R * wp)


def _make_masks(H, W, tile_rows, wp):
    """Per-tile inside-image masks, (n_tiles, 1, R*wp) float32."""
    n_tiles = H // tile_rows
    R = tile_rows + 2 * PAD
    r = jnp.arange(R)
    c = jnp.arange(wp)
    g_row = jnp.arange(n_tiles)[:, None] * tile_rows + r[None, :] - PAD
    row_ok = (g_row >= 0) & (g_row < H)
    col_ok = (c >= PAD) & (c < PAD + W)
    mask = row_ok[:, :, None] & col_ok[None, None, :]
    return mask.astype(jnp.float32).reshape(n_tiles, 1, R * wp)


def _fmt_w(w, cdt):   # (3,3,Cin,Cout) -> (Cout, 9*Cin), tap-major K
    kh, kw, cin, cout = w.shape
    wf = jnp.transpose(w.reshape(kh * kw, cin, cout), (2, 0, 1)).reshape(cout, kh * kw * cin)
    return wf.astype(cdt)


def _fmt_b(b):
    return b.reshape(-1, 1).astype(jnp.float32)


def _const_spec(arr):
    nd = arr.ndim
    return pl.BlockSpec(arr.shape, lambda b, j, _nd=nd: (0,) * _nd)


_COMPILER_PARAMS = pltpu.CompilerParams(
    dimension_semantics=("parallel", "parallel"),   # batch x row-tiles (megacore friendly)
    vmem_limit_bytes=48 * 1024 * 1024,              # <=48 MiB is v7x-safe; ~96 MiB ok on v5e/v6e
)


# -----------------------------------------------------------------------------
# Two-stage Generator forward (Pallas path)
# -----------------------------------------------------------------------------
def init_inner_generator(key, in_ch, hidden, out_ch):
    ks = jax.random.split(key, 6)

    def w(k, cin, cout):
        return jax.random.normal(k, (3, 3, cin, cout), jnp.float32) / jnp.sqrt(9.0 * cin)

    def b(k, cout):
        return 0.1 * jax.random.normal(k, (cout,), jnp.float32)

    return {"w1": w(ks[0], in_ch, hidden), "b1": b(ks[1], hidden),
            "w2": w(ks[2], hidden, hidden), "b2": b(ks[3], hidden),
            "w3": w(ks[4], hidden, out_ch), "b3": b(ks[5], out_ch)}


def generator_forward(params, inputs_nchw, *, cat_opa=True, tile_rows=None,
                      compute_dtype=jnp.bfloat16):
    """Forward pass (transform_mode='volum_rendering'); NCHW in, NCHW out."""
    B, Cin, H, W = inputs_nchw.shape
    assert Cin == 3, "satellite input must be RGB"
    if tile_rows is None:
        tile_rows = _pick_tile_rows(H)
    assert H % tile_rows == 0, "H must be divisible by tile_rows"
    n_tiles = H // tile_rows

    # lane-dense output canvas width: tile_rows * Wp must be a multiple of 128
    step = 128 // math.gcd(tile_rows, 128)
    Wp = _round_up(W + 2 * PAD, step)
    R = tile_rows + 2 * PAD
    M, Mout = R * Wp, tile_rows * Wp

    tiles = _prep_tiles(inputs_nchw, tile_rows, Wp)      # (B, n_tiles, 3, M) f32
    masks = _make_masks(H, W, tile_rows, Wp)             # (n_tiles, 1, M) f32

    dp, rp = params["depth"], params["denoise"]
    dw = [_fmt_w(dp[f"w{i}"], compute_dtype) for i in (1, 2, 3)]
    db = [_fmt_b(dp[f"b{i}"]) for i in (1, 2, 3)]
    rw = [_fmt_w(rp[f"w{i}"], compute_dtype) for i in (1, 2, 3)]
    rb = [_fmt_b(rp[f"b{i}"]) for i in (1, 2, 3)]
    n_height = dw[2].shape[0]
    gi_ch = 4 if cat_opa else 3
    c_total = 3 + gi_ch + 2 + n_height                   # pred | gen_in | opa | dep | height

    kernel = functools.partial(_fused_kernel, wp=Wp, tile_rows=tile_rows,
                               cat_opa=cat_opa, cdt=compute_dtype)
    operands = [tiles, masks,
                dw[0], db[0], dw[1], db[1], dw[2], db[2],
                rw[0], rb[0], rw[1], rb[1], rw[2], rb[2]]
    in_specs = [pl.BlockSpec((1, 1, Cin, M), lambda b, j: (b, j, 0, 0)),
                pl.BlockSpec((1, 1, M), lambda b, j: (j, 0, 0))] + \
               [_const_spec(a) for a in operands[2:]]

    out = pl.pallas_call(
        kernel,
        out_shape=jax.ShapeDtypeStruct((B, n_tiles, c_total, Mout), jnp.float32),
        grid=(B, n_tiles),
        in_specs=in_specs,
        out_specs=pl.BlockSpec((1, 1, c_total, Mout), lambda b, j: (b, j, 0, 0)),
        compiler_params=_COMPILER_PARAMS,
    )(*operands)

    # split the channel-stacked, interior-rows-only output; crop the column padding
    v = out.reshape(B, n_tiles, c_total, tile_rows, Wp)
    v = jnp.transpose(v, (0, 2, 1, 3, 4)).reshape(B, c_total, H, Wp)[..., PAD:PAD + W]
    pred = v[:, 0:3]
    gi = v[:, 3:3 + gi_ch]
    opa = v[:, 3 + gi_ch:4 + gi_ch]
    dep = v[:, 4 + gi_ch:5 + gi_ch]
    est = v[:, 5 + gi_ch:5 + gi_ch + n_height]
    return {
        "pred": pred,
        "opacity": opa,
        "estimated_height": est,
        "generator_inputs": gi,
        "voxel": est,        # density voxel == relu'd estimated height
        "depth": dep,
    }


# -----------------------------------------------------------------------------
# Pure-JAX reference (for in-script validation of the Pallas path)
# -----------------------------------------------------------------------------
def _conv3x3_ref(x, w, b, act, cdt):
    y = jax.lax.conv_general_dilated(
        x.astype(cdt), jnp.transpose(w, (3, 2, 0, 1)).astype(cdt),
        window_strides=(1, 1), padding=((1, 1), (1, 1)),
        dimension_numbers=("NCHW", "OIHW", "NCHW"),
        preferred_element_type=jnp.float32)
    return _apply_act(y + b.reshape(1, -1, 1, 1), act)


def _stack3_ref(p, x, last_act, cdt):
    h = _conv3x3_ref(x, p["w1"], p["b1"], "relu", cdt)
    h = _conv3x3_ref(h, p["w2"], p["b2"], "relu", cdt)
    return _conv3x3_ref(h, p["w3"], p["b3"], last_act, cdt)


def _render_ref(sigma, color):
    n = sigma.shape[1]
    delta = 1.0 / float(n)
    alpha = 1.0 - jnp.exp(-sigma * delta)
    excl = jnp.cumsum(sigma, axis=1) - sigma
    trans = jnp.exp(-delta * excl)
    w = trans * alpha
    opa = jnp.sum(w, axis=1, keepdims=True)
    centers = (jnp.arange(n, dtype=jnp.float32).reshape(1, n, 1, 1) + 0.5) * delta
    dep = jnp.sum(w * centers, axis=1, keepdims=True)
    return opa * color, opa, dep


def generator_forward_ref(params, x, cat_opa=True, compute_dtype=jnp.bfloat16):
    est = _stack3_ref(params["depth"], x, "relu", compute_dtype)
    rgb, opa, dep = _render_ref(est, x)
    gi = jnp.concatenate([rgb, opa], axis=1) if cat_opa else rgb
    pred = _stack3_ref(params["denoise"], gi, "sigmoid", compute_dtype)
    return {"pred": pred, "opacity": opa, "estimated_height": est,
            "generator_inputs": gi, "voxel": est, "depth": dep}


if __name__ == "__main__":
    key = jax.random.PRNGKey(0)
    B, H, W = 2, 16, 16
    N_HEIGHT, HIDDEN = 8, 16

    kx, kd, kr = jax.random.split(key, 3)
    inputs = jax.random.uniform(kx, (B, 3, H, W), jnp.float32)       # NCHW, like PyTorch
    params = {
        "depth": init_inner_generator(kd, 3, HIDDEN, N_HEIGHT),      # depth_model
        "denoise": init_inner_generator(kr, 4, HIDDEN, 3),           # denoise_model (cat_opa)
    }

    fwd = jax.jit(functools.partial(generator_forward, cat_opa=True))
    out = fwd(params, inputs)
    jax.block_until_ready(out)

    assert out["pred"].shape == (B, 3, H, W)
    assert out["estimated_height"].shape == (B, N_HEIGHT, H, W)
    assert out["generator_inputs"].shape == (B, 4, H, W)
    assert out["opacity"].shape == (B, 1, H, W)
    assert out["depth"].shape == (B, 1, H, W)
    assert out["voxel"].shape == (B, N_HEIGHT, H, W)

    ref = jax.jit(functools.partial(generator_forward_ref, cat_opa=True))(params, inputs)
    for name in ("estimated_height", "generator_inputs", "opacity", "depth", "pred"):
        err = float(jnp.max(jnp.abs(out[name] - ref[name])))
        assert err < 2e-2, (name, err)

    print("KERNEL_OK")
</pallas_src>

<mosaic_0001>
module attributes {stable_mosaic.version = 11 : i64} {
  func.func @_fused_kernel(%arg0: i32, %arg1: i32, %arg2: memref<1x1x3x896xf32, #tpu.memory_space<vmem>>, %arg3: memref<1x1x896xf32, #tpu.memory_space<vmem>>, %arg4: memref<16x27xbf16, #tpu.memory_space<vmem>>, %arg5: memref<16x1xf32, #tpu.memory_space<vmem>>, %arg6: memref<16x144xbf16, #tpu.memory_space<vmem>>, %arg7: memref<16x1xf32, #tpu.memory_space<vmem>>, %arg8: memref<8x144xbf16, #tpu.memory_space<vmem>>, %arg9: memref<8x1xf32, #tpu.memory_space<vmem>>, %arg10: memref<16x36xbf16, #tpu.memory_space<vmem>>, %arg11: memref<16x1xf32, #tpu.memory_space<vmem>>, %arg12: memref<16x144xbf16, #tpu.memory_space<vmem>>, %arg13: memref<16x1xf32, #tpu.memory_space<vmem>>, %arg14: memref<3x144xbf16, #tpu.memory_space<vmem>>, %arg15: memref<3x1xf32, #tpu.memory_space<vmem>>, %arg16: memref<1x1x17x512xf32, #tpu.memory_space<vmem>>) attributes {dimension_semantics = [#tpu.dimension_semantics<parallel>, #tpu.dimension_semantics<parallel>], iteration_bounds = array<i64: 2, 1>, scalar_prefetch = 0 : i64, scratch_operands = 0 : i64, tpu.core_type = #tpu.core_type<tc>, window_params = [{transform_indices = @transform_0, window_bounds = array<i64: 1, 1, 3, 896>}, {transform_indices = @transform_1, window_bounds = array<i64: 1, 1, 896>}, {pipeline_mode = #tpu.pipeline_mode<synchronous>, transform_indices = @transform_2, window_bounds = array<i64: 16, 27>}, {pipeline_mode = #tpu.pipeline_mode<synchronous>, transform_indices = @transform_3, window_bounds = array<i64: 16, 1>}, {pipeline_mode = #tpu.pipeline_mode<synchronous>, transform_indices = @transform_4, window_bounds = array<i64: 16, 144>}, {pipeline_mode = #tpu.pipeline_mode<synchronous>, transform_indices = @transform_5, window_bounds = array<i64: 16, 1>}, {pipeline_mode = #tpu.pipeline_mode<synchronous>, transform_indices = @transform_6, window_bounds = array<i64: 8, 144>}, {pipeline_mode = #tpu.pipeline_mode<synchronous>, transform_indices = @transform_7, window_bounds = array<i64: 8, 1>}, {pipeline_mode = #tpu.pipeline_mode<synchronous>, transform_indices = @transform_8, window_bounds = array<i64: 16, 36>}, {pipeline_mode = #tpu.pipeline_mode<synchronous>, transform_indices = @transform_9, window_bounds = array<i64: 16, 1>}, {pipeline_mode = #tpu.pipeline_mode<synchronous>, transform_indices = @transform_10, window_bounds = array<i64: 16, 144>}, {pipeline_mode = #tpu.pipeline_mode<synchronous>, transform_indices = @transform_11, window_bounds = array<i64: 16, 1>}, {pipeline_mode = #tpu.pipeline_mode<synchronous>, transform_indices = @transform_12, window_bounds = array<i64: 3, 144>}, {pipeline_mode = #tpu.pipeline_mode<synchronous>, transform_indices = @transform_13, window_bounds = array<i64: 3, 1>}, {transform_indices = @transform_14, window_bounds = array<i64: 1, 1, 17, 512>}]} {
    %c0 = arith.constant 0 : index
    %c0_0 = arith.constant 0 : index
    %c0_1 = arith.constant 0 : index
    %c0_2 = arith.constant 0 : index
    %0 = vector.load %arg2[%c0, %c0_0, %c0_1, %c0_2] : memref<1x1x3x896xf32, #tpu.memory_space<vmem>>, vector<1x1x3x896xf32>
    %1 = vector.shape_cast %0 : vector<1x1x3x896xf32> to vector<3x896xf32>
    %c0_3 = arith.constant 0 : index
    %c0_4 = arith.constant 0 : index
    %c0_5 = arith.constant 0 : index
    %2 = vector.load %arg3[%c0_3, %c0_4, %c0_5] : memref<1x1x896xf32, #tpu.memory_space<vmem>>, vector<1x1x896xf32>
    %3 = vector.shape_cast %2 : vector<1x1x896xf32> to vector<1x896xf32>
    %4 = arith.truncf %1 : vector<3x896xf32> to vector<3x896xbf16>
    %cst = arith.constant 0.000000e+00 : bf16
    %5 = vector.broadcast %cst : bf16 to vector<3x33xbf16>
    %6 = tpu.concatenate %5, %4, %5 in 1 : vector<3x33xbf16>, vector<3x896xbf16>, vector<3x33xbf16> -> vector<3x962xbf16>
    %7 = vector.extract_strided_slice %6 {offsets = [0, 0], sizes = [3, 896], strides = [1, 1]} : vector<3x962xbf16> to vector<3x896xbf16>
    %8 = vector.extract_strided_slice %6 {offsets = [0, 1], sizes = [3, 896], strides = [1, 1]} : vector<3x962xbf16> to vector<3x896xbf16>
    %9 = vector.extract_strided_slice %6 {offsets = [0, 2], sizes = [3, 896], strides = [1, 1]} : vector<3x962xbf16> to vector<3x896xbf16>
    %10 = vector.extract_strided_slice %6 {offsets = [0, 32], sizes = [3, 896], strides = [1, 1]} : vector<3x962xbf16> to vector<3x896xbf16>
    %11 = vector.extract_strided_slice %6 {offsets = [0, 33], sizes = [3, 896], strides = [1, 1]} : vector<3x962xbf16> to vector<3x896xbf16>
    %12 = vector.extract_strided_slice %6 {offsets = [0, 34], sizes = [3, 896], strides = [1, 1]} : vector<3x962xbf16> to vector<3x896xbf16>
    %13 = vector.extract_strided_slice %6 {offsets = [0, 64], sizes = [3, 896], strides = [1, 1]} : vector<3x962xbf16> to vector<3x896xbf16>
    %14 = vector.extract_strided_slice %6 {offsets = [0, 65], sizes = [3, 896], strides = [1, 1]} : vector<3x962xbf16> to vector<3x896xbf16>
    %15 = vector.extract_strided_slice %6 {offsets = [0, 66], sizes = [3, 896], strides = [1, 1]} : vector<3x962xbf16> to vector<3x896xbf16>
    %16 = tpu.concatenate %7, %8, %9, %10, %11, %12, %13, %14, %15 in 0 : vector<3x896xbf16>, vector<3x896xbf16>, vector<3x896xbf16>, vector<3x896xbf16>, vector<3x896xbf16>, vector<3x896xbf16>, vector<3x896xbf16>, vector<3x896xbf16>, vector<3x896xbf16> -> vector<27x896xbf16>
    %c0_6 = arith.constant 0 : index
    %c0_7 = arith.constant 0 : index
    %17 = vector.load %arg4[%c0_6, %c0_7] : memref<16x27xbf16, #tpu.memory_space<vmem>>, vector<16x27xbf16>
    %cst_8 = arith.constant dense<0.000000e+00> : vector<16x896xf32>
    %18 = tpu.matmul %17, %16, %cst_8 {dimension_numbers = #tpu.dot_dimension_numbers<[1], [0], [0], [1], [0, 0, 1, 1], [], []>} : vector<16x27xbf16>, vector<27x896xbf16>, vector<16x896xf32> -> vector<16x896xf32>
    %c0_9 = arith.constant 0 : index
    %c0_10 = arith.constant 0 : index
    %19 = vector.load %arg5[%c0_9, %c0_10] : memref<16x1xf32, #tpu.memory_space<vmem>>, vector<16x1xf32>
    %20 = vector.broadcast %19 : vector<16x1xf32> to vector<16x896xf32>
    %21 = arith.addf %18, %20 : vector<16x896xf32>
    %cst_11 = arith.constant 0.000000e+00 : f32
    %22 = vector.broadcast %cst_11 : f32 to vector<16x896xf32>
    %23 = arith.maximumf %21, %22 : vector<16x896xf32>
    %24 = vector.broadcast %3 : vector<1x896xf32> to vector<16x896xf32>
    %25 = arith.mulf %23, %24 : vector<16x896xf32>
    %26 = arith.truncf %25 : vector<16x896xf32> to vector<16x896xbf16>
    %cst_12 = arith.constant 0.000000e+00 : bf16
    %27 = vector.broadcast %cst_12 : bf16 to vector<16x33xbf16>
    %28 = tpu.concatenate %27, %26, %27 in 1 : vector<16x33xbf16>, vector<16x896xbf16>, vector<16x33xbf16> -> vector<16x962xbf16>
    %29 = vector.extract_strided_slice %28 {offsets = [0, 0], sizes = [16, 896], strides = [1, 1]} : vector<16x962xbf16> to vector<16x896xbf16>
    %30 = vector.extract_strided_slice %28 {offsets = [0, 1], sizes = [16, 896], strides = [1, 1]} : vector<16x962xbf16> to vector<16x896xbf16>
    %31 = vector.extract_strided_slice %28 {offsets = [0, 2], sizes = [16, 896], strides = [1, 1]} : vector<16x962xbf16> to vector<16x896xbf16>
    %32 = vector.extract_strided_slice %28 {offsets = [0, 32], sizes = [16, 896], strides = [1, 1]} : vector<16x962xbf16> to vector<16x896xbf16>
    %33 = vector.extract_strided_slice %28 {offsets = [0, 33], sizes = [16, 896], strides = [1, 1]} : vector<16x962xbf16> to vector<16x896xbf16>
    %34 = vector.extract_strided_slice %28 {offsets = [0, 34], sizes = [16, 896], strides = [1, 1]} : vector<16x962xbf16> to vector<16x896xbf16>
    %35 = vector.extract_strided_slice %28 {offsets = [0, 64], sizes = [16, 896], strides = [1, 1]} : vector<16x962xbf16> to vector<16x896xbf16>
    %36 = vector.extract_strided_slice %28 {offsets = [0, 65], sizes = [16, 896], strides = [1, 1]} : vector<16x962xbf16> to vector<16x896xbf16>
    %37 = vector.extract_strided_slice %28 {offsets = [0, 66], sizes = [16, 896], strides = [1, 1]} : vector<16x962xbf16> to vector<16x896xbf16>
    %38 = tpu.concatenate %29, %30, %31, %32, %33, %34, %35, %36, %37 in 0 : vector<16x896xbf16>, vector<16x896xbf16>, vector<16x896xbf16>, vector<16x896xbf16>, vector<16x896xbf16>, vector<16x896xbf16>, vector<16x896xbf16>, vector<16x896xbf16>, vector<16x896xbf16> -> vector<144x896xbf16>
    %c0_13 = arith.constant 0 : index
    %c0_14 = arith.constant 0 : index
    %39 = vector.load %arg6[%c0_13, %c0_14] : memref<16x144xbf16, #tpu.memory_space<vmem>>, vector<16x144xbf16>
    %cst_15 = arith.constant dense<0.000000e+00> : vector<16x896xf32>
    %40 = tpu.matmul %39, %38, %cst_15 {dimension_numbers = #tpu.dot_dimension_numbers<[1], [0], [0], [1], [0, 0, 1, 1], [], []>} : vector<16x144xbf16>, vector<144x896xbf16>, vector<16x896xf32> -> vector<16x896xf32>
    %c0_16 = arith.constant 0 : index
    %c0_17 = arith.constant 0 : index
    %41 = vector.load %arg7[%c0_16, %c0_17] : memref<16x1xf32, #tpu.memory_space<vmem>>, vector<16x1xf32>
    %42 = vector.broadcast %41 : vector<16x1xf32> to vector<16x896xf32>
    %43 = arith.addf %40, %42 : vector<16x896xf32>
    %cst_18 = arith.constant 0.000000e+00 : f32
    %44 = vector.broadcast %cst_18 : f32 to vector<16x896xf32>
    %45 = arith.maximumf %43, %44 : vector<16x896xf32>
    %46 = vector.broadcast %3 : vector<1x896xf32> to vector<16x896xf32>
    %47 = arith.mulf %45, %46 : vector<16x896xf32>
    %48 = arith.truncf %47 : vector<16x896xf32> to vector<16x896xbf16>
    %cst_19 = arith.constant 0.000000e+00 : bf16
    %49 = vector.broadcast %cst_19 : bf16 to vector<16x33xbf16>
    %50 = tpu.concatenate %49, %48, %49 in 1 : vector<16x33xbf16>, vector<16x896xbf16>, vector<16x33xbf16> -> vector<16x962xbf16>
    %51 = vector.extract_strided_slice %50 {offsets = [0, 0], sizes = [16, 896], strides = [1, 1]} : vector<16x962xbf16> to vector<16x896xbf16>
    %52 = vector.extract_strided_slice %50 {offsets = [0, 1], sizes = [16, 896], strides = [1, 1]} : vector<16x962xbf16> to vector<16x896xbf16>
    %53 = vector.extract_strided_slice %50 {offsets = [0, 2], sizes = [16, 896], strides = [1, 1]} : vector<16x962xbf16> to vector<16x896xbf16>
    %54 = vector.extract_strided_slice %50 {offsets = [0, 32], sizes = [16, 896], strides = [1, 1]} : vector<16x962xbf16> to vector<16x896xbf16>
    %55 = vector.extract_strided_slice %50 {offsets = [0, 33], sizes = [16, 896], strides = [1, 1]} : vector<16x962xbf16> to vector<16x896xbf16>
    %56 = vector.extract_strided_slice %50 {offsets = [0, 34], sizes = [16, 896], strides = [1, 1]} : vector<16x962xbf16> to vector<16x896xbf16>
    %57 = vector.extract_strided_slice %50 {offsets = [0, 64], sizes = [16, 896], strides = [1, 1]} : vector<16x962xbf16> to vector<16x896xbf16>
    %58 = vector.extract_strided_slice %50 {offsets = [0, 65], sizes = [16, 896], strides = [1, 1]} : vector<16x962xbf16> to vector<16x896xbf16>
    %59 = vector.extract_strided_slice %50 {offsets = [0, 66], sizes = [16, 896], strides = [1, 1]} : vector<16x962xbf16> to vector<16x896xbf16>
    %60 = tpu.concatenate %51, %52, %53, %54, %55, %56, %57, %58, %59 in 0 : vector<16x896xbf16>, vector<16x896xbf16>, vector<16x896xbf16>, vector<16x896xbf16>, vector<16x896xbf16>, vector<16x896xbf16>, vector<16x896xbf16>, vector<16x896xbf16>, vector<16x896xbf16> -> vector<144x896xbf16>
    %c0_20 = arith.constant 0 : index
    %c0_21 = arith.constant 0 : index
    %61 = vector.load %arg8[%c0_20, %c0_21] : memref<8x144xbf16, #tpu.memory_space<vmem>>, vector<8x144xbf16>
    %cst_22 = arith.constant dense<0.000000e+00> : vector<8x896xf32>
    %62 = tpu.matmul %61, %60, %cst_22 {dimension_numbers = #tpu.dot_dimension_numbers<[1], [0], [0], [1], [0, 0, 1, 1], [], []>} : vector<8x144xbf16>, vector<144x896xbf16>, vector<8x896xf32> -> vector<8x896xf32>
    %c0_23 = arith.constant 0 : index
    %c0_24 = arith.constant 0 : index
    %63 = vector.load %arg9[%c0_23, %c0_24] : memref<8x1xf32, #tpu.memory_space<vmem>>, vector<8x1xf32>
    %64 = vector.broadcast %63 : vector<8x1xf32> to vector<8x896xf32>
    %65 = arith.addf %62, %64 : vector<8x896xf32>
    %cst_25 = arith.constant 0.000000e+00 : f32
    %66 = vector.broadcast %cst_25 : f32 to vector<8x896xf32>
    %67 = arith.maximumf %65, %66 : vector<8x896xf32>
    %cst_26 = arith.constant 0.000000e+00 : f32
    %68 = vector.broadcast %cst_26 : f32 to vector<8x896xf32>
    %69 = arith.subf %68, %67 : vector<8x896xf32>
    %cst_27 = arith.constant 1.250000e-01 : f32
    %70 = vector.broadcast %cst_27 : f32 to vector<8x896xf32>
    %71 = arith.mulf %69, %70 : vector<8x896xf32>
    %72 = math.exp %71 : vector<8x896xf32>
    %cst_28 = arith.constant 1.000000e+00 : f32
    %73 = vector.broadcast %cst_28 : f32 to vector<8x896xf32>
    %74 = arith.subf %73, %72 : vector<8x896xf32>
    %75 = tpu.iota {dimensions = array<i32: 0>} : vector<8x8xi32>
    %76 = tpu.iota {dimensions = array<i32: 1>} : vector<8x8xi32>
    %77 = arith.cmpi slt, %76, %75 : vector<8x8xi32>
    %cst_29 = arith.constant 1.000000e+00 : f32
    %cst_30 = arith.constant 0.000000e+00 : f32
    %78 = vector.broadcast %cst_29 : f32 to vector<8x8xf32>
    %79 = vector.broadcast %cst_30 : f32 to vector<8x8xf32>
    %80 = arith.select %77, %78, %79 : vector<8x8xi1>, vector<8x8xf32>
    %cst_31 = arith.constant dense<0.000000e+00> : vector<8x896xf32>
    %81 = tpu.matmul %80, %67, %cst_31 {dimension_numbers = #tpu.dot_dimension_numbers<[1], [0], [0], [1], [0, 0, 1, 1], [], []>} : vector<8x8xf32>, vector<8x896xf32>, vector<8x896xf32> -> vector<8x896xf32>
    %cst_32 = arith.constant -1.250000e-01 : f32
    %82 = vector.broadcast %cst_32 : f32 to vector<8x896xf32>
    %83 = arith.mulf %82, %81 : vector<8x896xf32>
    %84 = math.exp %83 : vector<8x896xf32>
    %85 = arith.mulf %84, %74 : vector<8x896xf32>
    %cst_33 = arith.constant dense<0.000000e+00> : vector<896xf32>
    %86 = vector.multi_reduction <add>, %85, %cst_33 [0] : vector<8x896xf32> to vector<896xf32>
    %87 = vector.shape_cast %86 : vector<896xf32> to vector<1x896xf32>
    %cst_34 = arith.constant dense<0.000000e+00> : vector<8xf32>
    %88 = vector.multi_reduction <add>, %80, %cst_34 [1] : vector<8x8xf32> to vector<8xf32>
    %89 = vector.shape_cast %88 : vector<8xf32> to vector<8x1xf32>
    %cst_35 = arith.constant 5.000000e-01 : f32
    %90 = vector.broadcast %cst_35 : f32 to vector<8x1xf32>
    %91 = arith.addf %89, %90 : vector<8x1xf32>
    %cst_36 = arith.constant 1.250000e-01 : f32
    %92 = vector.broadcast %cst_36 : f32 to vector<8x1xf32>
    %93 = arith.mulf %91, %92 : vector<8x1xf32>
    %94 = vector.broadcast %93 : vector<8x1xf32> to vector<8x896xf32>
    %95 = arith.mulf %85, %94 : vector<8x896xf32>
    %cst_37 = arith.constant dense<0.000000e+00> : vector<896xf32>
    %96 = vector.multi_reduction <add>, %95, %cst_37 [0] : vector<8x896xf32> to vector<896xf32>
    %97 = vector.shape_cast %96 : vector<896xf32> to vector<1x896xf32>
    %98 = vector.broadcast %87 : vector<1x896xf32> to vector<3x896xf32>
    %99 = arith.mulf %98, %1 : vector<3x896xf32>
    %100 = tpu.concatenate %99, %87 in 0 : vector<3x896xf32>, vector<1x896xf32> -> vector<4x896xf32>
    %101 = vector.broadcast %3 : vector<1x896xf32> to vector<4x896xf32>
    %102 = arith.mulf %100, %101 : vector<4x896xf32>
    %103 = arith.truncf %102 : vector<4x896xf32> to vector<4x896xbf16>
    %cst_38 = arith.constant 0.000000e+00 : bf16
    %104 = vector.broadcast %cst_38 : bf16 to vector<4x33xbf16>
    %105 = tpu.concatenate %104, %103, %104 in 1 : vector<4x33xbf16>, vector<4x896xbf16>, vector<4x33xbf16> -> vector<4x962xbf16>
    %106 = vector.extract_strided_slice %105 {offsets = [0, 0], sizes = [4, 896], strides = [1, 1]} : vector<4x962xbf16> to vector<4x896xbf16>
    %107 = vector.extract_strided_slice %105 {offsets = [0, 1], sizes = [4, 896], strides = [1, 1]} : vector<4x962xbf16> to vector<4x896xbf16>
    %108 = vector.extract_strided_slice %105 {offsets = [0, 2], sizes = [4, 896], strides = [1, 1]} : vector<4x962xbf16> to vector<4x896xbf16>
    %109 = vector.extract_strided_slice %105 {offsets = [0, 32], sizes = [4, 896], strides = [1, 1]} : vector<4x962xbf16> to vector<4x896xbf16>
    %110 = vector.extract_strided_slice %105 {offsets = [0, 33], sizes = [4, 896], strides = [1, 1]} : vector<4x962xbf16> to vector<4x896xbf16>
    %111 = vector.extract_strided_slice %105 {offsets = [0, 34], sizes = [4, 896], strides = [1, 1]} : vector<4x962xbf16> to vector<4x896xbf16>
    %112 = vector.extract_strided_slice %105 {offsets = [0, 64], sizes = [4, 896], strides = [1, 1]} : vector<4x962xbf16> to vector<4x896xbf16>
    %113 = vector.extract_strided_slice %105 {offsets = [0, 65], sizes = [4, 896], strides = [1, 1]} : vector<4x962xbf16> to vector<4x896xbf16>
    %114 = vector.extract_strided_slice %105 {offsets = [0, 66], sizes = [4, 896], strides = [1, 1]} : vector<4x962xbf16> to vector<4x896xbf16>
    %115 = tpu.concatenate %106, %107, %108, %109, %110, %111, %112, %113, %114 in 0 : vector<4x896xbf16>, vector<4x896xbf16>, vector<4x896xbf16>, vector<4x896xbf16>, vector<4x896xbf16>, vector<4x896xbf16>, vector<4x896xbf16>, vector<4x896xbf16>, vector<4x896xbf16> -> vector<36x896xbf16>
    %c0_39 = arith.constant 0 : index
    %c0_40 = arith.constant 0 : index
    %116 = vector.load %arg10[%c0_39, %c0_40] : memref<16x36xbf16, #tpu.memory_space<vmem>>, vector<16x36xbf16>
    %cst_41 = arith.constant dense<0.000000e+00> : vector<16x896xf32>
    %117 = tpu.matmul %116, %115, %cst_41 {dimension_numbers = #tpu.dot_dimension_numbers<[1], [0], [0], [1], [0, 0, 1, 1], [], []>} : vector<16x36xbf16>, vector<36x896xbf16>, vector<16x896xf32> -> vector<16x896xf32>
    %c0_42 = arith.constant 0 : index
    %c0_43 = arith.constant 0 : index
    %118 = vector.load %arg11[%c0_42, %c0_43] : memref<16x1xf32, #tpu.memory_space<vmem>>, vector<16x1xf32>
    %119 = vector.broadcast %118 : vector<16x1xf32> to vector<16x896xf32>
    %120 = arith.addf %117, %119 : vector<16x896xf32>
    %cst_44 = arith.constant 0.000000e+00 : f32
    %121 = vector.broadcast %cst_44 : f32 to vector<16x896xf32>
    %122 = arith.maximumf %120, %121 : vector<16x896xf32>
    %123 = vector.broadcast %3 : vector<1x896xf32> to vector<16x896xf32>
    %124 = arith.mulf %122, %123 : vector<16x896xf32>
    %125 = arith.truncf %124 : vector<16x896xf32> to vector<16x896xbf16>
    %cst_45 = arith.constant 0.000000e+00 : bf16
    %126 = vector.broadcast %cst_45 : bf16 to vector<16x33xbf16>
    %127 = tpu.concatenate %126, %125, %126 in 1 : vector<16x33xbf16>, vector<16x896xbf16>, vector<16x33xbf16> -> vector<16x962xbf16>
    %128 = vector.extract_strided_slice %127 {offsets = [0, 0], sizes = [16, 896], strides = [1, 1]} : vector<16x962xbf16> to vector<16x896xbf16>
    %129 = vector.extract_strided_slice %127 {offsets = [0, 1], sizes = [16, 896], strides = [1, 1]} : vector<16x962xbf16> to vector<16x896xbf16>
    %130 = vector.extract_strided_slice %127 {offsets = [0, 2], sizes = [16, 896], strides = [1, 1]} : vector<16x962xbf16> to vector<16x896xbf16>
    %131 = vector.extract_strided_slice %127 {offsets = [0, 32], sizes = [16, 896], strides = [1, 1]} : vector<16x962xbf16> to vector<16x896xbf16>
    %132 = vector.extract_strided_slice %127 {offsets = [0, 33], sizes = [16, 896], strides = [1, 1]} : vector<16x962xbf16> to vector<16x896xbf16>
    %133 = vector.extract_strided_slice %127 {offsets = [0, 34], sizes = [16, 896], strides = [1, 1]} : vector<16x962xbf16> to vector<16x896xbf16>
    %134 = vector.extract_strided_slice %127 {offsets = [0, 64], sizes = [16, 896], strides = [1, 1]} : vector<16x962xbf16> to vector<16x896xbf16>
    %135 = vector.extract_strided_slice %127 {offsets = [0, 65], sizes = [16, 896], strides = [1, 1]} : vector<16x962xbf16> to vector<16x896xbf16>
    %136 = vector.extract_strided_slice %127 {offsets = [0, 66], sizes = [16, 896], strides = [1, 1]} : vector<16x962xbf16> to vector<16x896xbf16>
    %137 = tpu.concatenate %128, %129, %130, %131, %132, %133, %134, %135, %136 in 0 : vector<16x896xbf16>, vector<16x896xbf16>, vector<16x896xbf16>, vector<16x896xbf16>, vector<16x896xbf16>, vector<16x896xbf16>, vector<16x896xbf16>, vector<16x896xbf16>, vector<16x896xbf16> -> vector<144x896xbf16>
    %c0_46 = arith.constant 0 : index
    %c0_47 = arith.constant 0 : index
    %138 = vector.load %arg12[%c0_46, %c0_47] : memref<16x144xbf16, #tpu.memory_space<vmem>>, vector<16x144xbf16>
    %cst_48 = arith.constant dense<0.000000e+00> : vector<16x896xf32>
    %139 = tpu.matmul %138, %137, %cst_48 {dimension_numbers = #tpu.dot_dimension_numbers<[1], [0], [0], [1], [0, 0, 1, 1], [], []>} : vector<16x144xbf16>, vector<144x896xbf16>, vector<16x896xf32> -> vector<16x896xf32>
    %c0_49 = arith.constant 0 : index
    %c0_50 = arith.constant 0 : index
    %140 = vector.load %arg13[%c0_49, %c0_50] : memref<16x1xf32, #tpu.memory_space<vmem>>, vector<16x1xf32>
    %141 = vector.broadcast %140 : vector<16x1xf32> to vector<16x896xf32>
    %142 = arith.addf %139, %141 : vector<16x896xf32>
    %cst_51 = arith.constant 0.000000e+00 : f32
    %143 = vector.broadcast %cst_51 : f32 to vector<16x896xf32>
    %144 = arith.maximumf %142, %143 : vector<16x896xf32>
    %145 = vector.broadcast %3 : vector<1x896xf32> to vector<16x896xf32>
    %146 = arith.mulf %144, %145 : vector<16x896xf32>
    %147 = arith.truncf %146 : vector<16x896xf32> to vector<16x896xbf16>
    %cst_52 = arith.constant 0.000000e+00 : bf16
    %148 = vector.broadcast %cst_52 : bf16 to vector<16x33xbf16>
    %149 = tpu.concatenate %148, %147, %148 in 1 : vector<16x33xbf16>, vector<16x896xbf16>, vector<16x33xbf16> -> vector<16x962xbf16>
    %150 = vector.extract_strided_slice %149 {offsets = [0, 0], sizes = [16, 896], strides = [1, 1]} : vector<16x962xbf16> to vector<16x896xbf16>
    %151 = vector.extract_strided_slice %149 {offsets = [0, 1], sizes = [16, 896], strides = [1, 1]} : vector<16x962xbf16> to vector<16x896xbf16>
    %152 = vector.extract_strided_slice %149 {offsets = [0, 2], sizes = [16, 896], strides = [1, 1]} : vector<16x962xbf16> to vector<16x896xbf16>
    %153 = vector.extract_strided_slice %149 {offsets = [0, 32], sizes = [16, 896], strides = [1, 1]} : vector<16x962xbf16> to vector<16x896xbf16>
    %154 = vector.extract_strided_slice %149 {offsets = [0, 33], sizes = [16, 896], strides = [1, 1]} : vector<16x962xbf16> to vector<16x896xbf16>
    %155 = vector.extract_strided_slice %149 {offsets = [0, 34], sizes = [16, 896], strides = [1, 1]} : vector<16x962xbf16> to vector<16x896xbf16>
    %156 = vector.extract_strided_slice %149 {offsets = [0, 64], sizes = [16, 896], strides = [1, 1]} : vector<16x962xbf16> to vector<16x896xbf16>
    %157 = vector.extract_strided_slice %149 {offsets = [0, 65], sizes = [16, 896], strides = [1, 1]} : vector<16x962xbf16> to vector<16x896xbf16>
    %158 = vector.extract_strided_slice %149 {offsets = [0, 66], sizes = [16, 896], strides = [1, 1]} : vector<16x962xbf16> to vector<16x896xbf16>
    %159 = tpu.concatenate %150, %151, %152, %153, %154, %155, %156, %157, %158 in 0 : vector<16x896xbf16>, vector<16x896xbf16>, vector<16x896xbf16>, vector<16x896xbf16>, vector<16x896xbf16>, vector<16x896xbf16>, vector<16x896xbf16>, vector<16x896xbf16>, vector<16x896xbf16> -> vector<144x896xbf16>
    %c0_53 = arith.constant 0 : index
    %c0_54 = arith.constant 0 : index
    %160 = vector.load %arg14[%c0_53, %c0_54] : memref<3x144xbf16, #tpu.memory_space<vmem>>, vector<3x144xbf16>
    %cst_55 = arith.constant dense<0.000000e+00> : vector<3x896xf32>
    %161 = tpu.matmul %160, %159, %cst_55 {dimension_numbers = #tpu.dot_dimension_numbers<[1], [0], [0], [1], [0, 0, 1, 1], [], []>} : vector<3x144xbf16>, vector<144x896xbf16>, vector<3x896xf32> -> vector<3x896xf32>
    %c0_56 = arith.constant 0 : index
    %c0_57 = arith.constant 0 : index
    %162 = vector.load %arg15[%c0_56, %c0_57] : memref<3x1xf32, #tpu.memory_space<vmem>>, vector<3x1xf32>
    %163 = vector.broadcast %162 : vector<3x1xf32> to vector<3x896xf32>
    %164 = arith.addf %161, %163 : vector<3x896xf32>
    %165 = arith.negf %164 : vector<3x896xf32>
    %166 = math.exp %165 : vector<3x896xf32>
    %cst_58 = arith.constant 1.000000e+00 : f32
    %167 = vector.broadcast %cst_58 : f32 to vector<3x896xf32>
    %168 = arith.addf %167, %166 : vector<3x896xf32>
    %169 = arith.divf %167, %168 : vector<3x896xf32>
    %170 = vector.extract_strided_slice %169 {offsets = [0, 192], sizes = [3, 512], strides = [1, 1]} : vector<3x896xf32> to vector<3x512xf32>
    %171 = vector.extract_strided_slice %100 {offsets = [0, 192], sizes = [4, 512], strides = [1, 1]} : vector<4x896xf32> to vector<4x512xf32>
    %172 = vector.extract_strided_slice %87 {offsets = [0, 192], sizes = [1, 512], strides = [1, 1]} : vector<1x896xf32> to vector<1x512xf32>
    %173 = vector.extract_strided_slice %97 {offsets = [0, 192], sizes = [1, 512], strides = [1, 1]} : vector<1x896xf32> to vector<1x512xf32>
    %174 = vector.extract_strided_slice %67 {offsets = [0, 192], sizes = [8, 512], strides = [1, 1]} : vector<8x896xf32> to vector<8x512xf32>
    %175 = tpu.concatenate %170, %171, %172, %173, %174 in 0 : vector<3x512xf32>, vector<4x512xf32>, vector<1x512xf32>, vector<1x512xf32>, vector<8x512xf32> -> vector<17x512xf32>
    %c0_59 = arith.constant 0 : index
    %c0_60 = arith.constant 0 : index
    %c0_61 = arith.constant 0 : index
    %c0_62 = arith.constant 0 : index
    %176 = vector.load %arg16[%c0_59, %c0_60, %c0_61, %c0_62] : memref<1x1x17x512xf32, #tpu.memory_space<vmem>>, vector<1x1x17x512xf32>
    %177 = vector.shape_cast %176 : vector<1x1x17x512xf32> to vector<17x512xf32>
    %178 = vector.shape_cast %175 : vector<17x512xf32> to vector<1x1x17x512xf32>
    tpu.vector_store %arg16[%c0_59, %c0_60, %c0_61, %c0_62], %178 {strides = array<i32>} : memref<1x1x17x512xf32, #tpu.memory_space<vmem>>, vector<1x1x17x512xf32>,
    return
  }
  func.func @transform_0(%arg0: i32, %arg1: i32) -> (i32, i32, i32, i32) {
    %c0_i32 = arith.constant 0 : i32
    %c0_i32_0 = arith.constant 0 : i32
    %c0_i32_1 = arith.constant 0 : i32
    return %arg0, %arg1, %c0_i32, %c0_i32_0 : i32, i32, i32, i32
  }
  func.func @transform_1(%arg0: i32, %arg1: i32) -> (i32, i32, i32) {
    %c0_i32 = arith.constant 0 : i32
    %c0_i32_0 = arith.constant 0 : i32
    %c0_i32_1 = arith.constant 0 : i32
    return %arg1, %c0_i32, %c0_i32_0 : i32, i32, i32
  }
  func.func @transform_2(%arg0: i32, %arg1: i32) -> (i32, i32) {
    %c0_i32 = arith.constant 0 : i32
    %c0_i32_0 = arith.constant 0 : i32
    %c0_i32_1 = arith.constant 0 : i32
    return %c0_i32, %c0_i32_0 : i32, i32
  }
  func.func @transform_3(%arg0: i32, %arg1: i32) -> (i32, i32) {
    %c0_i32 = arith.constant 0 : i32
    %c0_i32_0 = arith.constant 0 : i32
    %c0_i32_1 = arith.constant 0 : i32
    return %c0_i32, %c0_i32_0 : i32, i32
  }
  func.func @transform_4(%arg0: i32, %arg1: i32) -> (i32, i32) {
    %c0_i32 = arith.constant 0 : i32
    %c0_i32_0 = arith.constant 0 : i32
    %c0_i32_1 = arith.constant 0 : i32
    return %c0_i32, %c0_i32_0 : i32, i32
  }
  func.func @transform_5(%arg0: i32, %arg1: i32) -> (i32, i32) {
    %c0_i32 = arith.constant 0 : i32
    %c0_i32_0 = arith.constant 0 : i32
    %c0_i32_1 = arith.constant 0 : i32
    return %c0_i32, %c0_i32_0 : i32, i32
  }
  func.func @transform_6(%arg0: i32, %arg1: i32) -> (i32, i32) {
    %c0_i32 = arith.constant 0 : i32
    %c0_i32_0 = arith.constant 0 : i32
    %c0_i32_1 = arith.constant 0 : i32
    return %c0_i32, %c0_i32_0 : i32, i32
  }
  func.func @transform_7(%arg0: i32, %arg1: i32) -> (i32, i32) {
    %c0_i32 = arith.constant 0 : i32
    %c0_i32_0 = arith.constant 0 : i32
    %c0_i32_1 = arith.constant 0 : i32
    return %c0_i32, %c0_i32_0 : i32, i32
  }
  func.func @transform_8(%arg0: i32, %arg1: i32) -> (i32, i32) {
    %c0_i32 = arith.constant 0 : i32
    %c0_i32_0 = arith.constant 0 : i32
    %c0_i32_1 = arith.constant 0 : i32
    return %c0_i32, %c0_i32_0 : i32, i32
  }
  func.func @transform_9(%arg0: i32, %arg1: i32) -> (i32, i32) {
    %c0_i32 = arith.constant 0 : i32
    %c0_i32_0 = arith.constant 0 : i32
    %c0_i32_1 = arith.constant 0 : i32
    return %c0_i32, %c0_i32_0 : i32, i32
  }
  func.func @transform_10(%arg0: i32, %arg1: i32) -> (i32, i32) {
    %c0_i32 = arith.constant 0 : i32
    %c0_i32_0 = arith.constant 0 : i32
    %c0_i32_1 = arith.constant 0 : i32
    return %c0_i32, %c0_i32_0 : i32, i32
  }
  func.func @transform_11(%arg0: i32, %arg1: i32) -> (i32, i32) {
    %c0_i32 = arith.constant 0 : i32
    %c0_i32_0 = arith.constant 0 : i32
    %c0_i32_1 = arith.constant 0 : i32
    return %c0_i32, %c0_i32_0 : i32, i32
  }
  func.func @transform_12(%arg0: i32, %arg1: i32) -> (i32, i32) {
    %c0_i32 = arith.constant 0 : i32
    %c0_i32_0 = arith.constant 0 : i32
    %c0_i32_1 = arith.constant 0 : i32
    return %c0_i32, %c0_i32_0 : i32, i32
  }
  func.func @transform_13(%arg0: i32, %arg1: i32) -> (i32, i32) {
    %c0_i32 = arith.constant 0 : i32
    %c0_i32_0 = arith.constant 0 : i32
    %c0_i32_1 = arith.constant 0 : i32
    return %c0_i32, %c0_i32_0 : i32, i32
  }
  func.func @transform_14(%arg0: i32, %arg1: i32) -> (i32, i32, i32, i32) {
    %c0_i32 = arith.constant 0 : i32
    %c0_i32_0 = arith.constant 0 : i32
    %c0_i32_1 = arith.constant 0 : i32
    return %arg0, %arg1, %c0_i32, %c0_i32_0 : i32, i32, i32, i32
  }
}

</mosaic_0001>

<bundles_post_ra>
// kernel: generator_forward.1
= control target key start
LH: loop header
LB: loop body
LE: loop exit
PB: predicated region body
PF: predicated region fallthrough
CT: control target
= control target key end

     0   :  { %s4948_s29 = smov 0   ;;  %s4950_s30 = smov 0   ;;  %s7338_s0 = inlined_call_operand.vmem [shape: f32[2,1,3,896], index: 0, kind: input, shape index: {}]   ;;  %s7339_s1 = inlined_call_operand.vmem [shape: f32[1,1,896], index: 1, kind: input, shape index: {}]   ;;  %s7340_s2 = inlined_call_operand.vmem [shape: bf16[16,27], index: 2, kind: input, shape index: {}]   ;;  %s7341_s3 = inlined_call_operand.vmem [shape: f32[16,1], index: 3, kind: input, shape index: {}]   ;;  %s7342_s4 = inlined_call_operand.vmem [shape: bf16[16,144], index: 4, kind: input, shape index: {}]   ;;  %s7343_s5 = inlined_call_operand.vmem [shape: f32[16,1], index: 5, kind: input, shape index: {}]   ;;  %s7344_s6 = inlined_call_operand.vmem [shape: bf16[8,144], index: 6, kind: input, shape index: {}]   ;;  %s7345_s7 = inlined_call_operand.vmem [shape: f32[8,1], index: 7, kind: input, shape index: {}]   ;;  %s7346_s8 = inlined_call_operand.vmem [shape: bf16[16,36], index: 8, kind: input, shape index: {}]   ;;  %s7347_s9 = inlined_call_operand.vmem [shape: f32[16,1], index: 9, kind: input, shape index: {}]   ;;  %s7348_s10 = inlined_call_operand.vmem [shape: bf16[16,144], index: 10, kind: input, shape index: {}]   ;;  %s7349_s11 = inlined_call_operand.vmem [shape: f32[16,1], index: 11, kind: input, shape index: {}]   ;;  %s7350_s12 = inlined_call_operand.vmem [shape: bf16[3,144], index: 12, kind: input, shape index: {}]   ;;  %s7351_s13 = inlined_call_operand.vmem [shape: f32[3,1], index: 13, kind: input, shape index: {}]   ;;  %s7352_s14 = inlined_call_operand.vmem [shape: f32[2,1,17,512], index: 14, kind: output, shape index: {}]  }
   0x1   :  { %s4952_s15 = smov 0  }
   0x2 LB: > { %s36_s16 = sadd.s32 1, %s4854_s30  ;;  %p4626_p0 = scmp.ge.s32.totalorder %s4858_s15, 1  ;;  %s4858_s15 = sphi %s4952_s15, %s24_s15   ;;  %s4854_s30 = sphi %s4950_s30, %s7643_s30   ;;  %s4850_s29 = sphi %s4948_s29, %s7642_s29  }
   0x3   : > { %p38_p1 = scmp.ge.s32.totalorder %s36_s16, 2  ;;  %p441_p2 = scmp.lt.s32.totalorder %s4858_s15, 3 }
   0x5   : > { %s7645_s16 = smov (%p38_p1, %s36_s16), 0  ;;  %p442_p3 = pnand %p4626_p0, %p441_p2 }
   0x6   : > { %p499_p4 = scmp.lt.s32.totalorder (!%p442_p3), %s4850_s29, 1  ;;  %s4860_s21 = smov (!%p442_p3), 33  }
   0x7   : > { %445 = sbr.rel (%p442_p3) target bundleno = 3577 (0xdf9), region = 76  ;;  %s4861_s22 = smov (!%p442_p3), 64  }
   0x8   : > { %s7355_s23 = smov (!%p442_p3), 62   ;;  %s7368_s24 = smov (!%p442_p3), 126  }
   0x9   : > { %s7370_s25 = smov (!%p442_p3), 95   ;;  %s7372_s26 = smov (!%p442_p3), 94  }
   0xa   : > { %s4866_s27 = smov (!%p442_p3), 63   ;;  %s7353_s28 = smov (!%p442_p3), 127  }
   0xb   : > { %s7452_s18 = smov (!%p442_p3), 95   ;;  %s7453_s19 = smov (!%p442_p3), 126  }
   0xc   : > { %s7647_s29 = smov (!%p499_p4, %s4850_s29), 1  ;;  %vm7357_vm0 = vcmask 269312   ;;  %vm1026_vm1 = vcmask 1044480   ;;  %vm7378_vm2 = vcmask 1042432   ;;  %vm1105_vm3 = vsmask.f32 2304 }
   0xd   : > { %s4715_s17 = smul.u32 28, %s7647_s29  ;;  %vm7363_vm4 = vcmask 523264   ;;  %vm846_vm5 = vcmask 769024   ;;  %vm1036_vm6 = vcmask 1045504   ;;  %vm7362_vm7 = vcmask 1040384   ;;  %vm5265_vm13 = vmand %vm7378_vm2, %vm1105_vm3 }
   0xe   : > { %vm7367_vm8 = vcmask 515072   ;;  %vm7360_vm9 = vcmask 506880   ;;  %vm7361_vm10 = vcmask 1039360   ;;  %vm7358_vm11 = vcmask 1041408  }
   0xf   : > { %s4972_s20 = scalar_lea.vmem %s7338_s0, %s4715_s17  ;;  %s7380_s17 = smov 96   ;;  %vm988_vm12 = vsmask.f32 1280  ;;  %vm7359_vm14 = vcmask 1043456   ;;  %vm1027_vm3 = vsmask.f32 4352 }
  0x10   : > { %v523_v0 = vld [vmem:[%s4972_s20 + $0x8] sm:$0x77]  ;;  %v522_v1 = vld [vmem:[%s4972_s20] sm:$0x77]  ;;  %v524_v2 = vld [vmem:[%s4972_s20 + $0x10] sm:$0x77] }
  0x11   : > { %v538_v3 = vpack.c.bf16 %v523_v0, %v523_v0  ;;  %v536_v4 = vpack.c.bf16 %v522_v1, %v522_v1  ;;  %v4977_v5 = vcombine.high %v523_v0, %v523_v0  ;;  %v540_v7 = vpack.c.bf16 %v524_v2, %v524_v2  ;;  %v525_v9 = vld [vmem:[%s4972_s20 + $0x18] sm:$0x7]  ;;  %vm5297_vm15 = vmand %vm7358_vm11, %vm988_vm12 }
  0x12   : > { %v4983_v8 = vcombine.high %v524_v2, %v524_v2  ;;  %v542_v11 = vpack.c.bf16 %v525_v9, %v525_v9  ;;  %v4990_v12 = vcombine.high %v522_v1, %v522_v1  ;;  %vm751_vm12 = vcmask 785408  }
  0x13   : > { %554 = vrot.lane.b32.xlu1 %v538_v3, %s4860_s21  ;;  %550 = vrot.lane.b32.xlu0 %v536_v4, %s4860_s21  ;;  %v539_v6 = vpack.c.bf16 %v4977_v5, %v4977_v5  ;;  %vm1065_vm11 = vcmask 1047552  }
  0x14   : > { %v541_v10 = vpack.c.bf16 %v4983_v8, %v4983_v8  ;;  %v537_v13 = vpack.c.bf16 %v4990_v12, %v4990_v12 }
  0x17   : > { %556 = vrot.lane.b32.xlu1 %v539_v6, %s4860_s21  ;;  %558 = vrot.lane.b32.xlu0 %v540_v7, %s4860_s21 }
  0x1b   : > { %560 = vrot.lane.b32.xlu1 %v541_v10, %s4860_s21  ;;  %562 = vrot.lane.b32.xlu0 %v542_v11, %s4860_s21 }
  0x1f   : > { %552 = vrot.lane.b32.xlu0 %v537_v13, %s4860_s21 }
  0x85   : > { %v551_v14 = vpop.permute.xlu0 %550  ;;  %v555_v23 = vpop.permute.xlu1 %554 }
  0x86   : > { %v4998_v15 = vsel %vm7357_vm0, 0, %v551_v14 }
  0x87   : > { %v868_v16 = vrot.slane %v4998_v15, 7  ;;  %v955_v18 = vrot.slane %v4998_v15, 4  ;;  %v679_v20 = vrot.slane %v4998_v15, 5  ;;  %v766_v24 = vrot.slane %v4998_v15, 2 }
  0x88   : > { %v587_v49 = vshll.u32 %v4998_v15, 16  ;;  %v584_v52 = vshrl.u32 %v4998_v15, 16 }
  0x89   : > { %v559_v17 = vpop.permute.xlu0 %558  ;;  %876 = vrot.lane.b32.xlu0 %v868_v16, %s4861_s22  ;;  %v557_v31 = vpop.permute.xlu1 %556 }
  0x8a   : > { %v5029_v34 = vsel %vm7357_vm0, %v557_v31, %v559_v17  ;;  %v5038_v37 = vsel %vm7357_vm0, %v555_v23, %v557_v31  ;;  %v798_v53 = vrot.slane %v587_v49, 1  ;;  %v900_v58 = vrot.slane %v584_v52, 5 }
  0x8b   : > { %v872_v35 = vrot.slane %v5029_v34, 7  ;;  %v958_v38 = vrot.slane %v5038_v37, 4  ;;  %v871_v39 = vrot.slane %v5038_v37, 7  ;;  %v682_v40 = vrot.slane %v5038_v37, 5 }
  0x8c   : > { %v959_v41 = vrot.slane %v5029_v34, 4  ;;  %v769_v43 = vrot.slane %v5038_v37, 2  ;;  %v683_v44 = vrot.slane %v5029_v34, 5  ;;  %v770_v47 = vrot.slane %v5029_v34, 2 }
  0x8d   : > { %v5003_v19 = vpop.permute.xlu0 %562  ;;  %963 = vrot.lane.b32.xlu0 %v955_v18, %s7355_s23  ;;  %v561_v42 = vpop.permute.xlu1 %560  ;;  %v5072_v56 = vshll.u32 %v5038_v37, 16  ;;  %v806_v57 = vor.u32 %v798_v53, %v584_v52  ;;  %v901_v60 = vrot.slane %v587_v49, 6  ;;  %v586_v63 = vrot.slane %v584_v52, 6 }
  0x8e   : > { %v5052_v45 = vsel %vm7357_vm0, %v561_v42, %v5003_v19  ;;  %v5059_v48 = vsel %vm7357_vm0, %v559_v17, %v561_v42  ;;  %v589_v0 = vrot.slane %v587_v49, 7  ;;  %v711_v7 = vrot.slane %v584_v52, 3 }
  0x8f   : > { %v874_v46 = vrot.slane %v5052_v45, 7  ;;  %v961_v50 = vrot.slane %v5052_v45, 4  ;;  %v873_v51 = vrot.slane %v5059_v48, 7  ;;  %v685_v54 = vrot.slane %v5052_v45, 5 }
  0x90   : > { %v960_v55 = vrot.slane %v5059_v48, 4  ;;  %v684_v59 = vrot.slane %v5059_v48, 5  ;;  %v801_v61 = vrot.slane %v5072_v56, 1  ;;  %v902_v1 = vor.u32 %v901_v60, %v900_v58 }
  0x91   : > { %687 = vrot.lane.b32.xlu0 %v679_v20, %s7368_s24  ;;  %v553_v21 = vpop.permute.xlu0 %552  ;;  %v590_v6 = vor.u32 %v589_v0, %v586_v63  ;;  %v712_v9 = vrot.slane %v587_v49, 4  ;;  %v5104_v42 = vsel %vm7357_vm0, %v5003_v19, 0 }
  0x92   : > { %v5009_v22 = vsel %vm7357_vm0, %v551_v14, %v553_v21  ;;  %v5014_v26 = vsel %vm7357_vm0, %v553_v21, %v555_v23  ;;  %v4759_v2 = vpack.i.bf16 %v801_v61, %v798_v53  ;;  %v619_v23 = vshll.u32 %v5029_v34, 16 }
  0x93   : > { %v869_v25 = vrot.slane %v5009_v22, 7  ;;  %v870_v27 = vrot.slane %v5014_v26, 7  ;;  %v957_v28 = vrot.slane %v5014_v26, 4  ;;  %v956_v29 = vrot.slane %v5009_v22, 4 }
  0x94   : > { %v681_v30 = vrot.slane %v5014_v26, 5  ;;  %v768_v32 = vrot.slane %v5014_v26, 2  ;;  %v680_v33 = vrot.slane %v5009_v22, 5  ;;  %v767_v36 = vrot.slane %v5009_v22, 2 }
  0x95   : > { %774 = vrot.lane.b32.xlu0 %v766_v24, %s7370_s25  ;;  %878 = vrot.lane.b32.xlu1 %v869_v25, %s4861_s22  ;;  %v603_v62 = vshll.u32 %v5014_v26, 16  ;;  %v600_v3 = vshrl.u32 %v5014_v26, 16  ;;  %v595_v14 = vshll.u32 %v5009_v22, 16  ;;  %v713_v16 = vor.u32 %v712_v9, %v711_v7 }
  0x96   : > { %v802_v31 = vrot.slane %v619_v23, 1  ;;  %v724_v53 = vrot.slane %v619_v23, 4  ;;  %vm703_vm0 = vcmask 1031168  }
  0x97   : > { %v800_v4 = vrot.slane %v603_v62, 1  ;;  %v906_v11 = vrot.slane %v600_v3, 5  ;;  %v907_v13 = vrot.slane %v603_v62, 6  ;;  %v602_v18 = vrot.slane %v600_v3, 6 }
  0x98   : > { %v605_v20 = vrot.slane %v603_v62, 7  ;;  %v799_v21 = vrot.slane %v595_v14, 1  ;;  %v715_v58 = vrot.slane %v595_v14, 4 }
  0x99   : > { %880 = vrot.lane.b32.xlu0 %v870_v27, %s4861_s22  ;;  %967 = vrot.lane.b32.xlu1 %v957_v28, %s7355_s23  ;;  %v808_v10 = vor.u32 %v800_v4, %v600_v3  ;;  %v908_v17 = vor.u32 %v907_v13, %v906_v11  ;;  %v717_v27 = vrot.slane %v600_v3, 3  ;;  %v718_v28 = vrot.slane %v603_v62, 4 }
  0x9a   : > { %v606_v24 = vor.u32 %v605_v20, %v602_v18  ;;  %v4754_v25 = vpack.i.bf16 %v800_v4, %v799_v21  ;;  %v5121_v62 = vshrl.u32 %v5104_v42, 16  ;;  %v5129_v3 = vshll.u32 %v5059_v48, 16 }
  0x9b   : > { %v771_v4 = vrot.slane %v5059_v48, 2  ;;  %v613_v11 = vrot.slane %v5072_v56, 7  ;;  %v721_v20 = vrot.slane %v5072_v56, 4 }
  0x9c   : > { %v803_v9 = vrot.slane %v5129_v3, 1  ;;  %v916_v18 = vrot.slane %v5129_v3, 6 }
  0x9d   : > { %965 = vrot.lane.b32.xlu0 %v956_v29, %s7355_s23  ;;  %691 = vrot.lane.b32.xlu1 %v681_v30, %s7368_s24  ;;  %v5093_v29 = vshrl.u32 %v5038_v37, 16  ;;  %v719_v30 = vor.u32 %v718_v28, %v717_v27  ;;  %v875_v27 = vrot.slane %v5104_v42, 7 }
  0xa1   : > { %778 = vrot.lane.b32.xlu1 %v768_v32, %s7370_s25  ;;  %689 = vrot.lane.b32.xlu0 %v680_v33, %s7368_s24  ;;  %v592_v32 = vshrl.u32 %v5009_v22, 16  ;;  %v616_v33 = vshrl.u32 %v5029_v34, 16 }
  0xa3   : > { %v594_v49 = vrot.slane %v592_v32, 6  ;;  %v723_v52 = vrot.slane %v616_v33, 3  ;;  %v810_v63 = vor.u32 %v802_v31, %v616_v33 }
  0xa5   : > { %884 = vrot.lane.b32.xlu1 %v872_v35, %s4861_s22  ;;  %776 = vrot.lane.b32.xlu0 %v767_v36, %s7370_s25  ;;  %v809_v35 = vor.u32 %v801_v61, %v5093_v29  ;;  %v913_v36 = vrot.slane %v619_v23, 6 }
  0xa9   : > { %969 = vrot.lane.b32.xlu1 %v958_v38, %s7355_s23  ;;  %882 = vrot.lane.b32.xlu0 %v871_v39, %s4861_s22  ;;  %v807_v38 = vor.u32 %v799_v21, %v592_v32  ;;  %v912_v39 = vrot.slane %v616_v33, 5 }
  0xad   : > { %693 = vrot.lane.b32.xlu1 %v682_v40, %s7368_s24  ;;  %971 = vrot.lane.b32.xlu0 %v959_v41, %s7355_s23  ;;  %v903_v40 = vrot.slane %v592_v32, 5  ;;  %v904_v41 = vrot.slane %v595_v14, 6 }
  0xb1   : > { %780 = vrot.lane.b32.xlu1 %v769_v43, %s7370_s25  ;;  %695 = vrot.lane.b32.xlu0 %v683_v44, %s7368_s24  ;;  %v618_v43 = vrot.slane %v616_v33, 6  ;;  %v621_v44 = vrot.slane %v619_v23, 7 }
  0xb3   : > { %v622_v19 = vor.u32 %v621_v44, %v618_v43 }
  0xb5   : > { %888 = vrot.lane.b32.xlu1 %v874_v46, %s4861_s22  ;;  %782 = vrot.lane.b32.xlu0 %v770_v47, %s7370_s25  ;;  %v914_v46 = vor.u32 %v913_v36, %v912_v39  ;;  %v905_v47 = vor.u32 %v904_v41, %v903_v40 }
  0xb9   : > { %975 = vrot.lane.b32.xlu1 %v961_v50, %s7355_s23  ;;  %886 = vrot.lane.b32.xlu0 %v873_v51, %s4861_s22  ;;  %v597_v50 = vrot.slane %v595_v14, 7  ;;  %v5109_v51 = vshll.u32 %v5104_v42, 16  ;;  %v720_v14 = vrot.slane %v5093_v29, 3 }
  0xbb   : > { %v805_v61 = vrot.slane %v5109_v51, 1  ;;  %v722_v23 = vor.u32 %v721_v20, %v720_v14  ;;  %v922_v36 = vrot.slane %v5109_v51, 6 }
  0xbd   : > { %699 = vrot.lane.b32.xlu1 %v685_v54, %s7368_s24  ;;  %973 = vrot.lane.b32.xlu0 %v960_v55, %s7355_s23  ;;  %v7376_v54 = vmov 0   ;;  %v598_v55 = vor.u32 %v597_v50, %v594_v49  ;;  %v813_v0 = vor.u32 %v805_v61, %v5121_v62  ;;  %v962_v49 = vrot.slane %v5104_v42, 4 }
  0xbe   : > { %1208 = vmatprep.mubr.bf16.mxu1 %v7376_v54  ;;  %1294 = vmatprep.mubr.bf16.mxu0 %v7376_v54 }
  0xbf   : > { %4770 = vset.pattern.permute.xlu1 %v7376_v54  ;;  %4769 = vset.pattern.permute.xlu0 %v7376_v54 }
  0xc1   : > { %830 = vrot.lane.b32.xlu1 %v806_v57, %s7372_s26  ;;  %697 = vrot.lane.b32.xlu0 %v684_v59, %s7368_s24  ;;  %v714_v57 = vrot.slane %v592_v32, 3  ;;  %v725_v59 = vor.u32 %v724_v53, %v723_v52  ;;  %v921_v32 = vrot.slane %v5121_v62, 5 }
  0xc3   : > { %v716_v60 = vor.u32 %v715_v58, %v714_v57  ;;  %v923_v41 = vor.u32 %v922_v36, %v921_v32  ;;  %v686_v57 = vrot.slane %v5104_v42, 5 }
  0xc5   : > { %924 = vrot.lane.b32.xlu1 %v902_v1, %s4866_s27  ;;  %4760 = vrot.lane.b32.xlu0 %v4759_v2, %s7372_s26  ;;  %v909_v1 = vrot.slane %v5093_v29, 5  ;;  %v910_v2 = vrot.slane %v5072_v56, 6  ;;  %v635_v56 = vshll.u32 %v5052_v45, 16 }
  0xc7   : > { %v911_v7 = vor.u32 %v910_v2, %v909_v1  ;;  %v804_v39 = vrot.slane %v635_v56, 1  ;;  %v637_v53 = vrot.slane %v635_v56, 7  ;;  %v773_v1 = vrot.slane %v5104_v42, 2 }
  0xc9   : > { %646 = vrot.lane.b32.xlu1 %v590_v6, %s7353_s28  ;;  %834 = vrot.lane.b32.xlu0 %v808_v10, %s7372_s26  ;;  %v624_v6 = vshrl.u32 %v5059_v48, 16  ;;  %v610_v10 = vrot.slane %v5093_v29, 6 }
  0xcb   : > { %v915_v13 = vrot.slane %v624_v6, 5  ;;  %v726_v29 = vrot.slane %v624_v6, 3 }
  0xcd   : > { %735 = vrot.lane.b32.xlu1 %v713_v16, %s7380_s17  ;;  %928 = vrot.lane.b32.xlu0 %v908_v17, %s4866_s27  ;;  %v811_v16 = vor.u32 %v803_v9, %v624_v6  ;;  %v614_v17 = vor.u32 %v613_v11, %v610_v10  ;;  %v917_v21 = vor.u32 %v916_v18, %v915_v13  ;;  %v641_v10 = vrot.slane %v5121_v62, 6 }
  0xce   : > { %v644_v11 = vrot.slane %v5109_v51, 7 }
  0xd0   : > { %v645_v14 = vor.u32 %v644_v11, %v641_v10 }
  0xd1   : > { %650 = vrot.lane.b32.xlu0 %v606_v24, %s7353_s28  ;;  %4755 = vrot.lane.b32.xlu1 %v4754_v25, %s7372_s26  ;;  %v626_v24 = vrot.slane %v624_v6, 6  ;;  %v629_v25 = vrot.slane %v5129_v3, 7 }
  0xd3   : > { %v630_v28 = vor.u32 %v629_v25, %v626_v24 }
  0xd5   : > { %739 = vrot.lane.b32.xlu0 %v719_v30, %s7380_s17  ;;  %822 = vrot.lane.b32.xlu1 %v802_v31, %s7372_s26  ;;  %v727_v30 = vrot.slane %v5129_v3, 4  ;;  %v772_v31 = vrot.slane %v5052_v45, 2  ;;  %v1138_v3 = vld [vmem:[%s7341_s3] sm:$0xff] }
  0xd9   : > { %836 = vrot.lane.b32.xlu0 %v809_v35, %s7372_s26  ;;  %832 = vrot.lane.b32.xlu1 %v807_v38, %s7372_s26  ;;  %v728_v35 = vor.u32 %v727_v30, %v726_v29  ;;  %v632_v38 = vshrl.u32 %v5052_v45, 16 }
  0xdb   : > { %v812_v43 = vor.u32 %v804_v39, %v632_v38  ;;  %v918_v44 = vrot.slane %v632_v38, 5  ;;  %v634_v52 = vrot.slane %v632_v38, 6 }
  0xdd   : > { %932 = vrot.lane.b32.xlu0 %v914_v46, %s4866_s27  ;;  %926 = vrot.lane.b32.xlu1 %v905_v47, %s4866_s27  ;;  %v919_v46 = vrot.slane %v635_v56, 6  ;;  %v638_v58 = vor.u32 %v637_v53, %v634_v52 }
  0xdf   : > { %v920_v50 = vor.u32 %v919_v46, %v918_v44 }
  0xe1   : > { %654 = vrot.lane.b32.xlu0 %v622_v19, %s7353_s28  ;;  %648 = vrot.lane.b32.xlu1 %v598_v55, %s7353_s28 }
  0xe5   : > { %743 = vrot.lane.b32.xlu0 %v725_v59, %s7380_s17  ;;  %737 = vrot.lane.b32.xlu1 %v716_v60, %s7380_s17  ;;  %v729_v59 = vrot.slane %v632_v38, 3  ;;  %v730_v60 = vrot.slane %v635_v56, 4 }
  0xe7   : > { %v731_v2 = vor.u32 %v730_v60, %v729_v59 }
  0xe9   : > { %844 = vrot.lane.b32.xlu0 %v813_v0, %s7372_s26  ;;  %838 = vrot.lane.b32.xlu1 %v810_v63, %s7372_s26 }
  0xed   : > { %784 = vrot.lane.b32.xlu0 %v771_v4, %s7370_s25  ;;  %930 = vrot.lane.b32.xlu1 %v911_v7, %s4866_s27  ;;  %v4764_v7 = vpack.i.bf16 %v804_v39, %v803_v9 }
  0xf1   : > { %840 = vrot.lane.b32.xlu0 %v811_v16, %s7372_s26  ;;  %652 = vrot.lane.b32.xlu1 %v614_v17, %s7353_s28  ;;  %v732_v16 = vrot.slane %v5121_v62, 3  ;;  %v733_v17 = vrot.slane %v5109_v51, 4  ;;  %v1139_v62 = vld [vmem:[%s7341_s3 + $0x8] sm:$0xff] }
  0xf3   : > { %v734_v20 = vor.u32 %v733_v17, %v732_v16 }
  0xf5   : > { %934 = vrot.lane.b32.xlu0 %v917_v21, %s4866_s27  ;;  %741 = vrot.lane.b32.xlu1 %v722_v23, %s7380_s17 }
  0xf9   : > { %656 = vrot.lane.b32.xlu0 %v630_v28, %s7353_s28  ;;  %890 = vrot.lane.b32.xlu1 %v875_v27, %s4861_s22 }
  0xfb   : > { %v5157_v33 = vpop.permute.xlu0 %876 }
  0xfd   : > { %745 = vrot.lane.b32.xlu0 %v728_v35, %s7380_s17  ;;  %786 = vrot.lane.b32.xlu1 %v772_v31, %s7370_s25 }
  0xff   : > { %v5163_v40 = vpop.permute.xlu0 %963 }
 0x101   : > { %938 = vrot.lane.b32.xlu0 %v923_v41, %s4866_s27  ;;  %842 = vrot.lane.b32.xlu1 %v812_v43, %s7372_s26 }
 0x103   : > { %v5167_v47 = vpop.permute.xlu0 %687 }
 0x105   : > { %977 = vrot.lane.b32.xlu0 %v962_v49, %s7355_s23  ;;  %936 = vrot.lane.b32.xlu1 %v920_v50, %s4866_s27  ;;  %s7414_s23 = smov 62  }
 0x107   : > { %v5172_v19 = vpop.permute.xlu1 %878  ;;  %v5174_v55 = vpop.permute.xlu0 %774 }
 0x109   : > { %701 = vrot.lane.b32.xlu0 %v686_v57, %s7368_s24  ;;  %658 = vrot.lane.b32.xlu1 %v638_v58, %s7353_s28  ;;  %v4870_v58 = vmov 65535  }
 0x10a   : > { %v1160_v59 = vsel %vm1026_vm1, 4294967295, %v4870_v58 }
 0x10b   : > { %v5179_v63 = vpop.permute.xlu1 %967  ;;  %v5181_v0 = vpop.permute.xlu0 %880  ;;  %v5278_v16 = vsel %vm1036_vm6, %v1160_v59, 0 }
 0x10c   : > { %v894_v10 = vsel %vm7363_vm4, %v5172_v19, %v5181_v0 }
 0x10d   : > { %788 = vrot.lane.b32.xlu0 %v773_v1, %s7370_s25  ;;  %747 = vrot.lane.b32.xlu1 %v731_v2, %s7380_s17 }
 0x10f   : > { %v5186_v4 = vpop.permute.xlu1 %691  ;;  %v5188_v6 = vpop.permute.xlu0 %965 }
 0x111   : > { %4765 = vrot.lane.b32.xlu1 %v4764_v7, %s7372_s26  ;;  %1142 = vperm.xlu0 %4769, %v1138_v3   ;;  %v893_v7 = vsel %vm7363_vm4, %v5157_v33, %v5172_v19  ;;  %v980_v19 = vsel %vm7360_vm9, %v5163_v40, %v5188_v6 }
 0x113   : > { %v5195_v13 = vpop.permute.xlu1 %778  ;;  %v5197_v42 = vpop.permute.xlu0 %689 }
 0x115   : > { %660 = vrot.lane.b32.xlu1 %v645_v14, %s7353_s28  ;;  %s7415_s28 = smov 127  }
 0x117   : > { %v5205_v9 = vpop.permute.xlu1 %884  ;;  %v5207_v18 = vpop.permute.xlu0 %776 }
 0x119   : > { %749 = vrot.lane.b32.xlu1 %v734_v20, %s7380_s17 }
 0x11b   : > { %v5210_v21 = vpop.permute.xlu1 %969  ;;  %v5212_v23 = vpop.permute.xlu0 %882 }
 0x11d   : > { %828 = vrot.lane.b32.xlu1 %v805_v61, %s7372_s26 }
 0x11f   : > { %v5220_v24 = vpop.permute.xlu1 %693  ;;  %v5222_v25 = vpop.permute.xlu0 %971 }
 0x121   : > { %1147 = vperm.xlu1 %4770, %v1139_v62   ;;  %v981_v62 = vsel %vm7360_vm9, %v5188_v6, %v5179_v63  ;;  %vm790_vm9 = vcmask 777216  }
 0x123   : > { %v5224_v27 = vpop.permute.xlu1 %780  ;;  %v5226_v28 = vpop.permute.xlu0 %695 }
 0x127   : > { %v5228_v29 = vpop.permute.xlu1 %888  ;;  %v5230_v30 = vpop.permute.xlu0 %782 }
 0x12b   : > { %v5232_v56 = vpop.permute.xlu1 %975  ;;  %v5234_v51 = vpop.permute.xlu0 %886 }
 0x12f   : > { %v5236_v61 = vpop.permute.xlu1 %699  ;;  %v5238_v31 = vpop.permute.xlu0 %973 }
 0x133   : > { %v831_v32 = vpop.permute.xlu1 %830  ;;  %v5240_v35 = vpop.permute.xlu0 %697 }
 0x137   : > { %v925_v36 = vpop.permute.xlu1 %924  ;;  %v5242_v38 = vpop.permute.xlu0 %4760 }
 0x13b   : > { %v647_v39 = vpop.permute.xlu1 %646  ;;  %v5244_v41 = vpop.permute.xlu0 %834 }
 0x13f   : > { %v5246_v43 = vpop.permute.xlu1 %735  ;;  %v5248_v44 = vpop.permute.xlu0 %928 }
 0x143   : > { %v5250_v46 = vpop.permute.xlu1 %4755  ;;  %v5252_v49 = vpop.permute.xlu0 %650 }
 0x147   : > { %v5254_v50 = vpop.permute.xlu1 %822  ;;  %v5256_v52 = vpop.permute.xlu0 %739 }
 0x14b   : > { %v833_v53 = vpop.permute.xlu1 %832  ;;  %v5258_v57 = vpop.permute.xlu0 %836 }
 0x14c   : > { %v854_v60 = vsel %vm846_vm5, %v831_v32, %v833_v53  ;;  %v855_v1 = vsel %vm846_vm5, %v833_v53, %v5244_v41 }
 0x14d   : > { %v1078_v17 = vsel %vm7362_vm7, %v854_v60, %v893_v7  ;;  %v1082_v33 = vsel %vm7362_vm7, %v855_v1, %v894_v10 }
 0x14f   : > { %v927_v11 = vpop.permute.xlu1 %926  ;;  %v5275_v14 = vpop.permute.xlu0 %932 }
 0x150   : > { %v941_v3 = vsel %vm7367_vm8, %v925_v36, %v927_v11  ;;  %v942_v20 = vsel %vm7367_vm8, %v927_v11, %v5248_v44 }
 0x151   : > { %v1108_v32 = vsel %vm5265_vm13, %v1082_v33, %v942_v20  ;;  %v1107_v53 = vsel %vm5265_vm13, %v1078_v17, %v941_v3  ;;  %v4758_v3 = vunpack.i.h.bf16 %v5250_v46  ;;  %v4762_v33 = vunpack.i.l.bf16 %v5242_v38 }
 0x152   : > { %v1120_v58 = vsel %vm7359_vm14, %v1108_v32, %v981_v62  ;;  %v1117_v40 = vsel %vm7359_vm14, %v1107_v53, %v980_v19  ;;  %vm1066_vm14 = vsmask.f32 7424 }
 0x153   : > { %v649_v59 = vpop.permute.xlu1 %648  ;;  %v5303_v60 = vpop.permute.xlu0 %654  ;;  %v1164_v6 = vand.u32 %v5278_v16, %v1120_v58  ;;  %v1162_v1 = vand.u32 %v5278_v16, %v1117_v40 }
 0x154   : > { %v663_v7 = vsel %vm7361_vm10, %v647_v39, %v649_v59  ;;  %v664_v10 = vsel %vm7361_vm10, %v649_v59, %v5252_v49  ;;  %v4757_v39 = vunpack.i.l.bf16 %v5250_v46  ;;  %vm5320_vm10 = vmand %vm1026_vm1, %vm1027_vm3 }
 0x155   : > { %v990_v11 = vsel %vm5297_vm15, %v4998_v15, %v663_v7  ;;  %v991_v17 = vsel %vm5297_vm15, %v5009_v22, %v664_v10  ;;  %1188 = vmatprep.subr.bf16.mxu1 %v1164_v6  ;;  %v704_v15 = vsel %vm703_vm0, %v5167_v47, %v5197_v42  ;;  %v705_v22 = vsel %vm703_vm0, %v5197_v42, %v5186_v4  ;;  %vm5341_vm1 = vmand %vm1065_vm11, %vm1066_vm14 }
 0x156   : > { %1189 = vmatpush1.bf16.msra.mxu1 %v1162_v1  ;;  %v1000_v58 = vsel %vm7378_vm2, %v990_v11, %v704_v15  ;;  %v1004_v40 = vsel %vm7378_vm2, %v991_v17, %v705_v22  ;;  %v791_v42 = vsel %vm790_vm9, %v5174_v55, %v5207_v18  ;;  %v848_v1 = vsel %vm846_vm5, %v4757_v39, %v4758_v3  ;;  %v5372_v22 = vld [vmem:[%s7340_s2] sm:$0xff]  }
 0x157   : > { %v738_v19 = vpop.permute.xlu1 %737  ;;  %v5331_v62 = vpop.permute.xlu0 %743  ;;  %v847_v10 = vsel %vm846_vm5, %v4762_v33, %v4757_v39  ;;  %v856_v39 = vsel %vm846_vm5, %v5244_v41, %v5258_v57  ;;  %vm7366_vm11 = vcmask 220160   ;;  %vm7390_vm14 = vcmask 506880  }
 0x158   : > { %v752_v32 = vsel %vm751_vm12, %v5246_v43, %v738_v19  ;;  %v753_v53 = vsel %vm751_vm12, %v738_v19, %v5256_v52  ;;  %v792_v43 = vsel %vm790_vm9, %v5207_v18, %v5195_v13  ;;  %v895_v19 = vsel %vm7363_vm4, %v5181_v0, %v5212_v23  ;;  %vm7391_vm3 = vmmov %vm7390_vm14 }
 0x159   : > { %v1029_v59 = vsel %vm5320_vm10, %v1000_v58, %v752_v32  ;;  %v1030_v6 = vsel %vm5320_vm10, %v1004_v40, %v753_v53  ;;  %v896_v32 = vsel %vm7363_vm4, %v5212_v23, %v5205_v9  ;;  %v1086_v40 = vsel %vm7362_vm7, %v856_v39, %v895_v19 }
 0x15a   : > { %v1043_v7 = vsel %vm1036_vm6, %v1030_v6, %v792_v43  ;;  %v1039_v55 = vsel %vm1036_vm6, %v1029_v59, %v791_v42  ;;  %v982_v0 = vsel %vm7390_vm14, %v5179_v63, %v5210_v21  ;;  %v983_v23 = vsel %vm7391_vm3, %v5210_v21, %v5222_v25 }
 0x15b   : > { %v5361_v11 = vpop.permute.xlu1 %838  ;;  %v5363_v17 = vpop.permute.xlu0 %844  ;;  %v1069_v18 = vsel %vm5341_vm1, %v1043_v7, %v848_v1  ;;  %v1068_v15 = vsel %vm5341_vm1, %v1039_v55, %v847_v10  ;;  %vm7394_vm14 = vcmask 1039360   ;;  %v706_v39 = vsel %vm703_vm0, %v5186_v4, %v5220_v24 }
 0x15c   : > { %1190 = vmatprep.subr.bf16.mxu1 %v1069_v18  ;;  %v857_v33 = vsel %vm846_vm5, %v5258_v57, %v5361_v11  ;;  %vm7395_vm3 = vmmov %vm7394_vm14  ;;  %v793_v4 = vsel %vm790_vm9, %v5195_v13, %v5224_v27 }
 0x15d   : > { %1191 = vmatpush1.bf16.msra.mxu1 %v1068_v15  ;;  %v1090_v41 = vsel %vm7362_vm7, %v857_v33, %v896_v32  ;;  %vm7392_vm7 = vcmask 1043456   ;;  %v4763_v33 = vunpack.i.h.bf16 %v5242_v38 }
 0x15e   : > { %vm7393_vm4 = vmmov %vm7392_vm7 }
 0x15f   : > { %v931_v53 = vpop.permute.xlu1 %930  ;;  %v5386_v58 = vpop.permute.xlu0 %784 }
 0x160   : > { %v943_v57 = vsel %vm7367_vm8, %v5248_v44, %v931_v53  ;;  %v944_v42 = vsel %vm7367_vm8, %v931_v53, %v5275_v14  ;;  %4630 = vmatmul.mubr.msk.bf16.vlgmr.msra.gmra.mxu1 %vm7366_vm11, %v5372_v22 }
 0x161   : > { %v1109_v43 = vsel %vm5265_vm13, %v1086_v40, %v943_v57  ;;  %v1110_v44 = vsel %vm5265_vm13, %v1090_v41, %v944_v42  ;;  %1251 = vmatprep.mubr.bf16.mxu1 %v7376_v54  ;;  %v850_v41 = vsel %vm846_vm5, %v4763_v33, %v5254_v50  ;;  %v849_v42 = vsel %vm846_vm5, %v4758_v3, %v4763_v33 }
 0x162   : > { %v1123_v59 = vsel %vm7392_vm7, %v1109_v43, %v982_v0  ;;  %v1126_v6 = vsel %vm7393_vm4, %v1110_v44, %v983_v23  ;;  %v7374_v44 = vmov 0.0   ;;  %vm7364_vm4 = vmmov 0  }
 0x163   : > { %v653_v1 = vpop.permute.xlu1 %652  ;;  %v841_v7 = vpop.permute.xlu0 %840  ;;  %v1168_v63 = vand.u32 %v5278_v16, %v1126_v6  ;;  %v1166_v10 = vand.u32 %v5278_v16, %v1123_v59  ;;  %vm7396_vm7 = vcmask 523264  }
 0x164   : > { %v665_v21 = vsel %vm7394_vm14, %v5252_v49, %v653_v1  ;;  %v666_v55 = vsel %vm7395_vm3, %v653_v1, %v5303_v60  ;;  %v707_v49 = vsel %vm703_vm0, %v5220_v24, %v5226_v28  ;;  %v794_v24 = vsel %vm790_vm9, %v5224_v27, %v5230_v30  ;;  %vm7398_vm3 = vmmov %vm7396_vm7 }
 0x165   : > { %v992_v18 = vsel %vm5297_vm15, %v5014_v26, %v665_v21  ;;  %v993_v15 = vsel %vm5297_vm15, %v5038_v37, %v666_v55  ;;  %1231 = vmatprep.subr.bf16.mxu1 %v1168_v63  ;;  %v858_v3 = vsel %vm846_vm5, %v5361_v11, %v841_v7  ;;  %vm7397_vm14 = vcmask 1040384  }
 0x166   : > { %1232 = vmatpush1.bf16.msra.mxu1 %v1166_v10  ;;  %v1008_v53 = vsel %vm7378_vm2, %v992_v18, %v706_v39  ;;  %v1012_v40 = vsel %vm7378_vm2, %v993_v15, %v707_v49  ;;  %v897_v10 = vsel %vm7396_vm7, %v5205_v9, %v5234_v51  ;;  %vm7400_vm7 = vcmask 506880  }
 0x167   : > { %v742_v19 = vpop.permute.xlu1 %741  ;;  %v935_v32 = vpop.permute.xlu0 %934  ;;  %v1094_v55 = vsel %vm7397_vm14, %v858_v3, %v897_v10  ;;  %v984_v9 = vsel %vm7400_vm7, %v5222_v25, %v5238_v31 }
 0x168   : > { %v754_v26 = vsel %vm751_vm12, %v5256_v52, %v742_v19  ;;  %v755_v37 = vsel %vm751_vm12, %v742_v19, %v5331_v62  ;;  %v945_v6 = vsel %vm7367_vm8, %v5275_v14, %v935_v32 }
 0x169   : > { %v1031_v38 = vsel %vm5320_vm10, %v1008_v53, %v754_v26  ;;  %v1032_v52 = vsel %vm5320_vm10, %v1012_v40, %v755_v37  ;;  %v1111_v11 = vsel %vm5265_vm13, %v1094_v55, %v945_v6 }
 0x16a   : > { %v1051_v57 = vsel %vm1036_vm6, %v1032_v52, %v794_v24  ;;  %v1047_v13 = vsel %vm1036_vm6, %v1031_v38, %v793_v4 }
 0x16b   : > { %v891_v0 = vpop.permute.xlu1 %890  ;;  %v657_v23 = vpop.permute.xlu0 %656  ;;  %v1071_v27 = vsel %vm5341_vm1, %v1051_v57, %v850_v41  ;;  %v1070_v43 = vsel %vm5341_vm1, %v1047_v13, %v849_v42  ;;  %v709_v42 = vsel %vm703_vm0, %v5240_v35, %v5236_v61 }
 0x16c   : > { %1233 = vmatprep.subr.bf16.mxu1 %v1071_v27  ;;  %v899_v15 = vsel %vm7398_vm3, %v5228_v29, %v891_v0 }
 0x16d   : > { %1234 = vmatpush1.bf16.msra.mxu1 %v1070_v43 }
 0x16e   : > { %4692 = vmatprep.subr.bf16.mxu1 %v7374_v44 }
 0x16f   : > { %v5456_v59 = vpop.permute.xlu1 %786  ;;  %v746_v46 = vpop.permute.xlu0 %745 }
 0x170   : > { %4631 = vmatmul.mubr.msk.bf16.vlgmr.msra.gmra.mxu1 %vm7366_vm11, %v5372_v22  ;;  %vm7401_vm11 = vmmov %vm7397_vm14 }
 0x171   : > { %4696 = vmatprep.mubr.msk.bf16.mxu1 %vm7364_vm4, %v7374_v44  ;;  %vm7399_vm4 = vmmov %vm7398_vm3 }
 0x172   : > { %v898_v14 = vsel %vm7399_vm4, %v5234_v51, %v5228_v29  ;;  %vm7402_vm14 = vmmov %vm7400_vm7 }
 0x173   : > { %v843_v1 = vpop.permute.xlu1 %842  ;;  %v939_v63 = vpop.permute.xlu0 %938  ;;  %vm7403_vm3 = vmmov %vm7401_vm11 }
 0x174   : > { %v860_v21 = vsel %vm846_vm5, %v843_v1, %v5363_v17  ;;  %v859_v18 = vsel %vm846_vm5, %v841_v7, %v843_v1  ;;  %vm7404_vm4 = vmmov %vm7400_vm7 }
 0x175   : > { %v1102_v17 = vsel %vm7401_vm11, %v860_v21, %v899_v15  ;;  %v1098_v26 = vsel %vm7403_vm3, %v859_v18, %v898_v14  ;;  %v985_v25 = vsel %vm7404_vm4, %v5238_v31, %v5232_v56  ;;  %vm7405_vm11 = vcmask 1043456  }
 0x176   : > { %v1129_v37 = vsel %vm7405_vm11, %v1111_v11, %v984_v9  ;;  %vm7406_vm7 = vmmov %vm7405_vm11 }
 0x177   : > { %v937_v39 = vpop.permute.xlu1 %936  ;;  %v978_v49 = vpop.permute.xlu0 %977 }
 0x178   : > { %v946_v7 = vsel %vm7367_vm8, %v935_v32, %v937_v39  ;;  %v947_v33 = vsel %vm7367_vm8, %v937_v39, %v939_v63  ;;  %v986_v19 = vsel %vm7402_vm14, %v5232_v56, %v978_v49  ;;  %vm7407_vm8 = vmmov %vm7406_vm7  ;;  %vm7408_vm14 = vcmask 1039360  }
 0x179   : > { %v1113_v29 = vsel %vm5265_vm13, %v1102_v17, %v947_v33  ;;  %v1112_v51 = vsel %vm5265_vm13, %v1098_v26, %v946_v7  ;;  %v667_v38 = vsel %vm7408_vm14, %v5303_v60, %v657_v23  ;;  %vm7409_vm3 = vmmov %vm7408_vm14  ;;  %v1170_v56 = vand.u32 %v5278_v16, %v1129_v37  ;;  %v5571_v33 = vld [vmem:[%s7339_s1] sm:$0xff] }
 0x17a   : > { %v1135_v32 = vsel %vm7406_vm7, %v1113_v29, %v986_v19  ;;  %v1132_v53 = vsel %vm7407_vm8, %v1112_v51, %v985_v25  ;;  %v994_v31 = vsel %vm5297_vm15, %v5029_v34, %v667_v38  ;;  %v756_v60 = vsel %vm751_vm12, %v5331_v62, %v746_v46  ;;  %vm7410_vm8 = vmmov %vm7409_vm3 }
 0x17b   : > { %v1174_v40 = vand.u32 %v5278_v16, %v1135_v32  ;;  %v659_v4 = vpop.permute.xlu1 %658  ;;  %v1172_v24 = vand.u32 %v5278_v16, %v1132_v53  ;;  %v708_v16 = vsel %vm703_vm0, %v5226_v28, %v5240_v35  ;;  %v795_v28 = vsel %vm790_vm9, %v5230_v30, %v5386_v58  ;;  %v702_v43 = vpop.permute.xlu0 %701 }
 0x17c   : > { %v668_v52 = vsel %vm7409_vm3, %v657_v23, %v659_v4  ;;  %v1016_v34 = vsel %vm7378_vm2, %v994_v31, %v708_v16  ;;  %v796_v35 = vsel %vm790_vm9, %v5386_v58, %v5456_v59  ;;  %vm7411_vm13 = vcmask 220160  }
 0x17d   : > { %1274 = vmatprep.subr.bf16.mxu0 %v1172_v24  ;;  %4693 = vmatpush3.bf16.msra.mxu1 %v1174_v40  ;;  %v995_v2 = vsel %vm5297_vm15, %v5059_v48, %v668_v52  ;;  %v1033_v48 = vsel %vm5320_vm10, %v1016_v34, %v756_v60  ;;  %v1361_v39 = vlaneseq }
 0x17e   : > { %1275 = vmatpush1.bf16.msra.mxu0 %v1170_v56  ;;  %4694 = vmatprep.subr.bf16.mxu1 %v7374_v44  ;;  %v1020_v13 = vsel %vm7378_vm2, %v995_v2, %v709_v42  ;;  %v1055_v1 = vsel %vm1036_vm6, %v1033_v48, %v795_v28 }
 0x17f   : > { %v748_v41 = vpop.permute.xlu1 %747  ;;  %v789_v18 = vpop.permute.xlu0 %788  ;;  %v5563_v49 = vshrl.u32 %v1361_v39, 7 }
 0x180   : > { %v757_v57 = vsel %vm751_vm12, %v746_v46, %v748_v41  ;;  %v797_v36 = vsel %vm790_vm9, %v5456_v59, %v789_v18 }
 0x181   : > { %v1034_v62 = vsel %vm5320_vm10, %v1020_v13, %v757_v57  ;;  %v1363_v59 = vsub.s32 0, %v5563_v49  ;;  %v1367_v19 = vsub.s32 1, %v5563_v49  ;;  %v1371_v34 = vsub.s32 2, %v5563_v49 }
 0x182   : > { %v1059_v3 = vsel %vm1036_vm6, %v1034_v62, %v796_v35 }
 0x183   : > { %v4766_v0 = vpop.permute.xlu1 %4765  ;;  %v5578_v29 = vrot.slane %v5571_v33, %v1363_v59  ;;  %v5583_v53 = vrot.slane %v5571_v33, %v1367_v19 }
 0x184   : > { %v4768_v23 = vunpack.i.h.bf16 %v4766_v0  ;;  %v4767_v27 = vunpack.i.l.bf16 %v4766_v0  ;;  %v5595_v0 = vrot.slane %v5571_v33, %v1371_v34 }
 0x186   : > { %v852_v46 = vsel %vm846_vm5, %v4767_v27, %v4768_v23  ;;  %v851_v6 = vsel %vm846_vm5, %v5254_v50, %v4767_v27  ;;  %v710_v50 = vsel %vm703_vm0, %v5236_v61, %v702_v43 }
 0x187   : > { %v661_v63 = vpop.permute.xlu1 %660  ;;  %v1073_v10 = vsel %vm5341_vm1, %v1059_v3, %v852_v46  ;;  %v1072_v30 = vsel %vm5341_vm1, %v1055_v1, %v851_v6  ;;  %v1379_v6 = vsub.s32 4, %v5563_v49 }
 0x188   : > { %v669_v21 = vsel %vm7410_vm8, %v659_v4, %v661_v63  ;;  %1276 = vmatprep.subr.bf16.mxu0 %v1073_v10  ;;  %v1383_v10 = vsub.s32 5, %v5563_v49  ;;  %vm1720_vm8 = vcmask 130048  }
 0x189   : > { %v996_v58 = vsel %vm5297_vm15, %v5052_v45, %v669_v21  ;;  %1277 = vmatpush1.bf16.msra.mxu0 %v1072_v30  ;;  %vm7412_vm15 = vmmov %vm7411_vm13 }
 0x18a   : > { %v1024_v11 = vsel %vm7378_vm2, %v996_v58, %v710_v50 }
 0x18b   : > { %v750_v55 = vpop.permute.xlu1 %749 }
 0x18c   : > { %v758_v15 = vsel %vm751_vm12, %v748_v41, %v750_v55  ;;  %4632 = vmatmul.mubr.msk.bf16.vlgmr.msra.gmra.mxu0 %vm7411_vm13, %v5372_v22  ;;  %v5565_v20 = vpop.permute.xlu0 %1142  ;;  %v5607_v55 = vrot.slane %v5571_v33, %v1379_v6 }
 0x18d   : > { %v1035_v14 = vsel %vm5320_vm10, %v1024_v11, %v758_v15  ;;  %v1375_v15 = vsub.s32 3, %v5563_v49  ;;  %v5612_v11 = vrot.slane %v5571_v33, %v1383_v10  ;;  %vm7413_vm10 = vcmask 269312   ;;  %v5729_v10 = vld [vmem:[%s7342_s4 + $0x4] ss:$8 sps:$4 sm:$0xff]  }
 0x18e   : > { %v1063_v61 = vsel %vm1036_vm6, %v1035_v14, %v797_v36  ;;  %4638 = vmatprep.mubr.msk.bf16.mxu0 %vm1720_vm8, %v5729_v10 }
 0x18f   : > { %v829_v45 = vpop.permute.xlu1 %828 }
 0x190   : > { %v853_v9 = vsel %vm846_vm5, %v4768_v23, %v829_v45 }
 0x191   : > { %v1074_v17 = vsel %vm5341_vm1, %v1063_v61, %v853_v9  ;;  %vm7416_vm1 = vmmov %vm7413_vm10 }
 0x192   : > { %4695 = vmatpush3.bf16.msra.mxu1 %v1074_v17  ;;  %vm7417_vm4 = vmmov %vm7416_vm1 }
 0x193   : > { %vm7418_vm11 = vmmov %vm7416_vm1 }
 0x194   : > { %vm7419_vm7 = vmmov %vm7416_vm1 }
 0x195   : > { %4697 = vmatmul.mubr.msk.bf16.vlgmr.msra.gmra.mxu1 %vm7412_vm15, %v5372_v22  ;;  %vm7420_vm14 = vmmov %vm7416_vm1  ;;  %vm7423_vm15 = vcmask 515072  }
 0x196   : > { %vm7421_vm3 = vmmov %vm7416_vm1  ;;  %4639 = vmatprep.mubr.msk.bf16.mxu1 %vm1720_vm8, %v5729_v10 }
 0x197   : > { %vm7422_vm13 = vmmov %vm7416_vm1 }
 0x19c   : > { %v5575_v22 = vpop.permute.xlu1 %1147 }
 0x220   : > { %v1210_v7 = vpop.f32.mrf.mxu1 }
 0x221   : > { %v1211_v47 = vadd.f32 %v1210_v7, %v5565_v20 }
 0x222   : > { %v1212_v26 = vpop.f32.mrf.mxu1 }
 0x223   : > { %v1346_v25 = vmax.f32 %v1211_v47, 0.0  ;;  %v1213_v51 = vadd.f32 %v1212_v26, %v5565_v20  ;;  %v5619_v26 = vrot.slane %v5571_v33, %v1375_v15 }
 0x224   : > { %v1214_v37 = vpop.f32.mrf.mxu1 }
 0x225   : > { %v1215_v32 = vadd.f32 %v1214_v37, %v5575_v22  ;;  %v1347_v40 = vmax.f32 %v1213_v51, 0.0  ;;  %v1396_v38 = vmul.f32 %v5578_v29, %v1346_v25  ;;  %v1387_v51 = vsub.s32 6, %v5563_v49 }
 0x226   : > { %v1216_v4 = vpop.f32.mrf.mxu1 }
 0x227   : > { %v1353_v24 = vmax.f32 %v1215_v32, 0.0  ;;  %v1217_v52 = vadd.f32 %v1216_v4, %v5575_v22  ;;  %v1397_v2 = vmul.f32 %v5583_v53, %v1347_v40 }
 0x229   : > { %v1403_v56 = vmul.f32 %v5578_v29, %v1353_v24  ;;  %v1354_v31 = vmax.f32 %v1217_v52, 0.0 }
 0x22b   : > { %v1410_v41 = vpack.c.bf16 %v1403_v56, %v1396_v38  ;;  %v1404_v60 = vmul.f32 %v5583_v53, %v1354_v31 }
 0x22d   : > { %1424 = vrot.lane.b32.xlu1 %v1410_v41, %s4860_s21  ;;  %v1411_v57 = vpack.c.bf16 %v1404_v60, %v1397_v2  ;;  %v5628_v2 = vrot.slane %v5571_v33, %v1387_v51 }
 0x22f   : > { %1426 = vrot.lane.b32.xlu0 %v1411_v57, %s4860_s21 }
 0x230   : > { %v1253_v16 = vpop.f32.mrf.mxu1 }
 0x231   : > { %v1254_v42 = vadd.f32 %v1253_v16, %v5565_v20 }
 0x232   : > { %v1255_v13 = vpop.f32.mrf.mxu1 }
 0x233   : > { %v1348_v62 = vmax.f32 %v1254_v42, 0.0  ;;  %v1256_v36 = vadd.f32 %v1255_v13, %v5565_v20 }
 0x234   : > { %v1257_v48 = vpop.f32.mrf.mxu1 }
 0x235   : > { %v1258_v23 = vadd.f32 %v1257_v48, %v5575_v22  ;;  %v1398_v28 = vmul.f32 %v5595_v0, %v1348_v62  ;;  %v1349_v37 = vmax.f32 %v1256_v36, 0.0 }
 0x236   : > { %v1259_v1 = vpop.f32.mrf.mxu1 }
 0x237   : > { %v1355_v27 = vmax.f32 %v1258_v23, 0.0  ;;  %v1260_v58 = vadd.f32 %v1259_v1, %v5575_v22  ;;  %v1399_v41 = vmul.f32 %v5619_v26, %v1349_v37 }
 0x239   : > { %v1405_v35 = vmul.f32 %v5595_v0, %v1355_v27  ;;  %v1356_v17 = vmax.f32 %v1260_v58, 0.0 }
 0x23b   : > { %v1412_v43 = vpack.c.bf16 %v1405_v35, %v1398_v28  ;;  %v1406_v38 = vmul.f32 %v5619_v26, %v1356_v17 }
 0x23d   : > { %1428 = vrot.lane.b32.xlu1 %v1412_v43, %s4860_s21  ;;  %v1413_v16 = vpack.c.bf16 %v1406_v38, %v1399_v41 }
 0x24c   : > { %v1296_v46 = vpop.f32.mrf.mxu0 }
 0x24d   : > { %v1297_v3 = vadd.f32 %v1296_v46, %v5565_v20 }
 0x24e   : > { %v1298_v63 = vpop.f32.mrf.mxu0 }
 0x24f   : > { %v1299_v30 = vadd.f32 %v1298_v63, %v5565_v20  ;;  %v1350_v50 = vmax.f32 %v1297_v3, 0.0 }
 0x250   : > { %v1300_v21 = vpop.f32.mrf.mxu0 }
 0x251   : > { %v1301_v18 = vadd.f32 %v1300_v21, %v5575_v22  ;;  %v1351_v45 = vmax.f32 %v1299_v30, 0.0  ;;  %v1400_v59 = vmul.f32 %v5607_v55, %v1350_v50 }
 0x252   : > { %v1302_v14 = vpop.f32.mrf.mxu0 }
 0x253   : > { %v1357_v9 = vmax.f32 %v1301_v18, 0.0  ;;  %v1303_v61 = vadd.f32 %v1302_v14, %v5575_v22  ;;  %v1401_v32 = vmul.f32 %v5612_v11, %v1351_v45  ;;  %v1700_v45 = vld [vmem:[%s7343_s5 + $0x8] sm:$0xff] }
 0x255   : > { %v1407_v7 = vmul.f32 %v5607_v55, %v1357_v9  ;;  %v1358_v47 = vmax.f32 %v1303_v61, 0.0  ;;  %v1339_v19 = vpop.f32.mrf.mxu1 }
 0x256   : > { %v1340_v25 = vadd.f32 %v1339_v19, %v5565_v20 }
 0x257   : > { %v1408_v40 = vmul.f32 %v5612_v11, %v1358_v47  ;;  %v4698_v4 = vpop.f32.mrf.mxu1  ;;  %v1414_v24 = vpack.c.bf16 %v1407_v7, %v1400_v59  ;;  %v1699_v47 = vld [vmem:[%s7343_s5] sm:$0xff] }
 0x258   : > { %v1352_v31 = vmax.f32 %v1340_v25, 0.0 }
 0x259   : > { %v1342_v52 = vpop.f32.mrf.mxu1  ;;  %1432 = vrot.lane.b32.xlu1 %v1414_v24, %s4860_s21  ;;  %v1415_v56 = vpack.c.bf16 %v1408_v40, %v1401_v32 }
 0x25a   : > { %v1343_v20 = vadd.f32 %v1342_v52, %v5575_v22  ;;  %v1402_v42 = vmul.f32 %v5628_v2, %v1352_v31 }
 0x25b   : > { %1434 = vrot.lane.b32.xlu0 %v1415_v56, %s4860_s21  ;;  %v4699_v60 = vpop.f32.mrf.mxu1 }
 0x25c   : > { %v1359_v57 = vmax.f32 %v1343_v20, 0.0 }
 0x25e   : > { %v1409_v34 = vmul.f32 %v5628_v2, %v1359_v57 }
 0x25f   : > { %1430 = vrot.lane.b32.xlu0 %v1413_v16, %s4860_s21 }
 0x260   : > { %v1416_v13 = vpack.c.bf16 %v1409_v34, %v1402_v42 }
 0x262   : > { %1436 = vrot.lane.b32.xlu1 %v1416_v13, %s4860_s21 }
 0x29f   : > { %v5637_v33 = vpop.permute.xlu1 %1424 }
 0x2a0   : > { %v1451_v22 = vsel %vm7413_vm10, 0, %v5637_v33  ;;  %vm7424_vm10 = vmmov %vm7423_vm15 }
 0x2a1   : > { %1607 = vrot.lane.b32.xlu1 %v1451_v22, %s4861_s22  ;;  %1637 = vrot.lane.b32.xlu0 %v1451_v22, %s4866_s27  ;;  %v1427_v48 = vpop.permute.xlu0 %1426 }
 0x2a2   : > { %v5651_v62 = vsel %vm7416_vm1, %v5637_v33, %v1427_v48  ;;  %vm7425_vm1 = vcmask 523264  }
 0x2a5   : > { %1547 = vrot.lane.b32.xlu1 %v1451_v22, %s7370_s25  ;;  %1577 = vrot.lane.b32.xlu0 %v1451_v22, %s7372_s26 }
 0x2a9   : > { %1487 = vrot.lane.b32.xlu1 %v1451_v22, %s7368_s24  ;;  %1517 = vrot.lane.b32.xlu0 %v1451_v22, %s7380_s17 }
 0x2ad   : > { %1667 = vrot.lane.b32.xlu1 %v1451_v22, %s7414_s23  ;;  %1457 = vrot.lane.b32.xlu0 %v1451_v22, %s7415_s28 }
 0x2af   : > { %v1429_v23 = vpop.permute.xlu1 %1428 }
 0x2b0   : > { %v5670_v27 = vsel %vm7417_vm4, %v1427_v48, %v1429_v23  ;;  %vm7426_vm4 = vmmov %vm7425_vm1 }
 0x2b1   : > { %1609 = vrot.lane.b32.xlu1 %v5651_v62, %s4861_s22  ;;  %1639 = vrot.lane.b32.xlu0 %v5651_v62, %s4866_s27 }
 0x2b5   : > { %1549 = vrot.lane.b32.xlu1 %v5651_v62, %s7370_s25  ;;  %1579 = vrot.lane.b32.xlu0 %v5651_v62, %s7372_s26 }
 0x2b9   : > { %1489 = vrot.lane.b32.xlu1 %v5651_v62, %s7368_s24  ;;  %1519 = vrot.lane.b32.xlu0 %v5651_v62, %s7380_s17 }
 0x2bd   : > { %1669 = vrot.lane.b32.xlu1 %v5651_v62, %s7414_s23  ;;  %1459 = vrot.lane.b32.xlu0 %v5651_v62, %s7415_s28 }
 0x2c1   : > { %1641 = vrot.lane.b32.xlu1 %v5670_v27, %s4866_s27 }
 0x2c5   : > { %1581 = vrot.lane.b32.xlu1 %v5670_v27, %s7372_s26 }
 0x2c9   : > { %1521 = vrot.lane.b32.xlu1 %v5670_v27, %s7380_s17 }
 0x2cb   : > { %v1433_v28 = vpop.permute.xlu1 %1432 }
 0x2cd   : > { %v1435_v35 = vpop.permute.xlu0 %1434  ;;  %1461 = vrot.lane.b32.xlu1 %v5670_v27, %s7415_s28 }
 0x2ce   : > { %v5681_v43 = vsel %vm7418_vm11, %v1433_v28, %v1435_v35  ;;  %vm7427_vm11 = vcmask 1039360  }
 0x2cf   : > { %1647 = vrot.lane.b32.xlu0 %v5681_v43, %s4866_s27 }
 0x2d1   : > { %v1431_v46 = vpop.permute.xlu0 %1430 }
 0x2d2   : > { %v5686_v3 = vsel %vm7419_vm7, %v1429_v23, %v1431_v46  ;;  %v5693_v6 = vsel %vm7420_vm14, %v1431_v46, %v1433_v28  ;;  %vm7428_vm7 = vmmov %vm7427_vm11 }
 0x2d3   : > { %1643 = vrot.lane.b32.xlu1 %v5686_v3, %s4866_s27  ;;  %1617 = vrot.lane.b32.xlu0 %v5681_v43, %s4861_s22  ;;  %vm7429_vm14 = vmmov %vm7421_vm3 }
 0x2d4   : > { %v1437_v1 = vpop.permute.xlu1 %1436 }
 0x2d5   : > { %v5720_v63 = vsel %vm7421_vm3, %v1435_v35, %v1437_v1  ;;  %v1454_v30 = vsel %vm7422_vm13, %v1437_v1, 0  ;;  %vm5855_vm3 = vmneg %vm7429_vm14 }
 0x2d6   : > { %vm7432_vm13 = vmmov %vm7424_vm10 }
 0x2d7   : > { %1587 = vrot.lane.b32.xlu0 %v5681_v43, %s7372_s26  ;;  %1615 = vrot.lane.b32.xlu1 %v5693_v6, %s4861_s22 }
 0x2db   : > { %1557 = vrot.lane.b32.xlu0 %v5681_v43, %s7370_s25  ;;  %1585 = vrot.lane.b32.xlu1 %v5693_v6, %s7372_s26 }
 0x2df   : > { %1611 = vrot.lane.b32.xlu0 %v5670_v27, %s4861_s22  ;;  %1555 = vrot.lane.b32.xlu1 %v5693_v6, %s7370_s25 }
 0x2e3   : > { %1527 = vrot.lane.b32.xlu0 %v5681_v43, %s7380_s17  ;;  %1525 = vrot.lane.b32.xlu1 %v5693_v6, %s7380_s17 }
 0x2e7   : > { %1551 = vrot.lane.b32.xlu0 %v5670_v27, %s7370_s25  ;;  %1495 = vrot.lane.b32.xlu1 %v5693_v6, %s7368_s24 }
 0x2eb   : > { %1497 = vrot.lane.b32.xlu0 %v5681_v43, %s7368_s24  ;;  %1465 = vrot.lane.b32.xlu1 %v5693_v6, %s7415_s28 }
 0x2ef   : > { %1491 = vrot.lane.b32.xlu0 %v5670_v27, %s7368_s24  ;;  %1649 = vrot.lane.b32.xlu1 %v5720_v63, %s4866_s27 }
 0x2f3   : > { %1671 = vrot.lane.b32.xlu0 %v5670_v27, %s7414_s23  ;;  %1619 = vrot.lane.b32.xlu1 %v5720_v63, %s4861_s22 }
 0x2f7   : > { %1645 = vrot.lane.b32.xlu0 %v5693_v6, %s4866_s27  ;;  %1589 = vrot.lane.b32.xlu1 %v5720_v63, %s7372_s26 }
 0x2fb   : > { %1613 = vrot.lane.b32.xlu0 %v5686_v3, %s4861_s22  ;;  %1559 = vrot.lane.b32.xlu1 %v5720_v63, %s7370_s25 }
 0x2ff   : > { %1583 = vrot.lane.b32.xlu0 %v5686_v3, %s7372_s26  ;;  %1529 = vrot.lane.b32.xlu1 %v5720_v63, %s7380_s17 }
 0x303   : > { %1553 = vrot.lane.b32.xlu0 %v5686_v3, %s7370_s25  ;;  %1499 = vrot.lane.b32.xlu1 %v5720_v63, %s7368_s24 }
 0x307   : > { %1523 = vrot.lane.b32.xlu0 %v5686_v3, %s7380_s17  ;;  %1469 = vrot.lane.b32.xlu1 %v5720_v63, %s7415_s28 }
 0x30b   : > { %1493 = vrot.lane.b32.xlu0 %v5686_v3, %s7368_s24  ;;  %1675 = vrot.lane.b32.xlu1 %v5693_v6, %s7414_s23 }
 0x30f   : > { %1463 = vrot.lane.b32.xlu0 %v5686_v3, %s7415_s28  ;;  %1677 = vrot.lane.b32.xlu1 %v5681_v43, %s7414_s23 }
 0x313   : > { %v1638_v21 = vpop.permute.xlu0 %1637  ;;  %1467 = vrot.lane.b32.xlu0 %v5681_v43, %s7415_s28  ;;  %1621 = vrot.lane.b32.xlu1 %v1454_v30, %s4861_s22  ;;  %v1608_v58 = vpop.permute.xlu1 %1607 }
 0x317   : > { %1673 = vrot.lane.b32.xlu0 %v5686_v3, %s7414_s23  ;;  %1561 = vrot.lane.b32.xlu1 %v1454_v30, %s7370_s25  ;;  %v1548_v50 = vpop.permute.xlu1 %1547  ;;  %v1578_v18 = vpop.permute.xlu0 %1577  ;;  %s7590_s25 = smov 96  }
 0x31b   : > { %1651 = vrot.lane.b32.xlu0 %v1454_v30, %s4866_s27  ;;  %1501 = vrot.lane.b32.xlu1 %v1454_v30, %s7368_s24  ;;  %v5776_v15 = vpop.permute.xlu1 %1487  ;;  %v1518_v14 = vpop.permute.xlu0 %1517  ;;  %s7556_s24 = smov 94  }
 0x31f   : > { %1679 = vrot.lane.b32.xlu0 %v5720_v63, %s7414_s23  ;;  %1681 = vrot.lane.b32.xlu1 %v1454_v30, %s7414_s23  ;;  %v5781_v36 = vpop.permute.xlu1 %1667  ;;  %v1458_v61 = vpop.permute.xlu0 %1457 }
 0x323   : > { %1591 = vrot.lane.b32.xlu0 %v1454_v30, %s7372_s26  ;;  %1708 = vperm.xlu1 %4770, %v1700_v45   ;;  %v1610_v9 = vpop.permute.xlu1 %1609  ;;  %v1640_v59 = vpop.permute.xlu0 %1639 }
 0x324   : > { %v1653_v32 = vsel %vm7424_vm10, %v1638_v21, %v1640_v59  ;;  %v1623_v22 = vsel %vm7426_vm4, %v1608_v58, %v1610_v9  ;;  %vm7435_vm4 = vmmov %vm7425_vm1 }
 0x327   : > { %1531 = vrot.lane.b32.xlu0 %v1454_v30, %s7380_s17  ;;  %v1550_v17 = vpop.permute.xlu1 %1549  ;;  %v1580_v25 = vpop.permute.xlu0 %1579 }
 0x328   : > { %v1593_v35 = vsel %vm846_vm5, %v1578_v18, %v1580_v25  ;;  %v1563_v21 = vsel %vm790_vm9, %v1548_v50, %v1550_v17 }
 0x32b   : > { %1471 = vrot.lane.b32.xlu0 %v1454_v30, %s7415_s28  ;;  %v1490_v7 = vpop.permute.xlu1 %1489  ;;  %v1520_v40 = vpop.permute.xlu0 %1519 }
 0x32c   : > { %v1533_v18 = vsel %vm751_vm12, %v1518_v14, %v1520_v40  ;;  %v1503_v50 = vsel %vm703_vm0, %v5776_v15, %v1490_v7 }
 0x32f   : > { %1703 = vperm.xlu0 %4769, %v1699_v47   ;;  %v5792_v19 = vpop.permute.xlu1 %1669  ;;  %v1460_v38 = vpop.permute.xlu0 %1459 }
 0x333   : > { %v1642_v51 = vpop.permute.xlu1 %1641 }
 0x334   : > { %v1654_v37 = vsel %vm7423_vm15, %v1640_v59, %v1642_v51  ;;  %vm7433_vm15 = vmmov %vm7424_vm10  ;;  %vm7434_vm10 = vcmask 506880  }
 0x335   : > { %1724 = vmatprep.subr.bf16.mxu0 %v1654_v37 }
 0x336   : > { %1725 = vmatpush1.bf16.msra.mxu0 %v1653_v32  ;;  %v1473_v32 = vsel %vm7428_vm7, %v1458_v61, %v1460_v38  ;;  %vm7437_vm7 = vmmov %vm7432_vm13 }
 0x337   : > { %v5796_v4 = vpop.permute.xlu1 %1581  ;;  %vm7438_vm14 = vmmov %vm7437_vm7 }
 0x338   : > { %v1594_v48 = vsel %vm846_vm5, %v1580_v25, %v5796_v4 }
 0x33b   : > { %v5798_v24 = vpop.permute.xlu1 %1521 }
 0x33c   : > { %v1534_v58 = vsel %vm751_vm12, %v1520_v40, %v5798_v24 }
 0x33f   : > { %v5800_v52 = vpop.permute.xlu1 %1461 }
 0x341   : > { %v5802_v56 = vpop.permute.xlu0 %1647 }
 0x345   : > { %v5804_v31 = vpop.permute.xlu0 %1617  ;;  %v1644_v20 = vpop.permute.xlu1 %1643 }
 0x349   : > { %v5806_v41 = vpop.permute.xlu0 %1587  ;;  %v5808_v60 = vpop.permute.xlu1 %1615 }
 0x34d   : > { %v5810_v57 = vpop.permute.xlu0 %1557  ;;  %v5812_v16 = vpop.permute.xlu1 %1585 }
 0x351   : > { %v1612_v42 = vpop.permute.xlu0 %1611  ;;  %v5814_v34 = vpop.permute.xlu1 %1555 }
 0x352   : > { %v1624_v13 = vsel %vm7425_vm1, %v1610_v9, %v1612_v42 }
 0x353   : > { %1726 = vmatprep.subr.bf16.mxu0 %v1624_v13 }
 0x354   : > { %1727 = vmatpush1.bf16.msra.mxu0 %v1623_v22  ;;  %v1655_v22 = vsel %vm7433_vm15, %v1642_v51, %v1644_v20  ;;  %vm7440_vm15 = vmmov %vm7425_vm1 }
 0x355   : > { %v5820_v23 = vpop.permute.xlu0 %1527  ;;  %1728 = vmatprep.subr.bf16.mxu0 %v1594_v48  ;;  %v5822_v28 = vpop.permute.xlu1 %1525 }
 0x358   : > { %1729 = vmatpush1.bf16.msra.mxu0 %v1593_v35 }
 0x359   : > { %v1552_v46 = vpop.permute.xlu0 %1551  ;;  %v5825_v1 = vpop.permute.xlu1 %1495 }
 0x35a   : > { %v1564_v30 = vsel %vm790_vm9, %v1550_v17, %v1552_v46  ;;  %v1474_v17 = vsel %vm7427_vm11, %v1460_v38, %v5800_v52  ;;  %vm7436_vm11 = vmmov %vm7434_vm10 }
 0x35b   : > { %1730 = vmatprep.subr.bf16.mxu0 %v1564_v30  ;;  %v1683_v51 = vsel %vm7436_vm11, %v5781_v36, %v5792_v19 }
 0x35c   : > { %1731 = vmatpush1.bf16.msra.mxu0 %v1563_v21 }
 0x35d   : > { %v5831_v45 = vpop.permute.xlu0 %1497  ;;  %1732 = vmatprep.subr.bf16.mxu0 %v1534_v58  ;;  %v5833_v9 = vpop.permute.xlu1 %1465 }
 0x360   : > { %1733 = vmatpush1.bf16.msra.mxu0 %v1533_v18 }
 0x361   : > { %v5836_v59 = vpop.permute.xlu0 %1491  ;;  %v5838_v47 = vpop.permute.xlu1 %1649 }
 0x362   : > { %v1504_v25 = vsel %vm703_vm0, %v1490_v7, %v5836_v59 }
 0x363   : > { %1734 = vmatprep.subr.bf16.mxu0 %v1504_v25 }
 0x364   : > { %1735 = vmatpush1.bf16.msra.mxu0 %v1503_v50 }
 0x365   : > { %v5846_v37 = vpop.permute.xlu0 %1671  ;;  %1736 = vmatprep.subr.bf16.mxu0 %v1474_v17  ;;  %v5848_v14 = vpop.permute.xlu1 %1619 }
 0x368   : > { %1737 = vmatpush1.bf16.msra.mxu0 %v1473_v32 }
 0x369   : > { %v1646_v40 = vpop.permute.xlu0 %1645  ;;  %1738 = vmatprep.subr.bf16.mxu0 %v5651_v62  ;;  %v5852_v13 = vpop.permute.xlu1 %1589  ;;  %v1684_v62 = vsel %vm7434_vm10, %v5792_v19, %v5846_v37  ;;  %vm7441_vm10 = vcmask 1039360  }
 0x36a   : > { %v1656_v7 = vsel %vm7432_vm13, %v1644_v20, %v1646_v40  ;;  %v1658_v20 = vsel %vm7437_vm7, %v5802_v56, %v5838_v47  ;;  %v1657_v19 = vsel %vm7438_vm14, %v1646_v40, %v5802_v56  ;;  %vm7439_vm13 = vmmov %vm7425_vm1  ;;  %v1627_v56 = vsel %vm7440_vm15, %v5808_v60, %v5804_v31 }
 0x36b   : > { %1767 = vmatprep.subr.bf16.mxu1 %v1656_v7  ;;  %v1628_v58 = vsel %vm7439_vm13, %v5804_v31, %v5848_v14  ;;  %v1598_v17 = vsel %vm846_vm5, %v5806_v41, %v5852_v13  ;;  %v1597_v31 = vsel %vm846_vm5, %v5812_v16, %v5806_v41  ;;  %v1567_v41 = vsel %vm790_vm9, %v5814_v34, %v5810_v57  ;;  %vm7444_vm7 = vmmov %vm7436_vm11 }
 0x36c   : > { %4637 = vmatpush1.bf16.msk.msra.mxu0 %vm5855_vm3, %v5637_v33  ;;  %1768 = vmatpush1.bf16.msra.mxu1 %v1655_v22  ;;  %v5878_v33 = vld [vmem:[%s7342_s4] ss:$8 sps:$4 sm:$0xff]   ;;  %vm7446_vm13 = vcmask 515072   ;;  %vm7447_vm15 = vmmov %vm7444_vm7 }
 0x36d   : > { %v1614_v61 = vpop.permute.xlu0 %1613  ;;  %1754 = vmatprep.subr.bf16.mxu0 %v1684_v62  ;;  %v5867_v38 = vpop.permute.xlu1 %1559 }
 0x36e   : > { %v1626_v48 = vsel %vm7425_vm1, %v1614_v61, %v5808_v60  ;;  %v1625_v35 = vsel %vm7435_vm4, %v1612_v42, %v1614_v61  ;;  %v1568_v60 = vsel %vm790_vm9, %v5810_v57, %v5867_v38  ;;  %vm7442_vm1 = vmmov %vm7441_vm10 }
 0x36f   : > { %1769 = vmatprep.subr.bf16.mxu1 %v1626_v48  ;;  %vm7443_vm4 = vmmov %vm7442_vm1 }
 0x370   : > { %1755 = vmatpush2.bf16.msra.mxu0 %v1683_v51  ;;  %1770 = vmatpush1.bf16.msra.mxu1 %v1625_v35  ;;  %vm7445_vm14 = vmmov %vm7442_vm1 }
 0x371   : > { %v1584_v30 = vpop.permute.xlu0 %1583  ;;  %1810 = vmatprep.subr.bf16.mxu0 %v1658_v20  ;;  %v5883_v21 = vpop.permute.xlu1 %1529 }
 0x372   : > { %v1596_v42 = vsel %vm846_vm5, %v1584_v30, %v5812_v16  ;;  %v1595_v36 = vsel %vm846_vm5, %v5796_v4, %v1584_v30  ;;  %v1538_v16 = vsel %vm751_vm12, %v5820_v23, %v5883_v21 }
 0x373   : > { %1757 = vmatmul.mubr.bf16.vlgmr.msra.gmra.mxu0 %v5878_v33  ;;  %1771 = vmatprep.subr.bf16.mxu1 %v1596_v42 }
 0x374   : > { %1772 = vmatpush1.bf16.msra.mxu1 %v1595_v36  ;;  %1811 = vmatpush1.bf16.msra.mxu0 %v1657_v19 }
 0x375   : > { %v1554_v18 = vpop.permute.xlu0 %1553  ;;  %1812 = vmatprep.subr.bf16.mxu0 %v1628_v58  ;;  %4640 = vmatprep.mubr.msk.bf16.mxu0 %vm1720_vm8, %v5729_v10  ;;  %v5903_v50 = vpop.permute.xlu1 %1499 }
 0x376   : > { %v1566_v4 = vsel %vm790_vm9, %v1554_v18, %v5814_v34  ;;  %v1565_v25 = vsel %vm790_vm9, %v1552_v46, %v1554_v18  ;;  %v1508_v34 = vsel %vm703_vm0, %v5831_v45, %v5903_v50 }
 0x377   : > { %1773 = vmatprep.subr.bf16.mxu1 %v1566_v4 }
 0x378   : > { %1774 = vmatpush1.bf16.msra.mxu1 %v1565_v25  ;;  %1813 = vmatpush1.bf16.msra.mxu0 %v1627_v56 }
 0x379   : > { %v1524_v32 = vpop.permute.xlu0 %1523  ;;  %1814 = vmatprep.subr.bf16.mxu0 %v1598_v17  ;;  %v5918_v22 = vpop.permute.xlu1 %1469 }
 0x37a   : > { %v1536_v40 = vsel %vm751_vm12, %v1524_v32, %v5822_v28  ;;  %v1535_v46 = vsel %vm751_vm12, %v5798_v24, %v1524_v32 }
 0x37b   : > { %1775 = vmatprep.subr.bf16.mxu1 %v1536_v40 }
 0x37c   : > { %1776 = vmatpush1.bf16.msra.mxu1 %v1535_v46  ;;  %1815 = vmatpush1.bf16.msra.mxu0 %v1597_v31 }
 0x37d   : > { %v1494_v7 = vpop.permute.xlu0 %1493  ;;  %1816 = vmatprep.subr.bf16.mxu0 %v1568_v60  ;;  %v1676_v57 = vpop.permute.xlu1 %1675 }
 0x37e   : > { %v1506_v62 = vsel %vm703_vm0, %v1494_v7, %v5825_v1  ;;  %v1505_v24 = vsel %vm703_vm0, %v5836_v59, %v1494_v7  ;;  %v1537_v59 = vsel %vm751_vm12, %v5822_v28, %v5820_v23 }
 0x37f   : > { %1777 = vmatprep.subr.bf16.mxu1 %v1506_v62 }
 0x380   : > { %1778 = vmatpush1.bf16.msra.mxu1 %v1505_v24  ;;  %1817 = vmatpush1.bf16.msra.mxu0 %v1567_v41 }
 0x381   : > { %v1464_v61 = vpop.permute.xlu0 %1463  ;;  %1818 = vmatprep.subr.bf16.mxu0 %v1538_v16  ;;  %v1678_v20 = vpop.permute.xlu1 %1677 }
 0x382   : > { %v1476_v48 = vsel %vm7441_vm10, %v1464_v61, %v5833_v9  ;;  %v1475_v35 = vsel %vm7442_vm1, %v5800_v52, %v1464_v61  ;;  %v1507_v52 = vsel %vm703_vm0, %v5825_v1, %v5831_v45  ;;  %vm7448_vm10 = vcmask 523264   ;;  %vm7449_vm1 = vmmov %vm7444_vm7 }
 0x383   : > { %1779 = vmatprep.subr.bf16.mxu1 %v1476_v48 }
 0x384   : > { %1780 = vmatpush1.bf16.msra.mxu1 %v1475_v35  ;;  %1819 = vmatpush1.bf16.msra.mxu0 %v1537_v59 }
 0x385   : > { %v1468_v51 = vpop.permute.xlu0 %1467  ;;  %1781 = vmatprep.subr.bf16.mxu1 %v5686_v3  ;;  %1820 = vmatprep.subr.bf16.mxu0 %v1508_v34  ;;  %v1622_v45 = vpop.permute.xlu1 %1621 }
 0x386   : > { %v1478_v23 = vsel %vm7443_vm4, %v1468_v51, %v5918_v22  ;;  %v1477_v3 = vsel %vm7445_vm14, %v5833_v9, %v1468_v51 }
 0x388   : > { %1782 = vmatpush1.bf16.msra.mxu1 %v5670_v27  ;;  %1821 = vmatpush1.bf16.msra.mxu0 %v1507_v52 }
 0x389   : > { %v1674_v28 = vpop.permute.xlu0 %1673  ;;  %1822 = vmatprep.subr.bf16.mxu0 %v1478_v23  ;;  %v1562_v19 = vpop.permute.xlu1 %1561 }
 0x38a   : > { %v1686_v30 = vsel %vm7436_vm11, %v1674_v28, %v1676_v57  ;;  %v1685_v42 = vsel %vm7444_vm7, %v5846_v37, %v1674_v28  ;;  %vm7450_vm11 = vmmov %vm7449_vm1  ;;  %vm7451_vm7 = vcmask 269312  }
 0x38b   : > { %1797 = vmatprep.subr.bf16.mxu1 %v1686_v30  ;;  %vm7454_vm14 = vmmov %vm7451_vm7 }
 0x38c   : > { %1798 = vmatpush2.bf16.msra.mxu1 %v1685_v42  ;;  %1823 = vmatpush1.bf16.msra.mxu0 %v1477_v3 }
 0x38d   : > { %v1652_v1 = vpop.permute.xlu0 %1651  ;;  %1824 = vmatprep.subr.bf16.mxu0 %v5681_v43  ;;  %1853 = vmatprep.subr.bf16.mxu1 %v7376_v54  ;;  %v1629_v43 = vsel %vm7448_vm10, %v5848_v14, %v1622_v45  ;;  %v1502_v18 = vpop.permute.xlu1 %1501  ;;  %vm7457_vm10 = vmmov %vm7451_vm7 }
 0x38e   : > { %v1659_v27 = vsel %vm7446_vm13, %v5838_v47, %v1652_v1  ;;  %v1687_v47 = vsel %vm7449_vm1, %v1676_v57, %v1678_v20  ;;  %vm7455_vm13 = vmmov %vm7451_vm7 }
 0x38f   : > { %1800 = vmatmul.mubr.bf16.vlgmr.msra.gmra.mxu1 %v5878_v33  ;;  %vm7458_vm1 = vmmov %vm7451_vm7 }
 0x390   : > { %1825 = vmatpush1.bf16.msra.mxu0 %v5693_v6  ;;  %1854 = vmatpush1.bf16.msra.mxu1 %v1659_v27 }
 0x391   : > { %v1680_v37 = vpop.permute.xlu0 %1679  ;;  %1855 = vmatprep.subr.bf16.mxu1 %v7376_v54  ;;  %4641 = vmatprep.mubr.msk.bf16.mxu1 %vm1720_vm8, %v5729_v10  ;;  %v1569_v10 = vsel %vm790_vm9, %v5867_v38, %v1562_v19  ;;  %v1682_v25 = vpop.permute.xlu1 %1681 }
 0x392   : > { %v1688_v9 = vsel %vm7447_vm15, %v1678_v20, %v1680_v37  ;;  %vm7456_vm15 = vmmov %vm7451_vm7 }
 0x393   : > { %1840 = vmatprep.subr.bf16.mxu0 %v1688_v9 }
 0x394   : > { %1841 = vmatpush2.bf16.msra.mxu0 %v1687_v47  ;;  %1856 = vmatpush1.bf16.msra.mxu1 %v1629_v43 }
 0x395   : > { %v1592_v36 = vpop.permute.xlu0 %1591  ;;  %1857 = vmatprep.subr.bf16.mxu1 %v7376_v54 }
 0x396   : > { %v1599_v6 = vsel %vm846_vm5, %v5852_v13, %v1592_v36  ;;  %v1509_v13 = vsel %vm703_vm0, %v5903_v50, %v1502_v18 }
 0x397   : > { %1843 = vmatmul.mubr.bf16.vlgmr.msra.gmra.mxu0 %v5878_v33 }
 0x398   : > { %1858 = vmatpush1.bf16.msra.mxu1 %v1599_v6 }
 0x399   : > { %1859 = vmatprep.subr.bf16.mxu1 %v7376_v54  ;;  %v1532_v14 = vpop.permute.xlu0 %1531 }
 0x39a   : > { %v1539_v58 = vsel %vm751_vm12, %v5883_v21, %v1532_v14  ;;  %v1689_v21 = vsel %vm7450_vm11, %v1680_v37, %v1682_v25  ;;  %vm7460_vm11 = vmmov %vm7458_vm1 }
 0x39c   : > { %1860 = vmatpush1.bf16.msra.mxu1 %v1569_v10 }
 0x39d   : > { %1861 = vmatprep.subr.bf16.mxu1 %v7376_v54  ;;  %v1472_v4 = vpop.permute.xlu0 %1471 }
 0x39e   : > { %v1479_v38 = vsel %vm7443_vm4, %v5918_v22, %v1472_v4  ;;  %v1709_v46 = vpop.permute.xlu1 %1708  ;;  %vm7459_vm4 = vmmov %vm7458_vm1 }
 0x3a0   : > { %1862 = vmatpush1.bf16.msra.mxu1 %v1539_v58 }
 0x3a1   : > { %1863 = vmatprep.subr.bf16.mxu1 %v7376_v54 }
 0x3a4   : > { %1864 = vmatpush1.bf16.msra.mxu1 %v1509_v13 }
 0x3a5   : > { %1865 = vmatprep.subr.bf16.mxu1 %v7376_v54 }
 0x3a8   : > { %1866 = vmatpush1.bf16.msra.mxu1 %v1479_v38 }
 0x3a9   : > { %1867 = vmatprep.subr.bf16.mxu1 %v7376_v54 }
 0x3aa   : > { %v5986_v56 = vpop.permute.xlu0 %1703 }
 0x3ac   : > { %1868 = vmatpush1.bf16.msra.mxu1 %v5720_v63 }
 0x3ad   : > { %1883 = vmatprep.subr.bf16.mxu1 %v7376_v54 }
 0x3b0   : > { %1884 = vmatpush2.bf16.msra.mxu1 %v1689_v21 }
 0x3b3   : > { %1886 = vmatmul.mubr.bf16.vlgmr.msra.gmra.mxu1 %v5878_v33 }
 0x433   : > { %v1758_v50 = vpop.f32.mrf.mxu0 }
 0x434   : > { %v1759_v17 = vadd.f32 %v1758_v50, %v5986_v56 }
 0x435   : > { %v1760_v32 = vpop.f32.mrf.mxu0 }
 0x436   : > { %v1761_v40 = vadd.f32 %v1760_v32, %v5986_v56  ;;  %v1894_v60 = vmax.f32 %v1759_v17, 0.0 }
 0x437   : > { %v1762_v31 = vpop.f32.mrf.mxu0 }
 0x438   : > { %v1763_v7 = vadd.f32 %v1762_v31, %v1709_v46  ;;  %v1895_v22 = vmax.f32 %v1761_v40, 0.0  ;;  %v1908_v41 = vmul.f32 %v1894_v60, %v5578_v29 }
 0x439   : > { %v1764_v63 = vpop.f32.mrf.mxu0 }
 0x43a   : > { %v1901_v62 = vmax.f32 %v1763_v7, 0.0  ;;  %v1765_v24 = vadd.f32 %v1764_v63, %v1709_v46  ;;  %v1909_v61 = vmul.f32 %v1895_v22, %v5583_v53 }
 0x43c   : > { %v1915_v33 = vmul.f32 %v1901_v62, %v5578_v29  ;;  %v1902_v16 = vmax.f32 %v1765_v24, 0.0 }
 0x43e   : > { %v1922_v48 = vpack.c.bf16 %v1915_v33, %v1908_v41  ;;  %v1916_v35 = vmul.f32 %v1902_v16, %v5583_v53 }
 0x440   : > { %v1923_v59 = vpack.c.bf16 %v1916_v35, %v1909_v61  ;;  %1936 = vrot.lane.b32.xlu0 %v1922_v48, %s4860_s21 }
 0x442   : > { %1938 = vrot.lane.b32.xlu1 %v1923_v59, %s4860_s21 }
 0x44f   : > { %v1801_v57 = vpop.f32.mrf.mxu1 }
 0x450   : > { %v1802_v34 = vadd.f32 %v1801_v57, %v5986_v56 }
 0x451   : > { %v1803_v51 = vpop.f32.mrf.mxu1 }
 0x452   : > { %v1804_v52 = vadd.f32 %v1803_v51, %v5986_v56  ;;  %v1896_v28 = vmax.f32 %v1802_v34, 0.0 }
 0x453   : > { %v1805_v23 = vpop.f32.mrf.mxu1 }
 0x454   : > { %v1806_v20 = vadd.f32 %v1805_v23, %v1709_v46  ;;  %v1897_v42 = vmax.f32 %v1804_v52, 0.0  ;;  %v1910_v45 = vmul.f32 %v1896_v28, %v5595_v0 }
 0x455   : > { %v1807_v30 = vpop.f32.mrf.mxu1 }
 0x456   : > { %v1903_v3 = vmax.f32 %v1806_v20, 0.0  ;;  %v1808_v1 = vadd.f32 %v1807_v30, %v1709_v46  ;;  %v1911_v36 = vmul.f32 %v1897_v42, %v5619_v26  ;;  %v6093_v42 = vld [vmem:[%s7344_s6] sm:$0xff] }
 0x457   : > { %v1844_v27 = vpop.f32.mrf.mxu0 }
 0x458   : > { %v1917_v37 = vmul.f32 %v1903_v3, %v5595_v0  ;;  %v1904_v9 = vmax.f32 %v1808_v1, 0.0  ;;  %v1845_v43 = vadd.f32 %v1844_v27, %v5986_v56  ;;  %v6097_v3 = vcombine.high %v6093_v42, %v6093_v42 }
 0x459   : > { %v1846_v47 = vpop.f32.mrf.mxu0 }
 0x45a   : > { %v1924_v6 = vpack.c.bf16 %v1917_v37, %v1910_v45  ;;  %v1918_v19 = vmul.f32 %v1904_v9, %v5619_v26  ;;  %v1847_v10 = vadd.f32 %v1846_v47, %v5986_v56  ;;  %v1898_v18 = vmax.f32 %v1845_v43, 0.0  ;;  %4646 = vmatprep.mubr.msk.bf16.mxu0 %vm1720_vm8, %v6097_v3  ;;  %4647 = vmatprep.mubr.msk.bf16.mxu1 %vm1720_vm8, %v6097_v3 }
 0x45b   : > { %v1848_v14 = vpop.f32.mrf.mxu0 }
 0x45c   : > { %v1925_v58 = vpack.c.bf16 %v1918_v19, %v1911_v36  ;;  %v1849_v13 = vadd.f32 %v1848_v14, %v1709_v46  ;;  %1940 = vrot.lane.b32.xlu0 %v1924_v6, %s4860_s21  ;;  %v1899_v38 = vmax.f32 %v1847_v10, 0.0  ;;  %v1912_v50 = vmul.f32 %v1898_v18, %v5607_v55  ;;  %v2210_v14 = vld [vmem:[%s7345_s7] sm:$0xff] }
 0x45d   : > { %v1850_v4 = vpop.f32.mrf.mxu0 }
 0x45e   : > { %v1905_v25 = vmax.f32 %v1849_v13, 0.0  ;;  %v1851_v21 = vadd.f32 %v1850_v4, %v1709_v46  ;;  %1942 = vrot.lane.b32.xlu1 %v1925_v58, %s4860_s21  ;;  %v1913_v40 = vmul.f32 %v1899_v38, %v5612_v11 }
 0x460   : > { %v1919_v17 = vmul.f32 %v1905_v25, %v5607_v55  ;;  %v1906_v32 = vmax.f32 %v1851_v21, 0.0 }
 0x462   : > { %v1926_v31 = vpack.c.bf16 %v1919_v17, %v1912_v50  ;;  %v1920_v60 = vmul.f32 %v1906_v32, %v5612_v11 }
 0x464   : > { %v1927_v7 = vpack.c.bf16 %v1920_v60, %v1913_v40  ;;  %1944 = vrot.lane.b32.xlu0 %v1926_v31, %s4860_s21 }
 0x466   : > { %1946 = vrot.lane.b32.xlu1 %v1927_v7, %s4860_s21 }
 0x473   : > { %v1887_v63 = vpop.f32.mrf.mxu1 }
 0x474   : > { %v1888_v22 = vadd.f32 %v1887_v63, %v5986_v56 }
 0x475   : > { %v1889_v62 = vpop.f32.mrf.mxu1 }
 0x476   : > { %v1900_v41 = vmax.f32 %v1888_v22, 0.0 }
 0x477   : > { %v1890_v24 = vpop.f32.mrf.mxu1 }
 0x478   : > { %v1891_v33 = vadd.f32 %v1890_v24, %v1709_v46  ;;  %v1914_v48 = vmul.f32 %v1900_v41, %v5628_v2 }
 0x479   : > { %v1892_v16 = vpop.f32.mrf.mxu1 }
 0x47a   : > { %v1907_v61 = vmax.f32 %v1891_v33, 0.0 }
 0x47c   : > { %v1921_v35 = vmul.f32 %v1907_v61, %v5628_v2 }
 0x47e   : > { %v1928_v59 = vpack.c.bf16 %v1921_v35, %v1914_v48 }
 0x480   : > { %1948 = vrot.lane.b32.xlu0 %v1928_v59, %s4860_s21 }
 0x4b2   : > { %v6016_v57 = vpop.permute.xlu0 %1936 }
 0x4b3   : > { %v1963_v34 = vsel %vm7451_vm7, 0, %v6016_v57  ;;  %vm7461_vm7 = vcmask 515072  }
 0x4b4   : > { %2119 = vrot.lane.b32.xlu0 %v1963_v34, %s4861_s22  ;;  %2149 = vrot.lane.b32.xlu1 %v1963_v34, %s4866_s27  ;;  %v1939_v56 = vpop.permute.xlu1 %1938 }
 0x4b5   : > { %v6029_v46 = vsel %vm7454_vm14, %v6016_v57, %v1939_v56  ;;  %vm7462_vm14 = vmmov %vm7461_vm7 }
 0x4b8   : > { %2059 = vrot.lane.b32.xlu0 %v1963_v34, %s7452_s18  ;;  %2089 = vrot.lane.b32.xlu1 %v1963_v34, %s7372_s26 }
 0x4bc   : > { %1999 = vrot.lane.b32.xlu0 %v1963_v34, %s7453_s19  ;;  %2029 = vrot.lane.b32.xlu1 %v1963_v34, %s7380_s17 }
 0x4c0   : > { %1969 = vrot.lane.b32.xlu1 %v1963_v34, %s7415_s28 }
 0x4c4   : > { %2151 = vrot.lane.b32.xlu1 %v6029_v46, %s4866_s27 }
 0x4ce   : > { %v1941_v51 = vpop.permute.xlu0 %1940 }
 0x4cf   : > { %v6034_v52 = vsel %vm7455_vm13, %v1939_v56, %v1941_v51  ;;  %vm7463_vm13 = vcmask 523264  }
 0x4d0   : > { %2123 = vrot.lane.b32.xlu1 %v6034_v52, %s4861_s22  ;;  %2153 = vrot.lane.b32.xlu0 %v6034_v52, %s4866_s27  ;;  %v1943_v23 = vpop.permute.xlu1 %1942 }
 0x4d1   : > { %v6061_v28 = vsel %vm7456_vm15, %v1941_v51, %v1943_v23  ;;  %vm7464_vm15 = vmmov %vm7463_vm13 }
 0x4d4   : > { %2091 = vrot.lane.b32.xlu1 %v6029_v46, %s7372_s26  ;;  %2121 = vrot.lane.b32.xlu0 %v6029_v46, %s4861_s22 }
 0x4d6   : > { %v1945_v20 = vpop.permute.xlu0 %1944 }
 0x4d7   : > { %v6080_v30 = vsel %vm7457_vm10, %v1943_v23, %v1945_v20  ;;  %vm7465_vm10 = vcmask 1039360  }
 0x4d8   : > { %2063 = vrot.lane.b32.xlu1 %v6034_v52, %s7452_s18  ;;  %2093 = vrot.lane.b32.xlu0 %v6034_v52, %s7372_s26  ;;  %v1947_v1 = vpop.permute.xlu1 %1946 }
 0x4d9   : > { %v6115_v27 = vsel %vm7458_vm1, %v1945_v20, %v1947_v1  ;;  %vm7466_vm1 = vmmov %vm7465_vm10 }
 0x4dc   : > { %2031 = vrot.lane.b32.xlu1 %v6029_v46, %s7380_s17  ;;  %2061 = vrot.lane.b32.xlu0 %v6029_v46, %s7452_s18 }
 0x4e0   : > { %2003 = vrot.lane.b32.xlu1 %v6034_v52, %s7453_s19  ;;  %2033 = vrot.lane.b32.xlu0 %v6034_v52, %s7380_s17 }
 0x4e4   : > { %1971 = vrot.lane.b32.xlu1 %v6029_v46, %s7415_s28  ;;  %2001 = vrot.lane.b32.xlu0 %v6029_v46, %s7453_s19 }
 0x4e8   : > { %2155 = vrot.lane.b32.xlu1 %v6061_v28, %s4866_s27  ;;  %1973 = vrot.lane.b32.xlu0 %v6034_v52, %s7415_s28 }
 0x4ec   : > { %2095 = vrot.lane.b32.xlu1 %v6061_v28, %s7372_s26  ;;  %2125 = vrot.lane.b32.xlu0 %v6061_v28, %s4861_s22 }
 0x4f0   : > { %2035 = vrot.lane.b32.xlu1 %v6061_v28, %s7380_s17  ;;  %2065 = vrot.lane.b32.xlu0 %v6061_v28, %s7452_s18 }
 0x4f2   : > { %v1949_v45 = vpop.permute.xlu0 %1948 }
 0x4f3   : > { %v6126_v37 = vsel %vm7459_vm4, %v1947_v1, %v1949_v45  ;;  %v1966_v9 = vsel %vm7460_vm11, %v1949_v45, 0  ;;  %vm7467_vm4 = vmmov %vm7461_vm7 }
 0x4f4   : > { %2183 = vrot.lane.b32.xlu1 %v6034_v52, %s7414_s23  ;;  %2005 = vrot.lane.b32.xlu0 %v6061_v28, %s7453_s19  ;;  %vm7468_vm11 = vmmov %vm7467_vm4 }
 0x4f8   : > { %1975 = vrot.lane.b32.xlu0 %v6061_v28, %s7415_s28  ;;  %2127 = vrot.lane.b32.xlu1 %v6080_v30, %s4861_s22 }
 0x4fc   : > { %2185 = vrot.lane.b32.xlu1 %v6061_v28, %s7414_s23  ;;  %2157 = vrot.lane.b32.xlu0 %v6080_v30, %s4866_s27 }
 0x500   : > { %2067 = vrot.lane.b32.xlu1 %v6080_v30, %s7452_s18  ;;  %2181 = vrot.lane.b32.xlu0 %v6029_v46, %s7414_s23 }
 0x504   : > { %2007 = vrot.lane.b32.xlu1 %v6080_v30, %s7453_s19  ;;  %2097 = vrot.lane.b32.xlu0 %v6080_v30, %s7372_s26 }
 0x508   : > { %1977 = vrot.lane.b32.xlu1 %v6080_v30, %s7415_s28  ;;  %2179 = vrot.lane.b32.xlu0 %v1963_v34, %s7414_s23 }
 0x50c   : > { %2159 = vrot.lane.b32.xlu1 %v6115_v27, %s4866_s27  ;;  %2037 = vrot.lane.b32.xlu0 %v6080_v30, %s7380_s17 }
 0x510   : > { %2129 = vrot.lane.b32.xlu1 %v6115_v27, %s4861_s22  ;;  %2187 = vrot.lane.b32.xlu0 %v6080_v30, %s7414_s23 }
 0x514   : > { %2163 = vrot.lane.b32.xlu1 %v1966_v9, %s4866_s27  ;;  %2161 = vrot.lane.b32.xlu0 %v6126_v37, %s4866_s27 }
 0x518   : > { %2101 = vrot.lane.b32.xlu1 %v6126_v37, %s7372_s26  ;;  %2131 = vrot.lane.b32.xlu0 %v6126_v37, %s4861_s22 }
 0x51c   : > { %2069 = vrot.lane.b32.xlu1 %v6115_v27, %s7452_s18  ;;  %2099 = vrot.lane.b32.xlu0 %v6115_v27, %s7372_s26 }
 0x520   : > { %2103 = vrot.lane.b32.xlu1 %v1966_v9, %s7372_s26  ;;  %2133 = vrot.lane.b32.xlu0 %v1966_v9, %s4861_s22 }
 0x524   : > { %2041 = vrot.lane.b32.xlu1 %v6126_v37, %s7380_s17  ;;  %2071 = vrot.lane.b32.xlu0 %v6126_v37, %s7452_s18 }
 0x526   : > { %v2150_v43 = vpop.permute.xlu1 %2149  ;;  %v2120_v36 = vpop.permute.xlu0 %2119 }
 0x528   : > { %2009 = vrot.lane.b32.xlu1 %v6115_v27, %s7453_s19  ;;  %2039 = vrot.lane.b32.xlu0 %v6115_v27, %s7380_s17 }
 0x52a   : > { %v2090_v47 = vpop.permute.xlu1 %2089  ;;  %v2060_v19 = vpop.permute.xlu0 %2059 }
 0x52c   : > { %2043 = vrot.lane.b32.xlu1 %v1966_v9, %s7380_s17  ;;  %2073 = vrot.lane.b32.xlu0 %v1966_v9, %s7452_s18 }
 0x52e   : > { %v2030_v6 = vpop.permute.xlu1 %2029  ;;  %v2000_v58 = vpop.permute.xlu0 %1999 }
 0x530   : > { %1981 = vrot.lane.b32.xlu1 %v6126_v37, %s7415_s28  ;;  %2011 = vrot.lane.b32.xlu0 %v6126_v37, %s7453_s19 }
 0x532   : > { %v1970_v10 = vpop.permute.xlu1 %1969 }
 0x534   : > { %1983 = vrot.lane.b32.xlu1 %v1966_v9, %s7415_s28  ;;  %1979 = vrot.lane.b32.xlu0 %v6115_v27, %s7415_s28 }
 0x536   : > { %v2152_v18 = vpop.permute.xlu1 %2151 }
 0x537   : > { %v2165_v25 = vsel %vm7462_vm14, %v2150_v43, %v2152_v18  ;;  %vm7470_vm14 = vcmask 506880  }
 0x538   : > { %2191 = vrot.lane.b32.xlu1 %v6126_v37, %s7414_s23  ;;  %2013 = vrot.lane.b32.xlu0 %v1966_v9, %s7453_s19 }
 0x53c   : > { %2213 = vperm.xlu1 %4770, %v2210_v14   ;;  %2189 = vrot.lane.b32.xlu0 %v6115_v27, %s7414_s23 }
 0x540   : > { %2193 = vrot.lane.b32.xlu0 %v1966_v9, %s7414_s23 }
 0x542   : > { %v6168_v13 = vpop.permute.xlu1 %2123  ;;  %v2154_v4 = vpop.permute.xlu0 %2153 }
 0x543   : > { %v2166_v38 = vsel %vm7461_vm7, %v2152_v18, %v2154_v4  ;;  %vm7469_vm7 = vmmov %vm7463_vm13 }
 0x544   : > { %2225 = vmatprep.subr.bf16.mxu0 %v2166_v38 }
 0x545   : > { %2226 = vmatpush1.bf16.msra.mxu0 %v2165_v25 }
 0x546   : > { %v2092_v21 = vpop.permute.xlu1 %2091  ;;  %v2122_v50 = vpop.permute.xlu0 %2121 }
 0x547   : > { %v2136_v17 = vsel %vm7463_vm13, %v2122_v50, %v6168_v13  ;;  %v2135_v32 = vsel %vm7464_vm15, %v2120_v36, %v2122_v50  ;;  %v2105_v7 = vsel %vm846_vm5, %v2090_v47, %v2092_v21  ;;  %vm7471_vm13 = vmmov %vm7469_vm7 }
 0x548   : > { %2227 = vmatprep.subr.bf16.mxu0 %v2136_v17  ;;  %vm7472_vm15 = vmmov %vm7470_vm14 }
 0x549   : > { %2228 = vmatpush1.bf16.msra.mxu0 %v2135_v32 }
 0x54a   : > { %v6175_v40 = vpop.permute.xlu1 %2063  ;;  %v2094_v31 = vpop.permute.xlu0 %2093 }
 0x54b   : > { %v2106_v60 = vsel %vm846_vm5, %v2092_v21, %v2094_v31 }
 0x54c   : > { %2229 = vmatprep.subr.bf16.mxu0 %v2106_v60 }
 0x54d   : > { %2230 = vmatpush1.bf16.msra.mxu0 %v2105_v7 }
 0x54e   : > { %v2032_v63 = vpop.permute.xlu1 %2031  ;;  %v2062_v22 = vpop.permute.xlu0 %2061 }
 0x54f   : > { %v2076_v62 = vsel %vm790_vm9, %v2062_v22, %v6175_v40  ;;  %v2075_v24 = vsel %vm790_vm9, %v2060_v19, %v2062_v22  ;;  %v2045_v61 = vsel %vm751_vm12, %v2030_v6, %v2032_v63 }
 0x550   : > { %2231 = vmatprep.subr.bf16.mxu0 %v2076_v62 }
 0x551   : > { %2232 = vmatpush1.bf16.msra.mxu0 %v2075_v24 }
 0x552   : > { %v6182_v41 = vpop.permute.xlu1 %2003  ;;  %v2034_v33 = vpop.permute.xlu0 %2033 }
 0x553   : > { %v2046_v16 = vsel %vm751_vm12, %v2032_v63, %v2034_v33 }
 0x554   : > { %2233 = vmatprep.subr.bf16.mxu0 %v2046_v16 }
 0x555   : > { %2234 = vmatpush1.bf16.msra.mxu0 %v2045_v61 }
 0x556   : > { %v1972_v48 = vpop.permute.xlu1 %1971  ;;  %v2002_v35 = vpop.permute.xlu0 %2001 }
 0x557   : > { %v2016_v59 = vsel %vm703_vm0, %v2002_v35, %v6182_v41  ;;  %v2015_v34 = vsel %vm703_vm0, %v2000_v58, %v2002_v35  ;;  %v1985_v20 = vsel %vm7466_vm1, %v1970_v10, %v1972_v48 }
 0x558   : > { %2235 = vmatprep.subr.bf16.mxu0 %v2016_v59 }
 0x559   : > { %2236 = vmatpush1.bf16.msra.mxu0 %v2015_v34 }
 0x55a   : > { %v2156_v56 = vpop.permute.xlu1 %2155  ;;  %v6189_v51 = vpop.permute.xlu0 %1973 }
 0x55b   : > { %v1986_v23 = vsel %vm7465_vm10, %v1972_v48, %v6189_v51  ;;  %vm7473_vm10 = vmmov %vm7466_vm1 }
 0x55c   : > { %2237 = vmatprep.subr.bf16.mxu0 %v1986_v23  ;;  %vm7474_vm1 = vmmov %vm7467_vm4 }
 0x55d   : > { %2238 = vmatpush1.bf16.msra.mxu0 %v1985_v20 }
 0x55e   : > { %v2096_v1 = vpop.permute.xlu1 %2095  ;;  %2239 = vmatprep.subr.bf16.mxu0 %v6029_v46  ;;  %v2126_v45 = vpop.permute.xlu0 %2125  ;;  %v2167_v46 = vsel %vm7468_vm11, %v2154_v4, %v2156_v56  ;;  %vm7476_vm11 = vmmov %vm7474_vm1 }
 0x55f   : > { %v2137_v21 = vsel %vm7471_vm13, %v6168_v13, %v2126_v45  ;;  %v2107_v32 = vsel %vm846_vm5, %v2094_v31, %v2096_v1  ;;  %v6222_v13 = vcombine.low %v6093_v42, %v6093_v42  ;;  %vm7478_vm13 = vmmov %vm7472_vm15 }
 0x561   : > { %4645 = vmatpush1.bf16.msk.msra.mxu0 %vm5855_vm3, %v6016_v57 }
 0x562   : > { %v2036_v9 = vpop.permute.xlu1 %2035  ;;  %v2066_v43 = vpop.permute.xlu0 %2065 }
 0x563   : > { %v2077_v62 = vsel %vm790_vm9, %v6175_v40, %v2066_v43  ;;  %v2047_v61 = vsel %vm751_vm12, %v2034_v33, %v2036_v9 }
 0x566   : > { %v6198_v47 = vpop.permute.xlu1 %2183  ;;  %v2006_v36 = vpop.permute.xlu0 %2005 }
 0x567   : > { %v2017_v35 = vsel %vm703_vm0, %v6182_v41, %v2006_v36 }
 0x56a   : > { %v2128_v6 = vpop.permute.xlu1 %2127  ;;  %v1976_v19 = vpop.permute.xlu0 %1975 }
 0x56b   : > { %v2138_v18 = vsel %vm7469_vm7, %v2126_v45, %v2128_v6 }
 0x56e   : > { %v6200_v14 = vpop.permute.xlu1 %2185  ;;  %v2158_v58 = vpop.permute.xlu0 %2157 }
 0x56f   : > { %v2168_v10 = vsel %vm7467_vm4, %v2156_v56, %v2158_v58  ;;  %vm7475_vm4 = vmmov %vm7473_vm10 }
 0x570   : > { %2266 = vmatprep.subr.bf16.mxu1 %v2168_v10  ;;  %v1987_v23 = vsel %vm7475_vm4, %v6189_v51, %v1976_v19 }
 0x571   : > { %2267 = vmatpush1.bf16.msra.mxu1 %v2167_v46 }
 0x572   : > { %v6205_v38 = vpop.permute.xlu1 %2067  ;;  %2268 = vmatprep.subr.bf16.mxu1 %v2138_v18  ;;  %v2182_v57 = vpop.permute.xlu0 %2181 }
 0x573   : > { %v2196_v25 = vsel %vm7470_vm14, %v2182_v57, %v6198_v47  ;;  %v2078_v60 = vsel %vm790_vm9, %v2066_v43, %v6205_v38  ;;  %vm7477_vm14 = vmmov %vm7469_vm7 }
 0x574   : > { %2255 = vmatprep.subr.bf16.mxu0 %v2196_v25 }
 0x575   : > { %2269 = vmatpush1.bf16.msra.mxu1 %v2137_v21 }
 0x576   : > { %v6211_v50 = vpop.permute.xlu1 %2007  ;;  %v2098_v17 = vpop.permute.xlu0 %2097 }
 0x577   : > { %v2108_v4 = vsel %vm846_vm5, %v2096_v1, %v2098_v17  ;;  %v2018_v42 = vsel %vm703_vm0, %v2006_v36, %v6211_v50 }
 0x578   : > { %2270 = vmatprep.subr.bf16.mxu1 %v2108_v4 }
 0x579   : > { %2271 = vmatpush1.bf16.msra.mxu1 %v2107_v32 }
 0x57a   : > { %v6217_v7 = vpop.permute.xlu1 %1977  ;;  %2272 = vmatprep.subr.bf16.mxu1 %v2078_v60  ;;  %v2180_v63 = vpop.permute.xlu0 %2179 }
 0x57b   : > { %v2195_v22 = vsel %vm7472_vm15, %v2180_v63, %v2182_v57  ;;  %v1988_v59 = vsel %vm7473_vm10, %v1976_v19, %v6217_v7  ;;  %vm7479_vm15 = vmmov %vm7478_vm13 }
 0x57c   : > { %2256 = vmatpush2.bf16.msra.mxu0 %v2195_v22  ;;  %vm7480_vm10 = vmmov %vm7474_vm1 }
 0x57d   : > { %2273 = vmatpush1.bf16.msra.mxu1 %v2077_v62 }
 0x57e   : > { %v2160_v31 = vpop.permute.xlu1 %2159  ;;  %v2038_v24 = vpop.permute.xlu0 %2037 }
 0x57f   : > { %2258 = vmatmul.mubr.bf16.vlgmr.msra.gmra.mxu0 %v6222_v13  ;;  %v2048_v16 = vsel %vm751_vm12, %v2036_v9, %v2038_v24  ;;  %v2169_v20 = vsel %vm7476_vm11, %v2158_v58, %v2160_v31  ;;  %v2197_v58 = vsel %vm7479_vm15, %v6198_v47, %v6200_v14  ;;  %vm7482_vm11 = vmmov %vm7475_vm4 }
 0x580   : > { %2274 = vmatprep.subr.bf16.mxu1 %v2048_v16  ;;  %4648 = vmatprep.mubr.msk.bf16.mxu0 %vm1720_vm8, %v6097_v3  ;;  %vm7485_vm15 = vmmov %vm7478_vm13 }
 0x581   : > { %2275 = vmatpush1.bf16.msra.mxu1 %v2047_v61 }
 0x582   : > { %v2130_v48 = vpop.permute.xlu1 %2129  ;;  %2276 = vmatprep.subr.bf16.mxu1 %v2018_v42  ;;  %v6233_v40 = vpop.permute.xlu0 %2187 }
 0x583   : > { %v2139_v9 = vsel %vm7477_vm14, %v2128_v6, %v2130_v48  ;;  %v2198_v51 = vsel %vm7478_vm13, %v6200_v14, %v6233_v40  ;;  %vm7484_vm14 = vmmov %vm7478_vm13 }
 0x585   : > { %2277 = vmatpush1.bf16.msra.mxu1 %v2017_v35 }
 0x586   : > { %v2164_v34 = vpop.permute.xlu1 %2163  ;;  %2278 = vmatprep.subr.bf16.mxu1 %v1988_v59  ;;  %v2162_v33 = vpop.permute.xlu0 %2161 }
 0x587   : > { %v2170_v56 = vsel %vm7474_vm1, %v2160_v31, %v2162_v33  ;;  %v2171_v10 = vsel %vm7480_vm10, %v2162_v33, %v2164_v34  ;;  %vm7481_vm1 = vmmov %vm7469_vm7 }
 0x588   : > { %2307 = vmatprep.subr.bf16.mxu0 %v2170_v56 }
 0x589   : > { %2279 = vmatpush1.bf16.msra.mxu1 %v1987_v23  ;;  %2308 = vmatpush1.bf16.msra.mxu0 %v2169_v20 }
 0x58a   : > { %v2102_v1 = vpop.permute.xlu1 %2101  ;;  %2280 = vmatprep.subr.bf16.mxu1 %v6061_v28  ;;  %v2132_v41 = vpop.permute.xlu0 %2131 }
 0x58b   : > { %v2140_v45 = vsel %vm7469_vm7, %v2130_v48, %v2132_v41  ;;  %vm7483_vm7 = vmmov %vm7475_vm4 }
 0x58c   : > { %2309 = vmatprep.subr.bf16.mxu0 %v2140_v45 }
 0x58d   : > { %2281 = vmatpush1.bf16.msra.mxu1 %v6034_v52  ;;  %2310 = vmatpush1.bf16.msra.mxu0 %v2139_v9 }
 0x58e   : > { %v2070_v43 = vpop.permute.xlu1 %2069  ;;  %2296 = vmatprep.subr.bf16.mxu1 %v2198_v51  ;;  %v2100_v36 = vpop.permute.xlu0 %2099 }
 0x58f   : > { %v2110_v19 = vsel %vm846_vm5, %v2100_v36, %v2102_v1  ;;  %v2109_v28 = vsel %vm846_vm5, %v2098_v17, %v2100_v36  ;;  %v2079_v57 = vsel %vm790_vm9, %v6205_v38, %v2070_v43 }
 0x590   : > { %2311 = vmatprep.subr.bf16.mxu0 %v2110_v19 }
 0x591   : > { %2297 = vmatpush2.bf16.msra.mxu1 %v2197_v58  ;;  %2312 = vmatpush1.bf16.msra.mxu0 %v2109_v28 }
 0x592   : > { %v2104_v52 = vpop.permute.xlu1 %2103  ;;  %v2134_v6 = vpop.permute.xlu0 %2133  ;;  %2348 = vmatprep.subr.bf16.mxu1 %v7376_v54 }
 0x593   : > { %v2141_v14 = vsel %vm7481_vm1, %v2132_v41, %v2134_v6  ;;  %v2111_v4 = vsel %vm846_vm5, %v2102_v1, %v2104_v52  ;;  %vm7379_vm1 = vcmask 64512  }
 0x594   : > { %2299 = vmatmul.mubr.bf16.vlgmr.msra.gmra.mxu1 %v6222_v13 }
 0x595   : > { %2349 = vmatpush1.bf16.msra.mxu1 %v2171_v10  ;;  %4649 = vmatprep.mubr.msk.bf16.mxu1 %vm1720_vm8, %v6097_v3 }
 0x596   : > { %v2042_v46 = vpop.permute.xlu1 %2041  ;;  %v2072_v18 = vpop.permute.xlu0 %2071  ;;  %2350 = vmatprep.subr.bf16.mxu1 %v7376_v54 }
 0x597   : > { %v2080_v47 = vsel %vm790_vm9, %v2070_v43, %v2072_v18 }
 0x598   : > { %2313 = vmatprep.subr.bf16.mxu0 %v2080_v47 }
 0x599   : > { %2314 = vmatpush1.bf16.msra.mxu0 %v2079_v57  ;;  %2351 = vmatpush1.bf16.msra.mxu1 %v2141_v14 }
 0x59a   : > { %v2010_v25 = vpop.permute.xlu1 %2009  ;;  %v2040_v21 = vpop.permute.xlu0 %2039  ;;  %2352 = vmatprep.subr.bf16.mxu1 %v7376_v54 }
 0x59b   : > { %v2050_v3 = vsel %vm751_vm12, %v2040_v21, %v2042_v46  ;;  %v2049_v17 = vsel %vm751_vm12, %v2038_v24, %v2040_v21  ;;  %v2019_v24 = vsel %vm703_vm0, %v6211_v50, %v2010_v25 }
 0x59c   : > { %2315 = vmatprep.subr.bf16.mxu0 %v2050_v3 }
 0x59d   : > { %2316 = vmatpush1.bf16.msra.mxu0 %v2049_v17  ;;  %2353 = vmatpush1.bf16.msra.mxu1 %v2111_v4 }
 0x59e   : > { %v2044_v32 = vpop.permute.xlu1 %2043  ;;  %v2074_v60 = vpop.permute.xlu0 %2073  ;;  %2354 = vmatprep.subr.bf16.mxu1 %v7376_v54 }
 0x59f   : > { %v2081_v38 = vsel %vm790_vm9, %v2072_v18, %v2074_v60  ;;  %v2051_v31 = vsel %vm751_vm12, %v2042_v46, %v2044_v32 }
 0x5a1   : > { %2355 = vmatpush1.bf16.msra.mxu1 %v2081_v38 }
 0x5a2   : > { %v1982_v63 = vpop.permute.xlu1 %1981  ;;  %v2012_v22 = vpop.permute.xlu0 %2011  ;;  %2356 = vmatprep.subr.bf16.mxu1 %v7376_v54 }
 0x5a3   : > { %v2020_v62 = vsel %vm703_vm0, %v2010_v25, %v2012_v22 }
 0x5a4   : > { %2317 = vmatprep.subr.bf16.mxu0 %v2020_v62 }
 0x5a5   : > { %2318 = vmatpush1.bf16.msra.mxu0 %v2019_v24  ;;  %2357 = vmatpush1.bf16.msra.mxu1 %v2051_v31 }
 0x5a6   : > { %v1980_v16 = vpop.permute.xlu0 %1979  ;;  %2358 = vmatprep.subr.bf16.mxu1 %v7376_v54  ;;  %v1984_v48 = vpop.permute.xlu1 %1983 }
 0x5a7   : > { %v1990_v61 = vsel %vm7475_vm4, %v1980_v16, %v1982_v63  ;;  %v1989_v42 = vsel %vm7482_vm11, %v6217_v7, %v1980_v16  ;;  %v1991_v33 = vsel %vm7483_vm7, %v1982_v63, %v1984_v48  ;;  %vm7486_vm4 = vmmov 0  }
 0x5a8   : > { %2319 = vmatprep.subr.bf16.mxu0 %v1990_v61  ;;  %vm7487_vm11 = vcmask 269312  }
 0x5a9   : > { %2320 = vmatpush1.bf16.msra.mxu0 %v1989_v42  ;;  %vm7488_vm7 = vmmov %vm7487_vm11 }
 0x5aa   : > { %2321 = vmatprep.subr.bf16.mxu0 %v6115_v27  ;;  %v2014_v35 = vpop.permute.xlu0 %2013  ;;  %v2192_v50 = vpop.permute.xlu1 %2191 }
 0x5ab   : > { %v2021_v59 = vsel %vm703_vm0, %v2012_v22, %v2014_v35 }
 0x5ac   : > { %2359 = vmatpush1.bf16.msra.mxu1 %v2021_v59 }
 0x5ad   : > { %2322 = vmatpush1.bf16.msra.mxu0 %v6080_v30  ;;  %2360 = vmatprep.subr.bf16.mxu1 %v7376_v54 }
 0x5ae   : > { %v2190_v34 = vpop.permute.xlu0 %2189 }
 0x5af   : > { %v2200_v56 = vsel %vm7484_vm14, %v2190_v34, %v2192_v50  ;;  %v2199_v7 = vsel %vm7478_vm13, %v6233_v40, %v2190_v34  ;;  %v2433_v40 = vand.u32 127, %v1361_v39  ;;  %vm7489_vm14 = vmmov %vm7488_vm7 }
 0x5b0   : > { %2337 = vmatprep.subr.bf16.mxu0 %v2200_v56  ;;  %2361 = vmatpush1.bf16.msra.mxu1 %v1991_v33  ;;  %vm7490_vm13 = vmmov %vm7488_vm7 }
 0x5b1   : > { %2338 = vmatpush2.bf16.msra.mxu0 %v2199_v7  ;;  %2362 = vmatprep.subr.bf16.mxu1 %v7376_v54  ;;  %vm2434_vm10 = vcmp.lt.s32.totalorder %v2433_v40, %v5563_v49 }
 0x5b2   : > { %v2194_v27 = vpop.permute.xlu0 %2193  ;;  %v6301_v36 = vsel %vm2434_vm10, 1.0, %v7374_v44  ;;  %vm7492_vm10 = vmmov %vm7488_vm7 }
 0x5b3   : > { %v2201_v30 = vsel %vm7485_vm15, %v2192_v50, %v2194_v27  ;;  %vm7491_vm15 = vmmov %vm7488_vm7 }
 0x5b4   : > { %2340 = vmatmul.mubr.bf16.vlgmr.msra.gmra.mxu0 %v6222_v13  ;;  %2363 = vmatpush1.bf16.msra.mxu1 %v6126_v37 }
 0x5b5   : > { %2378 = vmatprep.subr.bf16.mxu1 %v7376_v54  ;;  %2504 = vmatprep.mubr.f32.mxu0 %v7374_v44 }
 0x5b7   : > { %v2214_v20 = vpop.permute.xlu1 %2213 }
 0x5b8   : > { %2379 = vmatpush2.bf16.msra.mxu1 %v2201_v30 }
 0x5bb   : > { %2381 = vmatmul.mubr.bf16.vlgmr.msra.gmra.mxu1 %v6222_v13 }
 0x5bc   : > { %2575 = vmatprep.mubr.f32.mxu1 %v7374_v44 }
 0x63f   : > { %v2259_v23 = vpop.f32.mrf.mxu0 }
 0x640   : > { %v2260_v1 = vadd.f32 %v2259_v23, %v2214_v20 }
 0x641   : > { %v2261_v41 = vpop.f32.mrf.mxu0 }
 0x642   : > { %v2262_v45 = vadd.f32 %v2261_v41, %v2214_v20  ;;  %v2388_v51 = vmax.f32 %v2260_v1, 0.0 }
 0x643   : > { %v2263_v37 = vpop.f32.mrf.mxu0 }
 0x644   : > { %v6298_v9 = vmax.f32 %v2262_v45, 0.0  ;;  %v2395_v63 = vsub.f32 0.0, %v2388_v51 }
 0x645   : > { %v2264_v43 = vpop.f32.mrf.mxu0 }
 0x646   : > { %2470 = vmatprep.subr.mxu0 %v6298_v9  ;;  %v2396_v22 = vsub.f32 0.0, %v6298_v9  ;;  %v2402_v62 = vmul.f32 0.125, %v2395_v63  ;;  %v4832_v63 = vld [vmem:[%s4972_s20] sm:$0x77] }
 0x647   : > { %2471 = vmatpush1.msra.mxu0 %v2388_v51 }
 0x648   : > { %4650 = vmatmul.mubr.msk.f32.vlgmr.msra.gmra.mxu0 %vm7379_vm1, %v6301_v36  ;;  %v2403_v31 = vmul.f32 0.125, %v2396_v22  ;;  %v2409_v24 = vmul.f32 1.442695, %v2402_v62 }
 0x649   : > { %2646 = vmatprep.mubr.f32.mxu0 %v7374_v44 }
 0x64a   : > { %v2411_v16 = vmul.f32 1.442695, %v2403_v31  ;;  %4784 = vpow2.f32 %v2409_v24 }
 0x64c   : > { %4786 = vpow2.f32 %v2411_v16 }
 0x654   : > { %v2300_v39 = vpop.f32.mrf.mxu1 }
 0x655   : > { %v2301_v13 = vadd.f32 %v2300_v39, %v2214_v20 }
 0x656   : > { %v2302_v49 = vpop.f32.mrf.mxu1 }
 0x657   : > { %v2303_v19 = vadd.f32 %v2302_v49, %v2214_v20  ;;  %v6309_v52 = vmax.f32 %v2301_v13, 0.0  ;;  %v4785_v56 = vpop.eup %4784 }
 0x658   : > { %v2304_v28 = vpop.f32.mrf.mxu1  ;;  %v2423_v40 = vsub.f32 1.0, %v4785_v56 }
 0x659   : > { %v6307_v58 = vmax.f32 %v2303_v19, 0.0  ;;  %v2397_v34 = vsub.f32 0.0, %v6309_v52  ;;  %v4787_v27 = vpop.eup %4786 }
 0x65a   : > { %v2305_v6 = vpop.f32.mrf.mxu1  ;;  %v2424_v1 = vsub.f32 1.0, %v4787_v27 }
 0x65b   : > { %2541 = vmatprep.subr.mxu1 %v6307_v58  ;;  %v2398_v33 = vsub.f32 0.0, %v6307_v58  ;;  %v2404_v7 = vmul.f32 0.125, %v2397_v34 }
 0x65c   : > { %2542 = vmatpush1.msra.mxu1 %v6309_v52 }
 0x65d   : > { %4651 = vmatmul.mubr.msk.f32.vlgmr.msra.gmra.mxu1 %vm7379_vm1, %v6301_v36  ;;  %4700 = vmatprep.subr.mxu1 %v7374_v44  ;;  %v2405_v30 = vmul.f32 0.125, %v2398_v33 }
 0x65e   : > { %4702 = vmatprep.mubr.msk.f32.mxu1 %vm7486_vm4, %v7374_v44 }
 0x65f   : > { %v2415_v37 = vmul.f32 1.442695, %v2405_v30 }
 0x674   : > { %v2341_v10 = vpop.f32.mrf.mxu0 }
 0x675   : > { %v2342_v46 = vadd.f32 %v2341_v10, %v2214_v20 }
 0x676   : > { %v2343_v18 = vpop.f32.mrf.mxu0 }
 0x677   : > { %v2344_v47 = vadd.f32 %v2343_v18, %v2214_v20  ;;  %v6320_v25 = vmax.f32 %v2342_v46, 0.0 }
 0x678   : > { %v2345_v14 = vpop.f32.mrf.mxu0 }
 0x679   : > { %v6318_v57 = vmax.f32 %v2344_v47, 0.0  ;;  %v2399_v27 = vsub.f32 0.0, %v6320_v25 }
 0x67a   : > { %v2346_v21 = vpop.f32.mrf.mxu0 }
 0x67b   : > { %v2382_v3 = vpop.f32.mrf.mxu1  ;;  %2612 = vmatprep.subr.mxu0 %v6318_v57 }
 0x67c   : > { %v6323_v17 = vadd.f32 %v2382_v3, %v2214_v20  ;;  %2613 = vmatpush1.msra.mxu0 %v6320_v25  ;;  %v2413_v20 = vmul.f32 1.442695, %v2404_v7 }
 0x67d   : > { %4652 = vmatmul.mubr.msk.f32.vlgmr.msra.gmra.mxu0 %vm7379_vm1, %v6301_v36  ;;  %v2384_v4 = vpop.f32.mrf.mxu1 }
 0x67e   : > { %v2394_v32 = vmax.f32 %v6323_v17, 0.0  ;;  %3376 = vmatprep.mubr.bf16.mxu0 %v7376_v54 }
 0x67f   : > { %v2385_v60 = vpop.f32.mrf.mxu1 }
 0x680   : > { %4701 = vmatpush3.msra.mxu1 %v2394_v32 }
 0x681   : > { %4703 = vmatmul.mubr.msk.f32.vlgmr.msra.gmra.mxu1 %vm7379_vm1, %v6301_v36  ;;  %v2386_v38 = vpop.f32.mrf.mxu1 }
 0x682   : > { %3290 = vmatprep.mubr.bf16.mxu1 %v7376_v54 }
 0x708   : > { %v2506_v61 = vpop.f32.mrf.mxu0 }
 0x709   : > { %v2723_v42 = vmul.f32 -0.125, %v2506_v61 }
 0x70a   : > { %v2508_v48 = vpop.f32.mrf.mxu0 }
 0x70b   : > { %v2730_v35 = vmul.f32 1.442695, %v2723_v42  ;;  %v2724_v59 = vmul.f32 -0.125, %v2508_v48 }
 0x70d   : > { %4788 = vpow2.f32 %v2730_v35  ;;  %v2732_v50 = vmul.f32 1.442695, %v2724_v59 }
 0x70f   : > { %4790 = vpow2.f32 %v2732_v50 }
 0x710   : > { %4792 = vpow2.f32 %v2413_v20 }
 0x711   : > { %4794 = vpow2.f32 %v2415_v37 }
 0x71a   : > { %v4789_v23 = vpop.eup %4788 }
 0x71b   : > { %v2744_v41 = vmul.f32 %v4789_v23, %v2423_v40  ;;  %v2400_v23 = vsub.f32 0.0, %v6318_v57 }
 0x71c   : > { %v4791_v45 = vpop.eup %4790 }
 0x71d   : > { %v2751_v51 = vrot.slane %v2744_v41, 4  ;;  %v6338_v43 = vmul.f32 %v4791_v45, %v2424_v1  ;;  %v2577_v39 = vpop.f32.mrf.mxu1  ;;  %v4793_v31 = vpop.eup %4792  ;;  %v2406_v45 = vmul.f32 0.125, %v2399_v27 }
 0x71e   : > { %v2725_v13 = vmul.f32 -0.125, %v2577_v39  ;;  %v4795_v42 = vpop.eup %4794  ;;  %v2425_v35 = vsub.f32 1.0, %v4793_v31  ;;  %v2407_v39 = vmul.f32 0.125, %v2400_v23 }
 0x71f   : > { %v2579_v49 = vpop.f32.mrf.mxu1  ;;  %v2752_v19 = vadd.f32 %v2751_v51, %v2744_v41  ;;  %v2757_v28 = vrot.slane %v6338_v43, 4  ;;  %v2426_v33 = vsub.f32 1.0, %v4795_v42  ;;  %v2401_v41 = vsub.f32 0.0, %v2394_v32  ;;  %v4833_v32 = vld [vmem:[%s4972_s20 + $0x8] sm:$0x77] }
 0x720   : > { %v2734_v6 = vmul.f32 1.442695, %v2725_v13  ;;  %v2726_v10 = vmul.f32 -0.125, %v2579_v49 }
 0x721   : > { %v2753_v46 = vrot.slane %v2752_v19, 2  ;;  %v2758_v18 = vadd.f32 %v2757_v28, %v6338_v43  ;;  %v2417_v28 = vmul.f32 1.442695, %v2406_v45 }
 0x722   : > { %4796 = vpow2.f32 %v2734_v6  ;;  %v2736_v47 = vmul.f32 1.442695, %v2726_v10 }
 0x723   : > { %v2754_v14 = vadd.f32 %v2753_v46, %v2752_v19  ;;  %v2759_v21 = vrot.slane %v2758_v18, 2  ;;  %v2408_v19 = vmul.f32 0.125, %v2401_v41  ;;  %v2419_v46 = vmul.f32 1.442695, %v2407_v39 }
 0x724   : > { %4798 = vpow2.f32 %v2736_v47 }
 0x725   : > { %v2755_v3 = vrot.slane %v2754_v14, 1  ;;  %v2760_v4 = vadd.f32 %v2759_v21, %v2758_v18  ;;  %4800 = vpow2.f32 %v2417_v28 }
 0x726   : > { %4802 = vpow2.f32 %v2419_v46 }
 0x727   : > { %v2756_v60 = vadd.f32 %v2755_v3, %v2754_v14  ;;  %v2761_v38 = vrot.slane %v2760_v4, 1  ;;  %v2421_v14 = vmul.f32 1.442695, %v2408_v19 }
 0x729   : > { %v2833_v22 = vmul.f32 %v4832_v63, %v2756_v60  ;;  %v6343_v62 = vadd.f32 %v2761_v38, %v2760_v4  ;;  %4804 = vpow2.f32 %v2421_v14 }
 0x72b   : > { %v2840_v24 = vsel %vm7378_vm2, %v2833_v22, %v2756_v60  ;;  %v2834_v16 = vmul.f32 %v6343_v62, %v4990_v12 }
 0x72c   : > { %v2847_v61 = vmul.f32 %v2840_v24, %v5578_v29 }
 0x72d   : > { %v6351_v48 = vsel %vm7378_vm2, %v2834_v16, %v6343_v62 }
 0x72e   : > { %v2854_v59 = vpack.c.bf16 %v2847_v61, %v2847_v61  ;;  %v2848_v50 = vmul.f32 %v6351_v48, %v5583_v53 }
 0x72f   : > { %v4797_v34 = vpop.eup %4796 }
 0x730   : > { %v6355_v56 = vmul.f32 %v4797_v34, %v2425_v35  ;;  %2868 = vrot.lane.b32.xlu0 %v2854_v59, %s4860_s21  ;;  %v2855_v7 = vpack.c.bf16 %v2848_v50, %v2848_v50 }
 0x731   : > { %v4799_v12 = vpop.eup %4798 }
 0x732   : > { %v6359_v30 = vmul.f32 %v4799_v12, %v2426_v33  ;;  %2870 = vrot.lane.b32.xlu1 %v2855_v7, %s4860_s21  ;;  %v2763_v40 = vrot.slane %v6355_v56, 4  ;;  %v4801_v7 = vpop.eup %4800 }
 0x733   : > { %v4803_v12 = vpop.eup %4802 }
 0x734   : > { %v2764_v20 = vadd.f32 %v2763_v40, %v6355_v56  ;;  %v2769_v1 = vrot.slane %v6359_v30, 4  ;;  %v2427_v40 = vsub.f32 1.0, %v4801_v7 }
 0x736   : > { %v2765_v37 = vrot.slane %v2764_v20, 2  ;;  %v2770_v51 = vadd.f32 %v2769_v1, %v6359_v30  ;;  %v4805_v27 = vpop.eup %4804 }
 0x737   : > { %v2429_v45 = vsub.f32 1.0, %v4805_v27 }
 0x738   : > { %v2766_v13 = vadd.f32 %v2765_v37, %v2764_v20  ;;  %v2771_v49 = vrot.slane %v2770_v51, 2  ;;  %v2428_v20 = vsub.f32 1.0, %v4803_v12 }
 0x73a   : > { %v2767_v6 = vrot.slane %v2766_v13, 1  ;;  %v2772_v10 = vadd.f32 %v2771_v49, %v2770_v51 }
 0x73c   : > { %v6369_v18 = vadd.f32 %v2767_v6, %v2766_v13  ;;  %v2773_v47 = vrot.slane %v2772_v10, 1 }
 0x73d   : > { %v2648_v21 = vpop.f32.mrf.mxu0 }
 0x73e   : > { %v2727_v17 = vmul.f32 -0.125, %v2648_v21  ;;  %v2835_v3 = vmul.f32 %v4833_v32, %v6369_v18  ;;  %v6373_v4 = vadd.f32 %v2773_v47, %v2772_v10 }
 0x73f   : > { %v2650_v60 = vpop.f32.mrf.mxu0 }
 0x740   : > { %v2738_v38 = vmul.f32 1.442695, %v2727_v17  ;;  %v2728_v63 = vmul.f32 -0.125, %v2650_v60  ;;  %v6377_v22 = vsel %vm7378_vm2, %v2835_v3, %v6369_v18  ;;  %v2836_v31 = vmul.f32 %v6373_v4, %v4977_v5 }
 0x741   : > { %v2719_v24 = vpop.f32.mrf.mxu1  ;;  %v2849_v16 = vmul.f32 %v6377_v22, %v5595_v0 }
 0x742   : > { %4806 = vpow2.f32 %v2738_v38  ;;  %v2740_v61 = vmul.f32 1.442695, %v2728_v63  ;;  %v2729_v42 = vmul.f32 -0.125, %v2719_v24  ;;  %v6385_v35 = vsel %vm7378_vm2, %v2836_v31, %v6373_v4  ;;  %v4834_v63 = vld [vmem:[%s4972_s20 + $0x10] sm:$0x77] }
 0x743   : > { %v2856_v59 = vpack.c.bf16 %v2849_v16, %v2849_v16  ;;  %v2850_v50 = vmul.f32 %v6385_v35, %v5619_v26  ;;  %v4704_v34 = vpop.f32.mrf.mxu1 }
 0x744   : > { %4808 = vpow2.f32 %v2740_v61  ;;  %v2742_v33 = vmul.f32 1.442695, %v2729_v42 }
 0x745   : > { %2872 = vrot.lane.b32.xlu0 %v2856_v59, %s4860_s21  ;;  %v2857_v5 = vpack.c.bf16 %v2850_v50, %v2850_v50 }
 0x746   : > { %4810 = vpow2.f32 %v2742_v33  ;;  %v4835_v33 = vld [vmem:[%s4972_s20 + $0x18] sm:$0x7] }
 0x747   : > { %2874 = vrot.lane.b32.xlu1 %v2857_v5, %s4860_s21 }
 0x74f   : > { %v4807_v23 = vpop.eup %4806 }
 0x750   : > { %v6391_v1 = vmul.f32 %v4807_v23, %v2427_v40 }
 0x751   : > { %v4809_v41 = vpop.eup %4808 }
 0x752   : > { %v6393_v37 = vmul.f32 %v4809_v41, %v2428_v20  ;;  %v2775_v51 = vrot.slane %v6391_v1, 4 }
 0x753   : > { %v4811_v39 = vpop.eup %4810 }
 0x754   : > { %v2750_v13 = vmul.f32 %v4811_v39, %v2429_v45  ;;  %v2776_v49 = vadd.f32 %v2775_v51, %v6391_v1  ;;  %v2781_v19 = vrot.slane %v6393_v37, 4 }
 0x756   : > { %v2787_v28 = vrot.slane %v2750_v13, 4  ;;  %v2777_v6 = vrot.slane %v2776_v49, 2  ;;  %v2782_v10 = vadd.f32 %v2781_v19, %v6393_v37 }
 0x758   : > { %v2778_v46 = vadd.f32 %v2777_v6, %v2776_v49  ;;  %v2783_v47 = vrot.slane %v2782_v10, 2  ;;  %v2788_v14 = vadd.f32 %v2787_v28, %v2750_v13 }
 0x75a   : > { %v2779_v21 = vrot.slane %v2778_v46, 1  ;;  %v2784_v17 = vadd.f32 %v2783_v47, %v2782_v10  ;;  %v2789_v32 = vrot.slane %v2788_v14, 2 }
 0x75c   : > { %v6399_v3 = vadd.f32 %v2779_v21, %v2778_v46  ;;  %v2785_v60 = vrot.slane %v2784_v17, 1  ;;  %v2790_v38 = vadd.f32 %v2789_v32, %v2788_v14 }
 0x75e   : > { %v2837_v31 = vmul.f32 %v4834_v63, %v6399_v3  ;;  %v6403_v24 = vadd.f32 %v2785_v60, %v2784_v17  ;;  %v2791_v16 = vrot.slane %v2790_v38, 1 }
 0x760   : > { %v6407_v61 = vsel %vm7378_vm2, %v2837_v31, %v6399_v3  ;;  %v2838_v42 = vmul.f32 %v6403_v24, %v4983_v8  ;;  %v2792_v59 = vadd.f32 %v2791_v16, %v2790_v38 }
 0x761   : > { %v2851_v50 = vmul.f32 %v6407_v61, %v5607_v55 }
 0x762   : > { %v6415_v34 = vsel %vm7378_vm2, %v2838_v42, %v6403_v24  ;;  %v2839_v5 = vmul.f32 %v4835_v33, %v2792_v59 }
 0x763   : > { %v2858_v7 = vpack.c.bf16 %v2851_v50, %v2851_v50  ;;  %v2852_v12 = vmul.f32 %v6415_v34, %v5612_v11 }
 0x764   : > { %v2846_v27 = vsel %vm7378_vm2, %v2839_v5, %v2792_v59 }
 0x765   : > { %2876 = vrot.lane.b32.xlu0 %v2858_v7, %s4860_s21  ;;  %v2859_v40 = vpack.c.bf16 %v2852_v12, %v2852_v12  ;;  %v2853_v8 = vmul.f32 %v2846_v27, %v5628_v2 }
 0x767   : > { %2878 = vrot.lane.b32.xlu1 %v2859_v40, %s4860_s21  ;;  %v2860_v23 = vpack.c.bf16 %v2853_v8, %v2853_v8 }
 0x769   : > { %2880 = vrot.lane.b32.xlu0 %v2860_v23, %s4860_s21 }
 0x7a2   : > { %v2869_v20 = vpop.permute.xlu0 %2868 }
 0x7a3   : > { %v6426_v41 = vsel %vm7487_vm11, 0, %v2869_v20  ;;  %vm7493_vm11 = vmmov %vm7488_vm7 }
 0x7a4   : > { %v2871_v45 = vpop.permute.xlu1 %2870  ;;  %2987 = vrot.lane.b32.xlu0 %v6426_v41, %s7452_s18  ;;  %3079 = vrot.lane.b32.xlu1 %v6426_v41, %s7414_s23  ;;  %v2894_v51 = vrot.slane %v6426_v41, 6  ;;  %v2956_v13 = vrot.slane %v6426_v41, 2  ;;  %v2925_v49 = vrot.slane %v6426_v41, 4 }
 0x7a5   : > { %v6434_v39 = vsel %vm7488_vm7, %v2869_v20, %v2871_v45 }
 0x7a6   : > { %v2957_v19 = vrot.slane %v6434_v39, 2  ;;  %v2926_v28 = vrot.slane %v6434_v39, 4  ;;  %v2895_v10 = vrot.slane %v6434_v39, 6 }
 0x7a8   : > { %3010 = vrot.lane.b32.xlu1 %v2894_v51, %s7372_s26  ;;  %3081 = vrot.lane.b32.xlu0 %v6434_v39, %s7414_s23 }
 0x7ac   : > { %3056 = vrot.lane.b32.xlu1 %v2956_v13, %s4866_s27  ;;  %2989 = vrot.lane.b32.xlu0 %v6434_v39, %s7452_s18 }
 0x7b0   : > { %2933 = vrot.lane.b32.xlu1 %v2925_v49, %s7453_s19  ;;  %3033 = vrot.lane.b32.xlu0 %v2925_v49, %s4861_s22 }
 0x7b4   : > { %2902 = vrot.lane.b32.xlu0 %v2894_v51, %s7415_s28  ;;  %3058 = vrot.lane.b32.xlu1 %v2957_v19, %s4866_s27 }
 0x7b7   : > { %v2873_v6 = vpop.permute.xlu0 %2872 }
 0x7b8   : > { %2964 = vrot.lane.b32.xlu0 %v2956_v13, %s7380_s17  ;;  %2935 = vrot.lane.b32.xlu1 %v2926_v28, %s7453_s19  ;;  %v6454_v46 = vsel %vm7489_vm14, %v2871_v45, %v2873_v6  ;;  %vm7494_vm14 = vcmask 506880  }
 0x7b9   : > { %v2896_v47 = vrot.slane %v6454_v46, 6  ;;  %v2927_v14 = vrot.slane %v6454_v46, 4  ;;  %v2958_v21 = vrot.slane %v6454_v46, 2  ;;  %v2875_v17 = vpop.permute.xlu1 %2874 }
 0x7ba   : > { %v6474_v32 = vsel %vm7490_vm13, %v2873_v6, %v2875_v17  ;;  %vm7495_vm13 = vmmov %vm7494_vm14 }
 0x7bb   : > { %v2897_v63 = vrot.slane %v6474_v32, 6  ;;  %v2928_v31 = vrot.slane %v6474_v32, 4  ;;  %v2959_v5 = vrot.slane %v6474_v32, 2 }
 0x7bc   : > { %3012 = vrot.lane.b32.xlu0 %v2895_v10, %s7372_s26  ;;  %3083 = vrot.lane.b32.xlu1 %v6454_v46, %s7414_s23 }
 0x7c0   : > { %3035 = vrot.lane.b32.xlu0 %v2926_v28, %s4861_s22  ;;  %2991 = vrot.lane.b32.xlu1 %v6454_v46, %s7452_s18 }
 0x7c4   : > { %2904 = vrot.lane.b32.xlu0 %v2895_v10, %s7415_s28  ;;  %3014 = vrot.lane.b32.xlu1 %v2896_v47, %s7372_s26 }
 0x7c8   : > { %2966 = vrot.lane.b32.xlu0 %v2957_v19, %s7380_s17  ;;  %3037 = vrot.lane.b32.xlu1 %v2927_v14, %s4861_s22 }
 0x7cc   : > { %3060 = vrot.lane.b32.xlu0 %v2958_v21, %s4866_s27  ;;  %2906 = vrot.lane.b32.xlu1 %v2896_v47, %s7415_s28 }
 0x7d0   : > { %2937 = vrot.lane.b32.xlu0 %v2927_v14, %s7453_s19  ;;  %2968 = vrot.lane.b32.xlu1 %v2958_v21, %s7380_s17 }
 0x7d4   : > { %3085 = vrot.lane.b32.xlu1 %v6474_v32, %s7414_s23 }
 0x7d7   : > { %v2877_v60 = vpop.permute.xlu0 %2876 }
 0x7d8   : > { %v6479_v38 = vsel %vm7491_vm15, %v2875_v17, %v2877_v60  ;;  %2993 = vrot.lane.b32.xlu1 %v6474_v32, %s7452_s18  ;;  %v3216_v17 = vld [vmem:[%s7347_s9] sm:$0xff]  ;;  %vm7496_vm15 = vcmask 1041408  }
 0x7d9   : > { %3087 = vrot.lane.b32.xlu0 %v6479_v38, %s7414_s23  ;;  %v2898_v16 = vrot.slane %v6479_v38, 6  ;;  %v2879_v42 = vpop.permute.xlu1 %2878  ;;  %v2929_v50 = vrot.slane %v6479_v38, 4  ;;  %v2960_v33 = vrot.slane %v6479_v38, 2 }
 0x7da   : > { %v6494_v59 = vsel %vm7492_vm10, %v2877_v60, %v2879_v42  ;;  %vm7497_vm10 = vmmov %vm7496_vm15 }
 0x7db   : > { %v2881_v7 = vpop.permute.xlu0 %2880  ;;  %v2899_v27 = vrot.slane %v6494_v59, 6  ;;  %v2930_v40 = vrot.slane %v6494_v59, 4  ;;  %v2961_v23 = vrot.slane %v6494_v59, 2 }
 0x7dc   : > { %3016 = vrot.lane.b32.xlu1 %v2897_v63, %s7372_s26  ;;  %v6512_v12 = vsel %vm7493_vm11, %v2879_v42, %v2881_v7  ;;  %v2891_v51 = vsel %vm7488_vm7, %v2881_v7, 0  ;;  %v3217_v42 = vld [vmem:[%s7347_s9 + $0x8] sm:$0xff]  ;;  %vm7498_vm11 = vcmask 523264  }
 0x7dd   : > { %2995 = vrot.lane.b32.xlu0 %v6479_v38, %s7452_s18  ;;  %v2900_v8 = vrot.slane %v6512_v12, 6  ;;  %v2931_v20 = vrot.slane %v6512_v12, 4  ;;  %v2962_v45 = vrot.slane %v6512_v12, 2  ;;  %v2901_v19 = vrot.slane %v2891_v51, 6  ;;  %vm7499_vm7 = vmmov %vm7498_vm11 }
 0x7de   : > { %v2963_v10 = vrot.slane %v2891_v51, 2  ;;  %v2932_v47 = vrot.slane %v2891_v51, 4 }
 0x7e0   : > { %3039 = vrot.lane.b32.xlu1 %v2928_v31, %s4861_s22 }
 0x7e1   : > { %3018 = vrot.lane.b32.xlu0 %v2898_v16, %s7372_s26 }
 0x7e4   : > { %3089 = vrot.lane.b32.xlu1 %v6494_v59, %s7414_s23 }
 0x7e5   : > { %3041 = vrot.lane.b32.xlu0 %v2929_v50, %s4861_s22 }
 0x7e8   : > { %2997 = vrot.lane.b32.xlu1 %v6494_v59, %s7452_s18 }
 0x7e9   : > { %3064 = vrot.lane.b32.xlu0 %v2960_v33, %s4866_s27 }
 0x7ec   : > { %3062 = vrot.lane.b32.xlu1 %v2959_v5, %s4866_s27 }
 0x7ed   : > { %2910 = vrot.lane.b32.xlu0 %v2898_v16, %s7415_s28 }
 0x7f0   : > { %2908 = vrot.lane.b32.xlu1 %v2897_v63, %s7415_s28 }
 0x7f1   : > { %2941 = vrot.lane.b32.xlu0 %v2929_v50, %s7453_s19 }
 0x7f4   : > { %2939 = vrot.lane.b32.xlu1 %v2928_v31, %s7453_s19 }
 0x7f5   : > { %2972 = vrot.lane.b32.xlu0 %v2960_v33, %s7380_s17 }
 0x7f8   : > { %2970 = vrot.lane.b32.xlu1 %v2959_v5, %s7380_s17 }
 0x7f9   : > { %3091 = vrot.lane.b32.xlu0 %v6512_v12, %s7414_s23 }
 0x7fc   : > { %3020 = vrot.lane.b32.xlu1 %v2899_v27, %s7372_s26 }
 0x7fd   : > { %2999 = vrot.lane.b32.xlu0 %v6512_v12, %s7452_s18 }
 0x800   : > { %3043 = vrot.lane.b32.xlu1 %v2930_v40, %s4861_s22 }
 0x801   : > { %3022 = vrot.lane.b32.xlu0 %v2900_v8, %s7372_s26 }
 0x804   : > { %3066 = vrot.lane.b32.xlu1 %v2961_v23, %s4866_s27 }
 0x805   : > { %3045 = vrot.lane.b32.xlu0 %v2931_v20, %s4861_s22 }
 0x808   : > { %2912 = vrot.lane.b32.xlu1 %v2899_v27, %s7415_s28 }
 0x809   : > { %3068 = vrot.lane.b32.xlu0 %v2962_v45, %s4866_s27 }
 0x80c   : > { %2943 = vrot.lane.b32.xlu1 %v2930_v40, %s7453_s19 }
 0x80d   : > { %2914 = vrot.lane.b32.xlu0 %v2900_v8, %s7415_s28 }
 0x810   : > { %2974 = vrot.lane.b32.xlu1 %v2961_v23, %s7380_s17 }
 0x811   : > { %2945 = vrot.lane.b32.xlu0 %v2931_v20, %s7453_s19 }
 0x814   : > { %3093 = vrot.lane.b32.xlu1 %v2891_v51, %s7414_s23 }
 0x815   : > { %2976 = vrot.lane.b32.xlu0 %v2962_v45, %s7380_s17 }
 0x816   : > { %v3080_v13 = vpop.permute.xlu1 %3079  ;;  %v2988_v49 = vpop.permute.xlu0 %2987 }
 0x818   : > { %3024 = vrot.lane.b32.xlu1 %v2901_v19, %s7372_s26 }
 0x819   : > { %3001 = vrot.lane.b32.xlu0 %v2891_v51, %s7452_s18 }
 0x81a   : > { %v3011_v28 = vpop.permute.xlu1 %3010  ;;  %v3082_v6 = vpop.permute.xlu0 %3081 }
 0x81b   : > { %v3095_v5 = vsel %vm7494_vm14, %v3080_v13, %v3082_v6  ;;  %vm7500_vm14 = vmmov %vm7497_vm10 }
 0x81c   : > { %3070 = vrot.lane.b32.xlu1 %v2963_v10, %s4866_s27  ;;  %v3238_v8 = vsel %vm7497_vm10, %v3095_v5, 0 }
 0x81d   : > { %3047 = vrot.lane.b32.xlu0 %v2932_v47, %s4861_s22 }
 0x81e   : > { %v3057_v14 = vpop.permute.xlu1 %3056  ;;  %v2990_v21 = vpop.permute.xlu0 %2989 }
 0x820   : > { %2947 = vrot.lane.b32.xlu1 %v2932_v47, %s7453_s19 }
 0x821   : > { %2916 = vrot.lane.b32.xlu0 %v2901_v19, %s7415_s28 }
 0x822   : > { %v2934_v60 = vpop.permute.xlu1 %2933  ;;  %v3034_v63 = vpop.permute.xlu0 %3033 }
 0x824   : > { %3220 = vperm.xlu1 %4770, %v3216_v17  }
 0x825   : > { %2978 = vrot.lane.b32.xlu0 %v2963_v10, %s7380_s17 }
 0x826   : > { %v3059_v31 = vpop.permute.xlu1 %3058  ;;  %v2903_v16 = vpop.permute.xlu0 %2902 }
 0x829   : > { %3225 = vperm.xlu0 %4769, %v3217_v42  }
 0x82a   : > { %v2936_v50 = vpop.permute.xlu1 %2935  ;;  %v2965_v33 = vpop.permute.xlu0 %2964 }
 0x82e   : > { %v3084_v7 = vpop.permute.xlu1 %3083  ;;  %v3013_v27 = vpop.permute.xlu0 %3012 }
 0x82f   : > { %v3096_v40 = vsel %vm7495_vm13, %v3082_v6, %v3084_v7  ;;  %v3026_v19 = vsel %vm846_vm5, %v3011_v28, %v3013_v27  ;;  %v3003_v6 = vsel %vm790_vm9, %v2988_v49, %v2990_v21  ;;  %vm7501_vm13 = vmmov %vm7497_vm10  ;;  %vm7503_vm10 = vcmask 1039360  }
 0x830   : > { %4655 = vmatprep.subr.msk.bf16.mxu1 %vm7496_vm15, %v3096_v40  ;;  %v3160_v5 = vsel %vm7500_vm14, %v3003_v6, %v3026_v19  ;;  %vm7502_vm15 = vcmask 1043456   ;;  %vm7508_vm14 = vmmov %vm7501_vm13 }
 0x831   : > { %3269 = vmatpush1.bf16.msra.mxu1 %v3238_v8  ;;  %vm7505_vm2 = vmmov %vm7502_vm15 }
 0x832   : > { %v6556_v23 = vpop.permute.xlu1 %2991  ;;  %v3036_v20 = vpop.permute.xlu0 %3035 }
 0x833   : > { %v3049_v13 = vsel %vm7498_vm11, %v3034_v63, %v3036_v20  ;;  %v3004_v40 = vsel %vm790_vm9, %v2990_v21, %v6556_v23  ;;  %vm7504_vm11 = vcmask 515072  }
 0x834   : > { %v3180_v54 = vsel %vm7502_vm15, %v3160_v5, %v3049_v13  ;;  %vm7506_vm1 = vmmov %vm7504_vm11 }
 0x836   : > { %v3015_v45 = vpop.permute.xlu1 %3014  ;;  %v2905_v51 = vpop.permute.xlu0 %2904 }
 0x837   : > { %v3027_v17 = vsel %vm846_vm5, %v3013_v27, %v3015_v45  ;;  %v2918_v63 = vsel %vm7503_vm10, %v2903_v16, %v2905_v51 }
 0x838   : > { %v3163_v8 = vsel %vm7501_vm13, %v3004_v40, %v3027_v17  ;;  %v3104_v6 = vsel %vm7508_vm14, %v6426_v41, %v2918_v63  ;;  %v7513_v63 = vmov 0  }
 0x83a   : > { %v3038_v10 = vpop.permute.xlu1 %3037  ;;  %v2967_v47 = vpop.permute.xlu0 %2966 }
 0x83b   : > { %v3050_v42 = vsel %vm7499_vm7, %v3036_v20, %v3038_v10  ;;  %v3072_v20 = vsel %vm7506_vm1, %v3057_v14, %v3059_v31  ;;  %vm7507_vm7 = vmmov %vm7503_vm10  ;;  %v2980_v5 = vsel %vm751_vm12, %v2965_v33, %v2967_v47  ;;  %vm7512_vm10 = vcmask 506880  }
 0x83c   : > { %v3182_v49 = vsel %vm7505_vm2, %v3163_v8, %v3050_v42  ;;  %v3194_v17 = vsel %vm1036_vm6, %v3180_v54, %v3072_v20  ;;  %vm7509_vm2 = vmmov %vm7501_vm13  ;;  %v2949_v42 = vsel %vm703_vm0, %v2934_v60, %v2936_v50 }
 0x83d   : > { %vm7510_vm1 = vmmov %vm7502_vm15  ;;  %vm3233_vm15 = vcmask 293888  }
 0x83e   : > { %v6567_v44 = vpop.permute.xlu1 %2906  ;;  %v3061_v28 = vpop.permute.xlu0 %3060  ;;  %vm7511_vm13 = vmmov %vm7510_vm1 }
 0x83f   : > { %v3073_v27 = vsel %vm7504_vm11, %v3059_v31, %v3061_v28  ;;  %v2919_v19 = vsel %vm7507_vm7, %v2905_v51, %v6567_v44  ;;  %v3124_v40 = vsel %vm7511_vm13, %v3104_v6, %v2949_v42  ;;  %vm7514_vm11 = vmmov %vm7512_vm10 }
 0x840   : > { %v3197_v21 = vsel %vm1036_vm6, %v3182_v49, %v3073_v27  ;;  %v3107_v14 = vsel %vm7509_vm2, %v6434_v39, %v2919_v19  ;;  %v3138_v33 = vsel %vm1036_vm6, %v3124_v40, %v2980_v5  ;;  %v6596_v39 = vld [vmem:[%s7346_s8] sm:$0xff]   ;;  %vm7515_vm7 = vmmov %vm7509_vm2 }
 0x841   : > { %3270 = vmatprep.subr.bf16.mxu1 %v3197_v21  ;;  %vm7516_vm14 = vmmov %vm7509_vm2  ;;  %vm7517_vm2 = vcmask 523264  }
 0x842   : > { %v6580_v13 = vpop.permute.xlu1 %2968  ;;  %3271 = vmatpush1.bf16.msra.mxu1 %v3194_v17  ;;  %v2938_v16 = vpop.permute.xlu0 %2937  ;;  %vm7519_vm13 = vmmov %vm7515_vm7 }
 0x843   : > { %v2981_v31 = vsel %vm751_vm12, %v2967_v47, %v6580_v13  ;;  %v2950_v51 = vsel %vm703_vm0, %v2936_v50, %v2938_v16 }
 0x844   : > { %v3126_v54 = vsel %vm7510_vm1, %v3107_v14, %v2950_v51  ;;  %vm7518_vm1 = vmmov %vm7517_vm2 }
 0x845   : > { %v3141_v41 = vsel %vm1036_vm6, %v3126_v54, %v2981_v31 }
 0x846   : > { %v3086_v8 = vpop.permute.xlu1 %3085  ;;  %3272 = vmatprep.subr.bf16.mxu1 %v3141_v41 }
 0x847   : > { %3273 = vmatpush1.bf16.msra.mxu1 %v3138_v33  ;;  %v3097_v47 = vsel %vm7512_vm10, %v3084_v7, %v3086_v8  ;;  %vm7520_vm10 = vmmov %vm7515_vm7 }
 0x848   : > { %v3244_v49 = vsel %vm7516_vm14, %v3097_v47, 0  ;;  %vm7523_vm14 = vcmask 1043456  }
 0x84a   : > { %v2994_v60 = vpop.permute.xlu1 %2993  ;;  %4656 = vmatmul.mubr.msk.bf16.vlgmr.msra.gmra.mxu1 %vm3233_vm15, %v6596_v39 }
 0x84b   : > { %v3088_v50 = vpop.permute.xlu0 %3087  ;;  %3333 = vmatprep.mubr.bf16.mxu1 %v7513_v63  ;;  %v3005_v41 = vsel %vm790_vm9, %v6556_v23, %v2994_v60 }
 0x84c   : > { %v3098_v27 = vsel %vm7514_vm11, %v3086_v8, %v3088_v50  ;;  %vm7521_vm11 = vcmask 515072  }
 0x84d   : > { %4657 = vmatprep.subr.msk.bf16.mxu1 %vm7515_vm7, %v3098_v27  ;;  %vm7522_vm7 = vmmov %vm7521_vm11 }
 0x84e   : > { %v3017_v20 = vpop.permute.xlu1 %3016  ;;  %3312 = vmatpush1.bf16.msra.mxu1 %v3244_v49 }
 0x84f   : > { %v6605_v19 = vpop.permute.xlu0 %2995  ;;  %v3028_v14 = vsel %vm846_vm5, %v3015_v45, %v3017_v20 }
 0x850   : > { %v3006_v40 = vsel %vm790_vm9, %v2994_v60, %v6605_v19  ;;  %v3166_v8 = vsel %vm7519_vm13, %v3005_v41, %v3028_v14 }
 0x852   : > { %v3040_v21 = vpop.permute.xlu1 %3039 }
 0x853   : > { %v3019_v17 = vpop.permute.xlu0 %3018  ;;  %v3051_v42 = vsel %vm7517_vm2, %v3038_v10, %v3040_v21  ;;  %vm7524_vm2 = vmmov %vm7523_vm14 }
 0x854   : > { %v3029_v31 = vsel %vm846_vm5, %v3017_v20, %v3019_v17  ;;  %v3184_v20 = vsel %vm7524_vm2, %v3166_v8, %v3051_v42 }
 0x855   : > { %v3169_v33 = vsel %vm7520_vm10, %v3006_v40, %v3029_v31  ;;  %vm7527_vm10 = vcmask 506880  }
 0x856   : > { %v3090_v7 = vpop.permute.xlu1 %3089 }
 0x857   : > { %v3042_v6 = vpop.permute.xlu0 %3041  ;;  %v3099_v8 = vsel %vm7527_vm10, %v3088_v50, %v3090_v7 }
 0x858   : > { %v3052_v54 = vsel %vm7518_vm1, %v3040_v21, %v3042_v6  ;;  %vm7525_vm1 = vcmask 1039360  }
 0x859   : > { %v3186_v10 = vsel %vm7523_vm14, %v3169_v33, %v3052_v54  ;;  %vm7526_vm13 = vmmov %vm7525_vm1 }
 0x85a   : > { %v2998_v5 = vpop.permute.xlu1 %2997  ;;  %vm7530_vm14 = vmmov %vm7524_vm2 }
 0x85b   : > { %v3065_v51 = vpop.permute.xlu0 %3064 }
 0x85e   : > { %v3063_v47 = vpop.permute.xlu1 %3062 }
 0x85f   : > { %v3074_v45 = vsel %vm7521_vm11, %v3061_v28, %v3063_v47  ;;  %v3075_v27 = vsel %vm7522_vm7, %v3063_v47, %v3065_v51  ;;  %v6619_v49 = vpop.permute.xlu0 %2910  ;;  %vm7528_vm11 = vcmask 1041408  }
 0x860   : > { %v3203_v23 = vsel %vm1036_vm6, %v3186_v10, %v3075_v27  ;;  %v3200_v21 = vsel %vm1036_vm6, %v3184_v20, %v3074_v45  ;;  %vm7529_vm7 = vmmov %vm7528_vm11 }
 0x861   : > { %3313 = vmatprep.subr.bf16.mxu1 %v3203_v23 }
 0x862   : > { %v2909_v60 = vpop.permute.xlu1 %2908  ;;  %3314 = vmatpush1.bf16.msra.mxu1 %v3200_v21 }
 0x863   : > { %v2942_v14 = vpop.permute.xlu0 %2941  ;;  %v2920_v28 = vsel %vm7525_vm1, %v6567_v44, %v2909_v60  ;;  %v2921_v41 = vsel %vm7526_vm13, %v2909_v60, %v6619_v49  ;;  %vm7531_vm1 = vmmov %vm7527_vm10  ;;  %v7534_v60 = vmov 0.0  }
 0x864   : > { %v3110_v33 = vsel %vm7528_vm11, %v6454_v46, %v2920_v28  ;;  %v3113_v47 = vsel %vm7529_vm7, %v6474_v32, %v2921_v41  ;;  %vm7532_vm13 = vmmov %vm7529_vm7  ;;  %vm7535_vm11 = vcmask 523264  }
 0x865   : > { %vm7533_vm10 = vmmov %vm7529_vm7 }
 0x866   : > { %v2940_v31 = vpop.permute.xlu1 %2939  ;;  %v3250_v32 = vsel %vm7533_vm10, %v3099_v8, 0  ;;  %vm7536_vm7 = vmmov %vm7535_vm11 }
 0x867   : > { %v2973_v40 = vpop.permute.xlu0 %2972  ;;  %v2951_v54 = vsel %vm703_vm0, %v2938_v16, %v2940_v31  ;;  %v2952_v42 = vsel %vm703_vm0, %v2940_v31, %v2942_v14 }
 0x868   : > { %v3130_v20 = vsel %vm7530_vm14, %v3113_v47, %v2952_v42  ;;  %v3128_v16 = vsel %vm7524_vm2, %v3110_v33, %v2951_v54  ;;  %vm7537_vm14 = vmmov %vm7533_vm10 }
 0x869   : > { %vm7539_vm2 = vmmov %vm7533_vm10 }
 0x86a   : > { %v2971_v45 = vpop.permute.xlu1 %2970 }
 0x86b   : > { %v2982_v44 = vsel %vm751_vm12, %v6580_v13, %v2971_v45  ;;  %v2983_v27 = vsel %vm751_vm12, %v2971_v45, %v2973_v40  ;;  %v3092_v10 = vpop.permute.xlu0 %3091 }
 0x86c   : > { %v3147_v23 = vsel %vm1036_vm6, %v3130_v20, %v2983_v27  ;;  %v3100_v50 = vsel %vm7531_vm1, %v3090_v7, %v3092_v10  ;;  %v3144_v46 = vsel %vm1036_vm6, %v3128_v16, %v2982_v44  ;;  %v3007_v44 = vsel %vm790_vm9, %v6605_v19, %v2998_v5 }
 0x86d   : > { %3315 = vmatprep.subr.bf16.mxu1 %v3147_v23  ;;  %4659 = vmatprep.subr.msk.bf16.mxu0 %vm7532_vm13, %v3100_v50  ;;  %vm7541_vm13 = vcmask 1043456  }
 0x86e   : > { %v3021_v21 = vpop.permute.xlu1 %3020  ;;  %3316 = vmatpush1.bf16.msra.mxu1 %v3144_v46  ;;  %3355 = vmatpush1.bf16.msra.mxu0 %v3250_v32  ;;  %vm7542_vm10 = vmmov %vm7541_vm13 }
 0x86f   : > { %v3000_v13 = vpop.permute.xlu0 %2999  ;;  %4705 = vmatprep.subr.bf16.mxu1 %v7534_v60  ;;  %v3030_v42 = vsel %vm846_vm5, %v3019_v17, %v3021_v21 }
 0x870   : > { %v3008_v33 = vsel %vm790_vm9, %v2998_v5, %v3000_v13  ;;  %v3172_v23 = vsel %vm7539_vm2, %v3007_v44, %v3030_v42 }
 0x871   : > { %4658 = vmatmul.mubr.msk.bf16.vlgmr.msra.gmra.mxu1 %vm3233_vm15, %v6596_v39 }
 0x872   : > { %v3044_v31 = vpop.permute.xlu1 %3043  ;;  %4711 = vmatprep.mubr.msk.bf16.mxu1 %vm7486_vm4, %v7534_v60  ;;  %vm7538_vm4 = vcmask 515072  }
 0x873   : > { %v3023_v7 = vpop.permute.xlu0 %3022  ;;  %v3053_v47 = vsel %vm7536_vm7, %v3042_v6, %v3044_v31  ;;  %vm7540_vm1 = vmmov %vm7538_vm4 }
 0x874   : > { %v3031_v54 = vsel %vm846_vm5, %v3021_v21, %v3023_v7  ;;  %v3188_v32 = vsel %vm7542_vm10, %v3172_v23, %v3053_v47 }
 0x875   : > { %v3175_v27 = vsel %vm7537_vm14, %v3008_v33, %v3031_v54  ;;  %vm7545_vm14 = vmmov %vm7539_vm2 }
 0x876   : > { %v3067_v28 = vpop.permute.xlu1 %3066 }
 0x877   : > { %v3046_v41 = vpop.permute.xlu0 %3045  ;;  %v3076_v20 = vsel %vm7538_vm4, %v3065_v51, %v3067_v28  ;;  %vm7546_vm4 = vcmask 506880  }
 0x878   : > { %v3054_v8 = vsel %vm7535_vm11, %v3044_v31, %v3046_v41  ;;  %v3206_v21 = vsel %vm1036_vm6, %v3188_v32, %v3076_v20  ;;  %vm7543_vm11 = vcmask 1039360  }
 0x879   : > { %v3190_v17 = vsel %vm7541_vm13, %v3175_v27, %v3054_v8  ;;  %vm7544_vm7 = vmmov %vm7543_vm11 }
 0x87a   : > { %v2913_v45 = vpop.permute.xlu1 %2912  ;;  %vm7548_vm13 = vmmov %vm7542_vm10 }
 0x87b   : > { %v3069_v16 = vpop.permute.xlu0 %3068  ;;  %v2922_v54 = vsel %vm7544_vm7, %v6619_v49, %v2913_v45  ;;  %vm7550_vm7 = vcmask 523264  }
 0x87c   : > { %v3077_v50 = vsel %vm7540_vm1, %v3067_v28, %v3069_v16  ;;  %v3116_v20 = vsel %vm7539_vm2, %v6479_v38, %v2922_v54  ;;  %vm7547_vm1 = vmmov %vm7539_vm2  ;;  %vm7553_vm2 = vcmask 1039360  }
 0x87d   : > { %v3209_v46 = vsel %vm1036_vm6, %v3190_v17, %v3077_v50 }
 0x87e   : > { %v2944_v6 = vpop.permute.xlu1 %2943  ;;  %3356 = vmatprep.subr.bf16.mxu0 %v3209_v46 }
 0x87f   : > { %3357 = vmatpush1.bf16.msra.mxu0 %v3206_v21  ;;  %v2915_v19 = vpop.permute.xlu0 %2914  ;;  %v2953_v42 = vsel %vm703_vm0, %v2942_v14, %v2944_v6 }
 0x880   : > { %v2923_v51 = vsel %vm7543_vm11, %v2913_v45, %v2915_v19  ;;  %v3132_v50 = vsel %vm7542_vm10, %v3116_v20, %v2953_v42  ;;  %vm7549_vm11 = vmmov %vm7547_vm1 }
 0x881   : > { %v3119_v33 = vsel %vm7545_vm14, %v6494_v59, %v2923_v51  ;;  %vm7551_vm14 = vcmask 515072  }
 0x882   : > { %v2975_v5 = vpop.permute.xlu1 %2974 }
 0x883   : > { %v2946_v31 = vpop.permute.xlu0 %2945  ;;  %v2984_v47 = vsel %vm751_vm12, %v2973_v40, %v2975_v5 }
 0x884   : > { %v2954_v28 = vsel %vm703_vm0, %v2944_v6, %v2946_v31  ;;  %v3150_v40 = vsel %vm1036_vm6, %v3132_v50, %v2984_v47 }
 0x885   : > { %v3134_v45 = vsel %vm7548_vm13, %v3119_v33, %v2954_v28 }
 0x886   : > { %v3094_v8 = vpop.permute.xlu1 %3093 }
 0x887   : > { %v3101_v44 = vsel %vm7546_vm4, %v3092_v10, %v3094_v8  ;;  %v2977_v27 = vpop.permute.xlu0 %2976  ;;  %vm7552_vm4 = vmmov %vm7542_vm10 }
 0x888   : > { %v3256_v23 = vsel %vm7547_vm1, %v3101_v44, 0  ;;  %v2985_v49 = vsel %vm751_vm12, %v2975_v5, %v2977_v27  ;;  %vm7554_vm13 = vmmov %vm7552_vm4 }
 0x889   : > { %4706 = vmatpush3.bf16.msra.mxu1 %v3256_v23  ;;  %v3153_v14 = vsel %vm1036_vm6, %v3134_v45, %v2985_v49 }
 0x88a   : > { %v3025_v59 = vpop.permute.xlu1 %3024  ;;  %3358 = vmatprep.subr.bf16.mxu0 %v3153_v14  ;;  %4707 = vmatprep.subr.bf16.mxu1 %v7534_v60 }
 0x88b   : > { %3359 = vmatpush1.bf16.msra.mxu0 %v3150_v40  ;;  %v3002_v10 = vpop.permute.xlu0 %3001  ;;  %v3032_v38 = vsel %vm846_vm5, %v3023_v7, %v3025_v59 }
 0x88c   : > { %v3009_v17 = vsel %vm790_vm9, %v3000_v13, %v3002_v10 }
 0x88d   : > { %v3178_v6 = vsel %vm7549_vm11, %v3009_v17, %v3032_v38 }
 0x88e   : > { %v3071_v46 = vpop.permute.xlu1 %3070  ;;  %4660 = vmatmul.mubr.msk.bf16.vlgmr.msra.gmra.mxu0 %vm3233_vm15, %v6596_v39 }
 0x88f   : > { %v3048_v32 = vpop.permute.xlu0 %3047  ;;  %v3078_v5 = vsel %vm7551_vm14, %v3069_v16, %v3071_v46 }
 0x890   : > { %v3055_v21 = vsel %vm7550_vm7, %v3046_v41, %v3048_v32 }
 0x891   : > { %v3192_v51 = vsel %vm7552_vm4, %v3178_v6, %v3055_v21 }
 0x892   : > { %v3212_v54 = vsel %vm1036_vm6, %v3192_v51, %v3078_v5  ;;  %v2948_v7 = vpop.permute.xlu1 %2947 }
 0x893   : > { %4708 = vmatpush3.bf16.msra.mxu1 %v3212_v54  ;;  %v2917_v28 = vpop.permute.xlu0 %2916  ;;  %v2955_v8 = vsel %vm703_vm0, %v2946_v31, %v2948_v7 }
 0x894   : > { %v2924_v13 = vsel %vm7553_vm2, %v2915_v19, %v2917_v28  ;;  %4709 = vmatprep.subr.bf16.mxu1 %v7534_v60 }
 0x895   : > { %v3122_v42 = vsel %vm7547_vm1, %v6512_v12, %v2924_v13  ;;  %vm7564_vm1 = vcmask 515072  }
 0x896   : > { %v3136_v16 = vsel %vm7554_vm13, %v3122_v42, %v2955_v8  ;;  %vm7565_vm13 = vmmov %vm7564_vm1 }
 0x897   : > { %v2979_v33 = vpop.permute.xlu0 %2978 }
 0x898   : > { %v2986_v41 = vsel %vm751_vm12, %v2977_v27, %v2979_v33 }
 0x899   : > { %v3156_v47 = vsel %vm1036_vm6, %v3136_v16, %v2986_v41  ;;  %vm7555_vm6 = vcmask 269312  }
 0x89a   : > { %4710 = vmatpush3.bf16.msra.mxu1 %v3156_v47  ;;  %vm7558_vm10 = vmmov %vm7555_vm6 }
 0x89b   : > { %vm7559_vm11 = vmmov %vm7555_vm6 }
 0x89c   : > { %vm7560_vm7 = vmmov %vm7555_vm6 }
 0x89d   : > { %4712 = vmatmul.mubr.msk.bf16.vlgmr.msra.gmra.mxu1 %vm3233_vm15, %v6596_v39  ;;  %vm7557_vm15 = vmmov %vm7555_vm6 }
 0x89e   : > { %vm7561_vm14 = vmmov %vm7555_vm6 }
 0x89f   : > { %v3221_v44 = vpop.permute.xlu1 %3220  ;;  %vm7562_vm4 = vmmov %vm7555_vm6 }
 0x8a0   : > { %vm7563_vm2 = vmmov %vm7562_vm4 }
 0x8a4   : > { %v3226_v49 = vpop.permute.xlu0 %3225 }
 0x90a   : > { %v3292_v19 = vpop.f32.mrf.mxu1 }
 0x90b   : > { %v3293_v20 = vadd.f32 %v3292_v19, %v3221_v44 }
 0x90c   : > { %v3294_v60 = vpop.f32.mrf.mxu1 }
 0x90d   : > { %v3295_v23 = vadd.f32 %v3294_v60, %v3221_v44  ;;  %v3428_v45 = vmax.f32 %v3293_v20, 0.0 }
 0x90e   : > { %v3296_v12 = vpop.f32.mrf.mxu1 }
 0x90f   : > { %v3297_v31 = vadd.f32 %v3296_v12, %v3226_v49  ;;  %v3429_v50 = vmax.f32 %v3295_v23, 0.0  ;;  %v3442_v40 = vmul.f32 %v3428_v45, %v5578_v29 }
 0x910   : > { %v3298_v14 = vpop.f32.mrf.mxu1 }
 0x911   : > { %v3435_v27 = vmax.f32 %v3297_v31, 0.0  ;;  %v3299_v59 = vadd.f32 %v3298_v14, %v3226_v49  ;;  %v3443_v39 = vmul.f32 %v3429_v50, %v5583_v53 }
 0x913   : > { %v3449_v10 = vmul.f32 %v3435_v27, %v5578_v29  ;;  %v3436_v38 = vmax.f32 %v3299_v59, 0.0 }
 0x915   : > { %v3456_v17 = vpack.c.bf16 %v3449_v10, %v3442_v40  ;;  %v3450_v46 = vmul.f32 %v3436_v38, %v5583_v53 }
 0x917   : > { %v3457_v32 = vpack.c.bf16 %v3450_v46, %v3443_v39  ;;  %3470 = vrot.lane.b32.xlu1 %v3456_v17, %s4860_s21 }
 0x919   : > { %3472 = vrot.lane.b32.xlu0 %v3457_v32, %s4860_s21 }
 0x931   : > { %v3335_v6 = vpop.f32.mrf.mxu1 }
 0x932   : > { %v3336_v21 = vadd.f32 %v3335_v6, %v3221_v44 }
 0x933   : > { %v3337_v5 = vpop.f32.mrf.mxu1 }
 0x934   : > { %v3338_v51 = vadd.f32 %v3337_v5, %v3221_v44  ;;  %v3430_v28 = vmax.f32 %v3336_v21, 0.0 }
 0x935   : > { %v3339_v54 = vpop.f32.mrf.mxu1 }
 0x936   : > { %v3340_v7 = vadd.f32 %v3339_v54, %v3226_v49  ;;  %v3431_v42 = vmax.f32 %v3338_v51, 0.0  ;;  %v3444_v41 = vmul.f32 %v3430_v28, %v5595_v0 }
 0x937   : > { %v3341_v13 = vpop.f32.mrf.mxu1 }
 0x938   : > { %v3437_v8 = vmax.f32 %v3340_v7, 0.0  ;;  %v3342_v33 = vadd.f32 %v3341_v13, %v3226_v49  ;;  %v3445_v19 = vmul.f32 %v3431_v42, %v5619_v26 }
 0x93a   : > { %v3451_v16 = vmul.f32 %v3437_v8, %v5595_v0  ;;  %v3438_v47 = vmax.f32 %v3342_v33, 0.0 }
 0x93c   : > { %v3458_v20 = vpack.c.bf16 %v3451_v16, %v3444_v41  ;;  %v3452_v60 = vmul.f32 %v3438_v47, %v5619_v26 }
 0x93e   : > { %v3459_v23 = vpack.c.bf16 %v3452_v60, %v3445_v19  ;;  %3474 = vrot.lane.b32.xlu1 %v3458_v20, %s4860_s21 }
 0x940   : > { %3476 = vrot.lane.b32.xlu0 %v3459_v23, %s4860_s21 }
 0x94e   : > { %v3378_v12 = vpop.f32.mrf.mxu0 }
 0x94f   : > { %v3379_v5 = vadd.f32 %v3378_v12, %v3221_v44 }
 0x950   : > { %v3380_v45 = vpop.f32.mrf.mxu0 }
 0x951   : > { %v3381_v31 = vadd.f32 %v3380_v45, %v3221_v44  ;;  %v3432_v42 = vmax.f32 %v3379_v5, 0.0 }
 0x952   : > { %v3382_v14 = vpop.f32.mrf.mxu0 }
 0x953   : > { %v3433_v27 = vmax.f32 %v3381_v31, 0.0  ;;  %v3383_v6 = vadd.f32 %v3382_v14, %v3226_v49  ;;  %v3446_v47 = vmul.f32 %v3432_v42, %v5607_v55 }
 0x954   : > { %v3384_v50 = vpop.f32.mrf.mxu0 }
 0x955   : > { %v3385_v59 = vadd.f32 %v3384_v50, %v3226_v49  ;;  %v3447_v10 = vmul.f32 %v3433_v27, %v5612_v11  ;;  %v3439_v7 = vmax.f32 %v3383_v6, 0.0  ;;  %v6792_v50 = vld [vmem:[%s7348_s10 + $0x4] ss:$8 sps:$4 sm:$0xff]  }
 0x956   : > { %4666 = vmatprep.mubr.msk.bf16.mxu0 %vm1720_vm8, %v6792_v50  ;;  %4667 = vmatprep.mubr.msk.bf16.mxu1 %vm1720_vm8, %v6792_v50 }
 0x957   : > { %v3440_v40 = vmax.f32 %v3385_v59, 0.0  ;;  %v3453_v41 = vmul.f32 %v3439_v7, %v5607_v55 }
 0x959   : > { %v3454_v38 = vmul.f32 %v3440_v40, %v5612_v11  ;;  %v3460_v19 = vpack.c.bf16 %v3453_v41, %v3446_v47 }
 0x95b   : > { %v3461_v39 = vpack.c.bf16 %v3454_v38, %v3447_v10 }
 0x95d   : > { %v3421_v17 = vpop.f32.mrf.mxu1  ;;  %3480 = vrot.lane.b32.xlu0 %v3461_v39, %s4860_s21 }
 0x95e   : > { %v3422_v46 = vadd.f32 %v3421_v17, %v3221_v44 }
 0x95f   : > { %v4713_v32 = vpop.f32.mrf.mxu1 }
 0x960   : > { %v3434_v51 = vmax.f32 %v3422_v46, 0.0 }
 0x961   : > { %v3424_v21 = vpop.f32.mrf.mxu1 }
 0x962   : > { %v3425_v54 = vadd.f32 %v3424_v21, %v3226_v49  ;;  %v3448_v8 = vmul.f32 %v3434_v51, %v5628_v2 }
 0x963   : > { %v4714_v28 = vpop.f32.mrf.mxu1 }
 0x964   : > { %v3441_v13 = vmax.f32 %v3425_v54, 0.0 }
 0x966   : > { %v3455_v33 = vmul.f32 %v3441_v13, %v5628_v2 }
 0x968   : > { %v3462_v16 = vpack.c.bf16 %v3455_v33, %v3448_v8 }
 0x96a   : > { %3482 = vrot.lane.b32.xlu1 %v3462_v16, %s4860_s21  ;;  %v3746_v16 = vld [vmem:[%s7349_s11 + $0x8] sm:$0xff] }
 0x96e   : > { %3478 = vrot.lane.b32.xlu1 %v3460_v19, %s4860_s21 }
 0x989   : > { %v6724_v44 = vpop.permute.xlu1 %3470 }
 0x98a   : > { %v3497_v49 = vsel %vm7555_vm6, 0, %v6724_v44  ;;  %vm7566_vm6 = vcmask 523264  }
 0x98b   : > { %3653 = vrot.lane.b32.xlu1 %v3497_v49, %s4861_s22  ;;  %3683 = vrot.lane.b32.xlu0 %v3497_v49, %s4866_s27  ;;  %v3473_v20 = vpop.permute.xlu0 %3472 }
 0x98c   : > { %v6736_v60 = vsel %vm7557_vm15, %v6724_v44, %v3473_v20  ;;  %vm7567_vm15 = vmmov %vm7566_vm6 }
 0x98f   : > { %3593 = vrot.lane.b32.xlu1 %v3497_v49, %s7452_s18  ;;  %3623 = vrot.lane.b32.xlu0 %v3497_v49, %s7556_s24 }
 0x993   : > { %3533 = vrot.lane.b32.xlu1 %v3497_v49, %s7453_s19  ;;  %3563 = vrot.lane.b32.xlu0 %v3497_v49, %s7380_s17 }
 0x997   : > { %3503 = vrot.lane.b32.xlu0 %v3497_v49, %s7415_s28  ;;  %3655 = vrot.lane.b32.xlu1 %v6736_v60, %s4861_s22 }
 0x99b   : > { %3595 = vrot.lane.b32.xlu1 %v6736_v60, %s7452_s18  ;;  %3685 = vrot.lane.b32.xlu0 %v6736_v60, %s4866_s27 }
 0x99f   : > { %3535 = vrot.lane.b32.xlu1 %v6736_v60, %s7453_s19  ;;  %3625 = vrot.lane.b32.xlu0 %v6736_v60, %s7556_s24 }
 0x9a3   : > { %3715 = vrot.lane.b32.xlu1 %v6736_v60, %s7414_s23  ;;  %3565 = vrot.lane.b32.xlu0 %v6736_v60, %s7380_s17 }
 0x9a7   : > { %3505 = vrot.lane.b32.xlu0 %v6736_v60, %s7415_s28 }
 0x9b0   : > { %v3475_v23 = vpop.permute.xlu1 %3474 }
 0x9b1   : > { %v6756_v12 = vsel %vm7558_vm10, %v3473_v20, %v3475_v23  ;;  %vm7568_vm10 = vcmask 1039360  }
 0x9b2   : > { %3657 = vrot.lane.b32.xlu0 %v6756_v12, %s4861_s22  ;;  %3687 = vrot.lane.b32.xlu1 %v6756_v12, %s4866_s27  ;;  %v3477_v45 = vpop.permute.xlu0 %3476 }
 0x9b3   : > { %v6771_v31 = vsel %vm7559_vm11, %v3475_v23, %v3477_v45  ;;  %v3745_v23 = vld [vmem:[%s7349_s11] sm:$0xff]  ;;  %vm7569_vm11 = vmmov %vm7568_vm10 }
 0x9b6   : > { %3597 = vrot.lane.b32.xlu0 %v6756_v12, %s7452_s18  ;;  %3627 = vrot.lane.b32.xlu1 %v6756_v12, %s7556_s24 }
 0x9ba   : > { %3537 = vrot.lane.b32.xlu0 %v6756_v12, %s7453_s19  ;;  %3567 = vrot.lane.b32.xlu1 %v6756_v12, %s7380_s17 }
 0x9be   : > { %3659 = vrot.lane.b32.xlu0 %v6771_v31, %s4861_s22  ;;  %3507 = vrot.lane.b32.xlu1 %v6756_v12, %s7415_s28 }
 0x9c2   : > { %3599 = vrot.lane.b32.xlu0 %v6771_v31, %s7452_s18  ;;  %3689 = vrot.lane.b32.xlu1 %v6771_v31, %s4866_s27 }
 0x9c6   : > { %3539 = vrot.lane.b32.xlu0 %v6771_v31, %s7453_s19  ;;  %3629 = vrot.lane.b32.xlu1 %v6771_v31, %s7556_s24 }
 0x9ca   : > { %3569 = vrot.lane.b32.xlu1 %v6771_v31, %s7380_s17 }
 0x9ce   : > { %3509 = vrot.lane.b32.xlu1 %v6771_v31, %s7415_s28 }
 0x9cf   : > { %v3481_v10 = vpop.permute.xlu0 %3480 }
 0x9dc   : > { %v3483_v14 = vpop.permute.xlu1 %3482 }
 0x9dd   : > { %v3500_v40 = vsel %vm7561_vm14, %v3483_v14, 0  ;;  %v6829_v17 = vsel %vm7562_vm4, %v3481_v10, %v3483_v14  ;;  %vm7571_vm14 = vmmov %vm7564_vm1 }
 0x9de   : > { %vm7572_vm4 = vmmov %vm7566_vm6 }
 0x9e0   : > { %v3479_v27 = vpop.permute.xlu1 %3478 }
 0x9e1   : > { %v6799_v59 = vsel %vm7560_vm7, %v3477_v45, %v3479_v27  ;;  %v6835_v6 = vsel %vm7563_vm2, %v3479_v27, %v3481_v10  ;;  %vm7570_vm7 = vmmov %vm7564_vm1  ;;  %vm7573_vm2 = vcmask 506880  }
 0x9e2   : > { %3661 = vrot.lane.b32.xlu1 %v6799_v59, %s4861_s22  ;;  %3691 = vrot.lane.b32.xlu0 %v6799_v59, %s4866_s27 }
 0x9e6   : > { %3713 = vrot.lane.b32.xlu1 %v3497_v49, %s7414_s23  ;;  %3717 = vrot.lane.b32.xlu0 %v6756_v12, %s7414_s23 }
 0x9ea   : > { %3601 = vrot.lane.b32.xlu1 %v6799_v59, %s7452_s18  ;;  %3631 = vrot.lane.b32.xlu0 %v6799_v59, %s7556_s24 }
 0x9ee   : > { %3667 = vrot.lane.b32.xlu1 %v3500_v40, %s4861_s22  ;;  %3719 = vrot.lane.b32.xlu0 %v6771_v31, %s7414_s23 }
 0x9f2   : > { %3541 = vrot.lane.b32.xlu1 %v6799_v59, %s7453_s19  ;;  %3571 = vrot.lane.b32.xlu0 %v6799_v59, %s7380_s17 }
 0x9f6   : > { %3607 = vrot.lane.b32.xlu1 %v3500_v40, %s7452_s18  ;;  %3697 = vrot.lane.b32.xlu0 %v3500_v40, %s4866_s27 }
 0x9fa   : > { %3547 = vrot.lane.b32.xlu1 %v3500_v40, %s7453_s19  ;;  %3511 = vrot.lane.b32.xlu0 %v6799_v59, %s7415_s28 }
 0x9fd   : > { %v3684_v38 = vpop.permute.xlu0 %3683  ;;  %v3654_v39 = vpop.permute.xlu1 %3653 }
 0x9fe   : > { %3721 = vrot.lane.b32.xlu1 %v6799_v59, %s7414_s23  ;;  %3637 = vrot.lane.b32.xlu0 %v3500_v40, %s7556_s24 }
 0xa01   : > { %v3624_v46 = vpop.permute.xlu0 %3623  ;;  %v3594_v32 = vpop.permute.xlu1 %3593 }
 0xa02   : > { %3695 = vrot.lane.b32.xlu1 %v6829_v17, %s4866_s27  ;;  %3577 = vrot.lane.b32.xlu0 %v3500_v40, %s7380_s17 }
 0xa05   : > { %v3564_v21 = vpop.permute.xlu0 %3563  ;;  %v3534_v5 = vpop.permute.xlu1 %3533 }
 0xa06   : > { %3663 = vrot.lane.b32.xlu1 %v6835_v6, %s4861_s22  ;;  %3693 = vrot.lane.b32.xlu0 %v6835_v6, %s4866_s27 }
 0xa09   : > { %v6841_v51 = vpop.permute.xlu0 %3503  ;;  %v3656_v54 = vpop.permute.xlu1 %3655 }
 0xa0a   : > { %3635 = vrot.lane.b32.xlu1 %v6829_v17, %s7556_s24  ;;  %3665 = vrot.lane.b32.xlu0 %v6829_v17, %s4861_s22  ;;  %v3669_v27 = vsel %vm7567_vm15, %v3654_v39, %v3656_v54 }
 0xa0d   : > { %v3686_v28 = vpop.permute.xlu0 %3685  ;;  %v3596_v7 = vpop.permute.xlu1 %3595 }
 0xa0e   : > { %3603 = vrot.lane.b32.xlu1 %v6835_v6, %s7452_s18  ;;  %3633 = vrot.lane.b32.xlu0 %v6835_v6, %s7556_s24  ;;  %v3699_v20 = vsel %vm7565_vm13, %v3684_v38, %v3686_v28  ;;  %vm7575_vm13 = vmmov %vm7572_vm4 }
 0xa11   : > { %v3626_v13 = vpop.permute.xlu0 %3625  ;;  %v3536_v42 = vpop.permute.xlu1 %3535 }
 0xa12   : > { %3575 = vrot.lane.b32.xlu1 %v6829_v17, %s7380_s17  ;;  %3605 = vrot.lane.b32.xlu0 %v6829_v17, %s7452_s18 }
 0xa15   : > { %v3566_v8 = vpop.permute.xlu0 %3565  ;;  %v6867_v33 = vpop.permute.xlu1 %3715 }
 0xa16   : > { %3543 = vrot.lane.b32.xlu1 %v6835_v6, %s7453_s19  ;;  %3573 = vrot.lane.b32.xlu0 %v6835_v6, %s7380_s17 }
 0xa19   : > { %v3506_v41 = vpop.permute.xlu0 %3505 }
 0xa1a   : > { %3515 = vrot.lane.b32.xlu1 %v6829_v17, %s7415_s28  ;;  %3545 = vrot.lane.b32.xlu0 %v6829_v17, %s7453_s19 }
 0xa1e   : > { %3723 = vrot.lane.b32.xlu1 %v6835_v6, %s7414_s23  ;;  %3513 = vrot.lane.b32.xlu0 %v6835_v6, %s7415_s28 }
 0xa22   : > { %3727 = vrot.lane.b32.xlu1 %v3500_v40, %s7414_s23  ;;  %3517 = vrot.lane.b32.xlu0 %v3500_v40, %s7415_s28 }
 0xa24   : > { %v3688_v47 = vpop.permute.xlu1 %3687  ;;  %v3658_v19 = vpop.permute.xlu0 %3657 }
 0xa25   : > { %v3700_v49 = vsel %vm7564_vm1, %v3686_v28, %v3688_v47  ;;  %v3670_v45 = vsel %vm7566_vm6, %v3656_v54, %v3658_v19  ;;  %v3579_v54 = vsel %vm751_vm12, %v3564_v21, %v3566_v8  ;;  %vm7574_vm1 = vmmov %vm7573_vm2 }
 0xa26   : > { %3754 = vperm.xlu1 %4770, %v3746_v16   ;;  %3725 = vrot.lane.b32.xlu0 %v6829_v17, %s7414_s23  ;;  %v3639_v16 = vsel %vm846_vm5, %v3624_v46, %v3626_v13  ;;  %vm7576_vm6 = vmmov %vm7568_vm10 }
 0xa27   : > { %3769 = vmatprep.subr.bf16.mxu0 %v3700_v49  ;;  %v3609_v49 = vsel %vm790_vm9, %v3594_v32, %v3596_v7  ;;  %vm7577_vm15 = vmmov %vm7576_vm6 }
 0xa28   : > { %3770 = vmatpush1.bf16.msra.mxu0 %v3699_v20  ;;  %v3628_v14 = vpop.permute.xlu1 %3627  ;;  %v3598_v10 = vpop.permute.xlu0 %3597 }
 0xa29   : > { %3771 = vmatprep.subr.bf16.mxu0 %v3670_v45  ;;  %v3640_v40 = vsel %vm846_vm5, %v3626_v13, %v3628_v14  ;;  %v3610_v38 = vsel %vm790_vm9, %v3596_v7, %v3598_v10  ;;  %v3549_v13 = vsel %vm703_vm0, %v3534_v5, %v3536_v42  ;;  %v3519_v45 = vsel %vm7569_vm11, %v6841_v51, %v3506_v41  ;;  %vm7579_vm11 = vmmov %vm7574_vm1 }
 0xa2a   : > { %3749 = vperm.xlu0 %4769, %v3745_v23  }
 0xa2c   : > { %3772 = vmatpush1.bf16.msra.mxu0 %v3669_v27  ;;  %v6886_v28 = vpop.permute.xlu1 %3567  ;;  %v6891_v39 = vpop.permute.xlu0 %3537 }
 0xa2d   : > { %3773 = vmatprep.subr.bf16.mxu0 %v3640_v40  ;;  %v3580_v20 = vsel %vm751_vm12, %v3566_v8, %v6886_v28  ;;  %v3550_v46 = vsel %vm703_vm0, %v3536_v42, %v6891_v39 }
 0xa30   : > { %3774 = vmatpush1.bf16.msra.mxu0 %v3639_v16  ;;  %v6894_v23 = vpop.permute.xlu1 %3507  ;;  %v3660_v21 = vpop.permute.xlu0 %3659 }
 0xa31   : > { %3775 = vmatprep.subr.bf16.mxu0 %v3610_v38  ;;  %v3520_v32 = vsel %vm7568_vm10, %v3506_v41, %v6894_v23  ;;  %vm7578_vm10 = vmmov %vm7574_vm1 }
 0xa34   : > { %3776 = vmatpush1.bf16.msra.mxu0 %v3609_v49  ;;  %v3690_v7 = vpop.permute.xlu1 %3689  ;;  %v3600_v27 = vpop.permute.xlu0 %3599 }
 0xa35   : > { %3777 = vmatprep.subr.bf16.mxu0 %v3580_v20 }
 0xa38   : > { %3778 = vmatpush1.bf16.msra.mxu0 %v3579_v54  ;;  %v3630_v8 = vpop.permute.xlu1 %3629  ;;  %v3540_v42 = vpop.permute.xlu0 %3539 }
 0xa39   : > { %3779 = vmatprep.subr.bf16.mxu0 %v3550_v46  ;;  %v3671_v46 = vsel %vm7575_vm13, %v3658_v19, %v3660_v21 }
 0xa3c   : > { %3780 = vmatpush1.bf16.msra.mxu0 %v3549_v13  ;;  %v3570_v5 = vpop.permute.xlu1 %3569 }
 0xa3d   : > { %3781 = vmatprep.subr.bf16.mxu0 %v3520_v32 }
 0xa40   : > { %3782 = vmatpush1.bf16.msra.mxu0 %v3519_v45  ;;  %v3510_v40 = vpop.permute.xlu1 %3509 }
 0xa41   : > { %3783 = vmatprep.subr.bf16.mxu0 %v6736_v60  ;;  %v3701_v60 = vsel %vm7571_vm14, %v3688_v47, %v3690_v7  ;;  %v6924_v47 = vld [vmem:[%s7348_s10] ss:$8 sps:$4 sm:$0xff]   ;;  %vm7580_vm14 = vmmov %vm7570_vm7 }
 0xa44   : > { %4665 = vmatpush1.bf16.msk.msra.mxu0 %vm5855_vm3, %v6724_v44 }
 0xa54   : > { %v6907_v16 = vpop.permute.xlu0 %3691  ;;  %v6909_v38 = vpop.permute.xlu1 %3661 }
 0xa55   : > { %v3702_v51 = vsel %vm7570_vm7, %v3690_v7, %v6907_v16  ;;  %v3672_v41 = vsel %vm7572_vm4, %v3660_v21, %v6909_v38  ;;  %vm7581_vm4 = vmmov %vm7570_vm7 }
 0xa56   : > { %3812 = vmatprep.subr.bf16.mxu1 %v3702_v51  ;;  %v3611_v51 = vsel %vm790_vm9, %v3598_v10, %v3600_v27  ;;  %v3551_v10 = vsel %vm703_vm0, %v6891_v39, %v3540_v42 }
 0xa57   : > { %3813 = vmatpush1.bf16.msra.mxu1 %v3701_v60 }
 0xa58   : > { %v3718_v49 = vpop.permute.xlu0 %3717  ;;  %3814 = vmatprep.subr.bf16.mxu1 %v3672_v41  ;;  %v3714_v44 = vpop.permute.xlu1 %3713 }
 0xa59   : > { %v3729_v20 = vsel %vm7573_vm2, %v3714_v44, %v6867_v33  ;;  %v3730_v54 = vsel %vm7574_vm1, %v6867_v33, %v3718_v49  ;;  %v3641_v33 = vsel %vm846_vm5, %v3628_v14, %v3630_v8  ;;  %vm7582_vm2 = vmmov %vm7575_vm13 }
 0xa5a   : > { %3799 = vmatprep.subr.bf16.mxu0 %v3730_v54  ;;  %vm7583_vm1 = vmmov %vm7582_vm2 }
 0xa5b   : > { %3800 = vmatpush2.bf16.msra.mxu0 %v3729_v20  ;;  %3815 = vmatpush1.bf16.msra.mxu1 %v3671_v46  ;;  %vm7584_vm13 = vmmov %vm7583_vm1 }
 0xa5c   : > { %v6926_v13 = vpop.permute.xlu0 %3631  ;;  %v6928_v32 = vpop.permute.xlu1 %3601 }
 0xa5d   : > { %v3642_v7 = vsel %vm846_vm5, %v3630_v8, %v6926_v13  ;;  %v3612_v19 = vsel %vm790_vm9, %v3600_v27, %v6928_v32  ;;  %v3581_v8 = vsel %vm751_vm12, %v6886_v28, %v3570_v5  ;;  %v3521_v28 = vsel %vm7577_vm15, %v6894_v23, %v3510_v40  ;;  %vm7585_vm15 = vmmov %vm7576_vm6 }
 0xa5e   : > { %3802 = vmatmul.mubr.bf16.vlgmr.msra.gmra.mxu0 %v6924_v47  ;;  %3816 = vmatprep.subr.bf16.mxu1 %v3642_v7 }
 0xa5f   : > { %3817 = vmatpush1.bf16.msra.mxu1 %v3641_v33  ;;  %4668 = vmatprep.mubr.msk.bf16.mxu0 %vm1720_vm8, %v6792_v50 }
 0xa60   : > { %v3720_v45 = vpop.permute.xlu0 %3719  ;;  %3818 = vmatprep.subr.bf16.mxu1 %v3612_v19  ;;  %v3668_v21 = vpop.permute.xlu1 %3667 }
 0xa63   : > { %3819 = vmatpush1.bf16.msra.mxu1 %v3611_v51  ;;  %v3731_v51 = vsel %vm7579_vm11, %v3718_v49, %v3720_v45 }
 0xa64   : > { %v6939_v60 = vpop.permute.xlu0 %3571  ;;  %v6941_v41 = vpop.permute.xlu1 %3541 }
 0xa65   : > { %v3582_v14 = vsel %vm751_vm12, %v3570_v5, %v6939_v60  ;;  %v3552_v44 = vsel %vm703_vm0, %v3540_v42, %v6941_v41 }
 0xa66   : > { %3820 = vmatprep.subr.bf16.mxu1 %v3582_v14 }
 0xa67   : > { %3821 = vmatpush1.bf16.msra.mxu1 %v3581_v8 }
 0xa68   : > { %v3698_v20 = vpop.permute.xlu0 %3697  ;;  %3822 = vmatprep.subr.bf16.mxu1 %v3552_v44  ;;  %v3608_v54 = vpop.permute.xlu1 %3607 }
 0xa6b   : > { %3823 = vmatpush1.bf16.msra.mxu1 %v3551_v10 }
 0xa6c   : > { %v6951_v27 = vpop.permute.xlu0 %3511  ;;  %v6953_v46 = vpop.permute.xlu1 %3547 }
 0xa6d   : > { %v3522_v7 = vsel %vm7576_vm6, %v3510_v40, %v6951_v27 }
 0xa6e   : > { %3824 = vmatprep.subr.bf16.mxu1 %v3522_v7 }
 0xa6f   : > { %3825 = vmatpush1.bf16.msra.mxu1 %v3521_v28 }
 0xa70   : > { %v3638_v5 = vpop.permute.xlu0 %3637  ;;  %3826 = vmatprep.subr.bf16.mxu1 %v6771_v31  ;;  %v6960_v33 = vpop.permute.xlu1 %3721 }
 0xa71   : > { %v3732_v39 = vsel %vm7578_vm10, %v3720_v45, %v6960_v33  ;;  %vm7586_vm10 = vmmov %vm7576_vm6 }
 0xa73   : > { %3827 = vmatpush1.bf16.msra.mxu1 %v6756_v12 }
 0xa74   : > { %v3578_v42 = vpop.permute.xlu0 %3577  ;;  %3842 = vmatprep.subr.bf16.mxu1 %v3732_v39  ;;  %v3696_v19 = vpop.permute.xlu1 %3695 }
 0xa75   : > { %v3705_v12 = vsel %vm7581_vm4, %v3696_v19, %v3698_v20  ;;  %vm7589_vm4 = vcmask 269312  }
 0xa77   : > { %3843 = vmatpush2.bf16.msra.mxu1 %v3731_v51 }
 0xa78   : > { %v3694_v14 = vpop.permute.xlu0 %3693  ;;  %v3664_v8 = vpop.permute.xlu1 %3663  ;;  %3898 = vmatprep.subr.bf16.mxu1 %v7513_v63 }
 0xa79   : > { %v3703_v31 = vsel %vm7570_vm7, %v6907_v16, %v3694_v14  ;;  %v3704_v23 = vsel %vm7580_vm14, %v3694_v14, %v3696_v19  ;;  %v3673_v45 = vsel %vm7584_vm13, %v6909_v38, %v3664_v8  ;;  %vm7587_vm7 = vmmov %vm7579_vm11 }
 0xa7a   : > { %3845 = vmatmul.mubr.bf16.vlgmr.msra.gmra.mxu1 %v6924_v47  ;;  %3855 = vmatprep.subr.bf16.mxu0 %v3704_v23  ;;  %vm7588_vm14 = vmmov %vm7587_vm7 }
 0xa7b   : > { %3856 = vmatpush1.bf16.msra.mxu0 %v3703_v31  ;;  %3899 = vmatpush1.bf16.msra.mxu1 %v3705_v12 }
 0xa7c   : > { %v3666_v40 = vpop.permute.xlu0 %3665  ;;  %v3636_v44 = vpop.permute.xlu1 %3635  ;;  %3900 = vmatprep.subr.bf16.mxu1 %v7513_v63  ;;  %4669 = vmatprep.mubr.msk.bf16.mxu1 %vm1720_vm8, %v6792_v50 }
 0xa7d   : > { %v3675_v49 = vsel %vm7582_vm2, %v3666_v40, %v3668_v21  ;;  %v3674_v16 = vsel %vm7583_vm1, %v3664_v8, %v3666_v40  ;;  %v3645_v50 = vsel %vm846_vm5, %v3636_v44, %v3638_v5  ;;  %vm7591_vm2 = vmmov %vm7589_vm4 }
 0xa7e   : > { %3857 = vmatprep.subr.bf16.mxu0 %v3674_v16  ;;  %vm7592_vm1 = vmmov %vm7591_vm2 }
 0xa7f   : > { %3858 = vmatpush1.bf16.msra.mxu0 %v3673_v45  ;;  %3901 = vmatpush1.bf16.msra.mxu1 %v3675_v49  ;;  %vm7593_vm13 = vmmov %vm7592_vm1 }
 0xa80   : > { %v3634_v20 = vpop.permute.xlu0 %3633  ;;  %v3604_v10 = vpop.permute.xlu1 %3603  ;;  %3902 = vmatprep.subr.bf16.mxu1 %v7513_v63 }
 0xa81   : > { %v3643_v7 = vsel %vm846_vm5, %v6926_v13, %v3634_v20  ;;  %v3644_v28 = vsel %vm846_vm5, %v3634_v20, %v3636_v44  ;;  %v3613_v51 = vsel %vm790_vm9, %v6928_v32, %v3604_v10 }
 0xa82   : > { %3859 = vmatprep.subr.bf16.mxu0 %v3644_v28 }
 0xa83   : > { %3860 = vmatpush1.bf16.msra.mxu0 %v3643_v7  ;;  %3903 = vmatpush1.bf16.msra.mxu1 %v3645_v50 }
 0xa84   : > { %v3606_v21 = vpop.permute.xlu0 %3605  ;;  %v3576_v39 = vpop.permute.xlu1 %3575  ;;  %3904 = vmatprep.subr.bf16.mxu1 %v7513_v63 }
 0xa85   : > { %v3615_v38 = vsel %vm790_vm9, %v3606_v21, %v3608_v54  ;;  %v3614_v19 = vsel %vm790_vm9, %v3604_v10, %v3606_v21  ;;  %v3585_v54 = vsel %vm751_vm12, %v3576_v39, %v3578_v42 }
 0xa86   : > { %3861 = vmatprep.subr.bf16.mxu0 %v3614_v19 }
 0xa87   : > { %3862 = vmatpush1.bf16.msra.mxu0 %v3613_v51  ;;  %3905 = vmatpush1.bf16.msra.mxu1 %v3615_v38 }
 0xa88   : > { %v3574_v13 = vpop.permute.xlu0 %3573  ;;  %3906 = vmatprep.subr.bf16.mxu1 %v7513_v63  ;;  %v3544_v8 = vpop.permute.xlu1 %3543 }
 0xa89   : > { %v3583_v5 = vsel %vm751_vm12, %v6939_v60, %v3574_v13  ;;  %v3584_v14 = vsel %vm751_vm12, %v3574_v13, %v3576_v39  ;;  %v3553_v60 = vsel %vm703_vm0, %v6941_v41, %v3544_v8 }
 0xa8a   : > { %3863 = vmatprep.subr.bf16.mxu0 %v3584_v14 }
 0xa8b   : > { %3864 = vmatpush1.bf16.msra.mxu0 %v3583_v5  ;;  %3907 = vmatpush1.bf16.msra.mxu1 %v3585_v54 }
 0xa8c   : > { %v3546_v31 = vpop.permute.xlu0 %3545  ;;  %3908 = vmatprep.subr.bf16.mxu1 %v7513_v63  ;;  %v3516_v12 = vpop.permute.xlu1 %3515 }
 0xa8d   : > { %v3555_v32 = vsel %vm703_vm0, %v3546_v31, %v6953_v46  ;;  %v3554_v23 = vsel %vm703_vm0, %v3544_v8, %v3546_v31 }
 0xa8e   : > { %3865 = vmatprep.subr.bf16.mxu0 %v3554_v23 }
 0xa8f   : > { %3866 = vmatpush1.bf16.msra.mxu0 %v3553_v60  ;;  %3909 = vmatpush1.bf16.msra.mxu1 %v3555_v32 }
 0xa90   : > { %v3514_v40 = vpop.permute.xlu0 %3513  ;;  %3910 = vmatprep.subr.bf16.mxu1 %v7513_v63  ;;  %v3724_v16 = vpop.permute.xlu1 %3723 }
 0xa91   : > { %v3523_v42 = vsel %vm7576_vm6, %v6951_v27, %v3514_v40  ;;  %v3524_v44 = vsel %vm7585_vm15, %v3514_v40, %v3516_v12  ;;  %v3733_v27 = vsel %vm7587_vm7, %v6960_v33, %v3724_v16  ;;  %vm7594_vm6 = vmmov %vm7592_vm1 }
 0xa92   : > { %3867 = vmatprep.subr.bf16.mxu0 %v3524_v44  ;;  %vm7595_vm15 = vmmov %vm7592_vm1 }
 0xa93   : > { %3868 = vmatpush1.bf16.msra.mxu0 %v3523_v42 }
 0xa94   : > { %v3518_v46 = vpop.permute.xlu0 %3517  ;;  %3869 = vmatprep.subr.bf16.mxu0 %v6835_v6  ;;  %v3728_v6 = vpop.permute.xlu1 %3727 }
 0xa95   : > { %v3525_v49 = vsel %vm7586_vm10, %v3516_v12, %v3518_v46  ;;  %vm7596_vm10 = vmmov %vm7592_vm1 }
 0xa96   : > { %3911 = vmatpush1.bf16.msra.mxu1 %v3525_v49 }
 0xa97   : > { %3870 = vmatpush1.bf16.msra.mxu0 %v6799_v59  ;;  %3912 = vmatprep.subr.bf16.mxu1 %v7513_v63 }
 0xa98   : > { %v3726_v41 = vpop.permute.xlu0 %3725 }
 0xa99   : > { %v3734_v45 = vsel %vm7579_vm11, %v3724_v16, %v3726_v41  ;;  %v3735_v20 = vsel %vm7588_vm14, %v3726_v41, %v3728_v6  ;;  %vm7597_vm11 = vcmask 515072   ;;  %vm7599_vm14 = vcmask 523264  }
 0xa9a   : > { %3885 = vmatprep.subr.bf16.mxu0 %v3734_v45  ;;  %3913 = vmatpush1.bf16.msra.mxu1 %v6829_v17  ;;  %vm7598_vm7 = vmmov %vm7597_vm11 }
 0xa9b   : > { %3886 = vmatpush2.bf16.msra.mxu0 %v3733_v27  ;;  %3928 = vmatprep.subr.bf16.mxu1 %v7513_v63 }
 0xa9e   : > { %3888 = vmatmul.mubr.bf16.vlgmr.msra.gmra.mxu0 %v6924_v47  ;;  %3929 = vmatpush2.bf16.msra.mxu1 %v3735_v20 }
 0xaa1   : > { %3931 = vmatmul.mubr.bf16.vlgmr.msra.gmra.mxu1 %v6924_v47  ;;  %v3755_v33 = vpop.permute.xlu1 %3754 }
 0xaa5   : > { %v3750_v59 = vpop.permute.xlu0 %3749 }
 0xb1e   : > { %v3803_v10 = vpop.f32.mrf.mxu0 }
 0xb1f   : > { %v3804_v7 = vadd.f32 %v3803_v10, %v3750_v59 }
 0xb20   : > { %v3805_v28 = vpop.f32.mrf.mxu0 }
 0xb21   : > { %v3806_v50 = vadd.f32 %v3805_v28, %v3750_v59  ;;  %v3939_v39 = vmax.f32 %v3804_v7, 0.0 }
 0xb22   : > { %v3807_v21 = vpop.f32.mrf.mxu0 }
 0xb23   : > { %v3808_v17 = vadd.f32 %v3807_v21, %v3755_v33  ;;  %v3940_v19 = vmax.f32 %v3806_v50, 0.0  ;;  %v3953_v13 = vmul.f32 %v3939_v39, %v5578_v29 }
 0xb24   : > { %v3809_v38 = vpop.f32.mrf.mxu0 }
 0xb25   : > { %v3946_v63 = vmax.f32 %v3808_v17, 0.0  ;;  %v3810_v51 = vadd.f32 %v3809_v38, %v3755_v33  ;;  %v3954_v47 = vmul.f32 %v3940_v19, %v5583_v53 }
 0xb27   : > { %v3960_v5 = vmul.f32 %v3946_v63, %v5578_v29  ;;  %v3947_v14 = vmax.f32 %v3810_v51, 0.0 }
 0xb29   : > { %v3967_v8 = vpack.c.bf16 %v3960_v5, %v3953_v13  ;;  %v3961_v54 = vmul.f32 %v3947_v14, %v5583_v53 }
 0xb2b   : > { %v3968_v31 = vpack.c.bf16 %v3961_v54, %v3954_v47  ;;  %3981 = vrot.lane.b32.xlu0 %v3967_v8, %s4860_s21 }
 0xb2d   : > { %3983 = vrot.lane.b32.xlu1 %v3968_v31, %s4860_s21 }
 0xb3a   : > { %v3846_v32 = vpop.f32.mrf.mxu1 }
 0xb3b   : > { %v3847_v23 = vadd.f32 %v3846_v32, %v3750_v59 }
 0xb3c   : > { %v3848_v60 = vpop.f32.mrf.mxu1 }
 0xb3d   : > { %v3849_v12 = vadd.f32 %v3848_v60, %v3750_v59  ;;  %v3941_v42 = vmax.f32 %v3847_v23, 0.0 }
 0xb3e   : > { %v3850_v40 = vpop.f32.mrf.mxu1 }
 0xb3f   : > { %v3851_v44 = vadd.f32 %v3850_v40, %v3755_v33  ;;  %v3942_v29 = vmax.f32 %v3849_v12, 0.0  ;;  %v3955_v41 = vmul.f32 %v3941_v42, %v5595_v0 }
 0xb40   : > { %v3852_v46 = vpop.f32.mrf.mxu1 }
 0xb41   : > { %v3948_v49 = vmax.f32 %v3851_v44, 0.0  ;;  %v3853_v16 = vadd.f32 %v3852_v46, %v3755_v33  ;;  %v3956_v27 = vmul.f32 %v3942_v29, %v5619_v26 }
 0xb43   : > { %v3962_v53 = vmul.f32 %v3948_v49, %v5595_v0  ;;  %v3949_v45 = vmax.f32 %v3853_v16, 0.0 }
 0xb45   : > { %v3969_v6 = vpack.c.bf16 %v3962_v53, %v3955_v41  ;;  %v3963_v20 = vmul.f32 %v3949_v45, %v5619_v26  ;;  %v7098_v45 = vld.sshfl [vmem:[%s7350_s12] sm:$0x33 pattern:$0x76325410] }
 0xb47   : > { %v3970_v10 = vpack.c.bf16 %v3963_v20, %v3956_v27  ;;  %3985 = vrot.lane.b32.xlu0 %v3969_v6, %s4860_s21  ;;  %v7104_v27 = vcombine.high %v7098_v45, %v7098_v45 }
 0xb49   : > { %3987 = vrot.lane.b32.xlu1 %v3970_v10, %s4860_s21  ;;  %4673 = vmatprep.mubr.msk.bf16.mxu0 %vm1720_vm8, %v7104_v27 }
 0xb4a   : > { %4674 = vmatprep.mubr.msk.bf16.mxu1 %vm1720_vm8, %v7104_v27 }
 0xb5e   : > { %v3889_v7 = vpop.f32.mrf.mxu0 }
 0xb5f   : > { %v3890_v28 = vadd.f32 %v3889_v7, %v3750_v59 }
 0xb60   : > { %v3891_v50 = vpop.f32.mrf.mxu0 }
 0xb61   : > { %v3892_v21 = vadd.f32 %v3891_v50, %v3750_v59  ;;  %v3932_v39 = vpop.f32.mrf.mxu1  ;;  %v3943_v19 = vmax.f32 %v3890_v28, 0.0 }
 0xb62   : > { %v3933_v17 = vadd.f32 %v3932_v39, %v3750_v59  ;;  %v3893_v38 = vpop.f32.mrf.mxu0 }
 0xb63   : > { %v3894_v0 = vadd.f32 %v3893_v38, %v3755_v33  ;;  %v3934_v63 = vpop.f32.mrf.mxu1  ;;  %v3944_v13 = vmax.f32 %v3892_v21, 0.0  ;;  %v3957_v54 = vmul.f32 %v3943_v19, %v5607_v55  ;;  %v4219_v21 = vld [vmem:[%s7351_s13] sm:$0x7] }
 0xb64   : > { %v3895_v51 = vpop.f32.mrf.mxu0  ;;  %v3945_v47 = vmax.f32 %v3933_v17, 0.0 }
 0xb65   : > { %v3950_v5 = vmax.f32 %v3894_v0, 0.0  ;;  %v3896_v14 = vadd.f32 %v3895_v51, %v3755_v33  ;;  %v3935_v26 = vpop.f32.mrf.mxu1  ;;  %v3958_v59 = vmul.f32 %v3944_v13, %v5612_v11 }
 0xb66   : > { %v3936_v8 = vadd.f32 %v3935_v26, %v3755_v33  ;;  %v3959_v42 = vmul.f32 %v3945_v47, %v5628_v2 }
 0xb67   : > { %v3964_v31 = vmul.f32 %v3950_v5, %v5607_v55  ;;  %v3951_v32 = vmax.f32 %v3896_v14, 0.0  ;;  %v3937_v23 = vpop.f32.mrf.mxu1 }
 0xb68   : > { %v3952_v60 = vmax.f32 %v3936_v8, 0.0 }
 0xb69   : > { %v3971_v12 = vpack.c.bf16 %v3964_v31, %v3957_v54  ;;  %v3965_v40 = vmul.f32 %v3951_v32, %v5612_v11 }
 0xb6a   : > { %v3966_v44 = vmul.f32 %v3952_v60, %v5628_v2 }
 0xb6b   : > { %v3972_v46 = vpack.c.bf16 %v3965_v40, %v3958_v59  ;;  %3989 = vrot.lane.b32.xlu0 %v3971_v12, %s4860_s21 }
 0xb6c   : > { %v3973_v33 = vpack.c.bf16 %v3966_v44, %v3959_v42 }
 0xb6d   : > { %3991 = vrot.lane.b32.xlu1 %v3972_v46, %s4860_s21 }
 0xb6f   : > { %3993 = vrot.lane.b32.xlu0 %v3973_v33, %s4860_s21 }
 0xb9d   : > { %v7037_v55 = vpop.permute.xlu0 %3981 }
 0xb9e   : > { %v4007_v29 = vsel %vm7589_vm4, 0, %v7037_v55  ;;  %vm7600_vm4 = vmmov %vm7599_vm14 }
 0xb9f   : > { %4140 = vrot.lane.b32.xlu0 %v4007_v29, %s4861_s22  ;;  %4166 = vrot.lane.b32.xlu1 %v4007_v29, %s4866_s27  ;;  %v3984_v11 = vpop.permute.xlu1 %3983 }
 0xba0   : > { %v7051_v2 = vsel %vm7591_vm2, %v7037_v55, %v3984_v11  ;;  %vm7601_vm2 = vcmask 64512  }
 0xba1   : > { %v2793_v33 = vsel %vm7601_vm2, %v6301_v36, 0.0 }
 0xba3   : > { %4088 = vrot.lane.b32.xlu0 %v4007_v29, %s7452_s18  ;;  %4114 = vrot.lane.b32.xlu1 %v4007_v29, %s7556_s24 }
 0xba7   : > { %4036 = vrot.lane.b32.xlu0 %v4007_v29, %s7453_s19  ;;  %4062 = vrot.lane.b32.xlu1 %v4007_v29, %s7590_s25 }
 0xbab   : > { %4192 = vrot.lane.b32.xlu0 %v4007_v29, %s7414_s23  ;;  %4010 = vrot.lane.b32.xlu1 %v4007_v29, %s7415_s28 }
 0xbaf   : > { %4142 = vrot.lane.b32.xlu0 %v7051_v2, %s4861_s22  ;;  %4168 = vrot.lane.b32.xlu1 %v7051_v2, %s4866_s27 }
 0xbb3   : > { %4090 = vrot.lane.b32.xlu0 %v7051_v2, %s7452_s18  ;;  %4116 = vrot.lane.b32.xlu1 %v7051_v2, %s7556_s24 }
 0xbb7   : > { %4038 = vrot.lane.b32.xlu0 %v7051_v2, %s7453_s19  ;;  %4064 = vrot.lane.b32.xlu1 %v7051_v2, %s7590_s25 }
 0xbb9   : > { %v3986_v49 = vpop.permute.xlu0 %3985 }
 0xbba   : > { %v7070_v16 = vsel %vm7592_vm1, %v3984_v11, %v3986_v49  ;;  %vm7602_vm1 = vcmask 1039360  }
 0xbbb   : > { %4194 = vrot.lane.b32.xlu0 %v7051_v2, %s7414_s23  ;;  %4012 = vrot.lane.b32.xlu1 %v7051_v2, %s7415_s28  ;;  %v3988_v41 = vpop.permute.xlu1 %3987 }
 0xbbc   : > { %v7089_v53 = vsel %vm7593_vm13, %v3986_v49, %v3988_v41  ;;  %vm7603_vm13 = vmmov %vm7602_vm1 }
 0xbbf   : > { %4144 = vrot.lane.b32.xlu1 %v7070_v16, %s4861_s22  ;;  %4170 = vrot.lane.b32.xlu0 %v7070_v16, %s4866_s27 }
 0xbc3   : > { %4092 = vrot.lane.b32.xlu1 %v7070_v16, %s7452_s18  ;;  %4118 = vrot.lane.b32.xlu0 %v7070_v16, %s7556_s24 }
 0xbc7   : > { %4040 = vrot.lane.b32.xlu1 %v7070_v16, %s7453_s19  ;;  %4066 = vrot.lane.b32.xlu0 %v7070_v16, %s7590_s25 }
 0xbcb   : > { %4196 = vrot.lane.b32.xlu1 %v7070_v16, %s7414_s23  ;;  %4014 = vrot.lane.b32.xlu0 %v7070_v16, %s7415_s28 }
 0xbcf   : > { %4172 = vrot.lane.b32.xlu1 %v7089_v53, %s4866_s27 }
 0xbd3   : > { %4146 = vrot.lane.b32.xlu1 %v7089_v53, %s4861_s22 }
 0xbd7   : > { %4120 = vrot.lane.b32.xlu1 %v7089_v53, %s7556_s24 }
 0xbdb   : > { %4094 = vrot.lane.b32.xlu1 %v7089_v53, %s7452_s18 }
 0xbdd   : > { %v3990_v6 = vpop.permute.xlu0 %3989 }
 0xbde   : > { %v7113_v20 = vsel %vm7594_vm6, %v3988_v41, %v3990_v6  ;;  %vm7604_vm6 = vcmask 506880  }
 0xbdf   : > { %4068 = vrot.lane.b32.xlu1 %v7089_v53, %s7590_s25  ;;  %4174 = vrot.lane.b32.xlu0 %v7113_v20, %s4866_s27  ;;  %v3992_v10 = vpop.permute.xlu1 %3991 }
 0xbe0   : > { %v7128_v7 = vsel %vm7595_vm15, %v3990_v6, %v3992_v10  ;;  %vm7605_vm15 = vmmov %vm7598_vm7 }
 0xbe1   : > { %v3994_v28 = vpop.permute.xlu0 %3993 }
 0xbe2   : > { %v4000_v50 = vsel %vm7596_vm10, %v3992_v10, %v3994_v28  ;;  %vm7606_vm10 = vmmov %vm7604_vm6 }
 0xbe3   : > { %4042 = vrot.lane.b32.xlu1 %v7089_v53, %s7453_s19  ;;  %4148 = vrot.lane.b32.xlu0 %v7113_v20, %s4861_s22 }
 0xbe7   : > { %4016 = vrot.lane.b32.xlu1 %v7089_v53, %s7415_s28  ;;  %4122 = vrot.lane.b32.xlu0 %v7113_v20, %s7556_s24 }
 0xbeb   : > { %4176 = vrot.lane.b32.xlu1 %v7128_v7, %s4866_s27  ;;  %4096 = vrot.lane.b32.xlu0 %v7113_v20, %s7452_s18 }
 0xbef   : > { %4150 = vrot.lane.b32.xlu1 %v7128_v7, %s4861_s22  ;;  %4070 = vrot.lane.b32.xlu0 %v7113_v20, %s7590_s25 }
 0xbf3   : > { %4124 = vrot.lane.b32.xlu1 %v7128_v7, %s7556_s24  ;;  %4044 = vrot.lane.b32.xlu0 %v7113_v20, %s7453_s19 }
 0xbf7   : > { %4098 = vrot.lane.b32.xlu1 %v7128_v7, %s7452_s18  ;;  %4018 = vrot.lane.b32.xlu0 %v7113_v20, %s7415_s28 }
 0xbfb   : > { %4072 = vrot.lane.b32.xlu1 %v7128_v7, %s7590_s25  ;;  %4178 = vrot.lane.b32.xlu0 %v4000_v50, %s4866_s27 }
 0xbff   : > { %4046 = vrot.lane.b32.xlu1 %v7128_v7, %s7453_s19  ;;  %4152 = vrot.lane.b32.xlu0 %v4000_v50, %s4861_s22 }
 0xc03   : > { %4020 = vrot.lane.b32.xlu1 %v7128_v7, %s7415_s28  ;;  %4126 = vrot.lane.b32.xlu0 %v4000_v50, %s7556_s24 }
 0xc07   : > { %4198 = vrot.lane.b32.xlu1 %v7089_v53, %s7414_s23  ;;  %4100 = vrot.lane.b32.xlu0 %v4000_v50, %s7452_s18 }
 0xc0b   : > { %4202 = vrot.lane.b32.xlu1 %v7128_v7, %s7414_s23  ;;  %4074 = vrot.lane.b32.xlu0 %v4000_v50, %s7590_s25 }
 0xc0f   : > { %4222 = vperm.xlu1 %4770, %v4219_v21   ;;  %4048 = vrot.lane.b32.xlu0 %v4000_v50, %s7453_s19 }
 0xc11   : > { %v4167_v39 = vpop.permute.xlu1 %4166  ;;  %v4141_v17 = vpop.permute.xlu0 %4140 }
 0xc13   : > { %4022 = vrot.lane.b32.xlu0 %v4000_v50, %s7415_s28 }
 0xc15   : > { %v4115_v38 = vpop.permute.xlu1 %4114  ;;  %v4089_v19 = vpop.permute.xlu0 %4088 }
 0xc17   : > { %4200 = vrot.lane.b32.xlu0 %v7113_v20, %s7414_s23 }
 0xc19   : > { %v4063_v0 = vpop.permute.xlu1 %4062  ;;  %v4037_v63 = vpop.permute.xlu0 %4036 }
 0xc1b   : > { %4204 = vrot.lane.b32.xlu0 %v4000_v50, %s7414_s23  ;;  %s4716_s23 = smul.u32 96, %s7647_s29 }
 0xc1d   : > { %v4011_v51 = vpop.permute.xlu1 %4010  ;;  %v4193_v13 = vpop.permute.xlu0 %4192  ;;  %s7280_s19 = scalar_lea.vmem %s7352_s14, %s4716_s23 }
 0xc21   : > { %v4169_v5 = vpop.permute.xlu1 %4168  ;;  %v4143_v14 = vpop.permute.xlu0 %4142 }
 0xc22   : > { %v4180_v12 = vsel %vm7598_vm7, %v4167_v39, %v4169_v5  ;;  %v4154_v46 = vsel %vm7600_vm4, %v4141_v17, %v4143_v14 }
 0xc25   : > { %v4117_v26 = vpop.permute.xlu1 %4116  ;;  %v4091_v47 = vpop.permute.xlu0 %4090 }
 0xc26   : > { %v4128_v49 = vsel %vm846_vm5, %v4115_v38, %v4117_v26  ;;  %v4102_v28 = vsel %vm790_vm9, %v4089_v19, %v4091_v47 }
 0xc29   : > { %v4065_v8 = vpop.permute.xlu1 %4064  ;;  %v4039_v54 = vpop.permute.xlu0 %4038 }
 0xc2a   : > { %v4076_v21 = vsel %vm751_vm12, %v4063_v0, %v4065_v8 }
 0xc2d   : > { %v4013_v31 = vpop.permute.xlu1 %4012  ;;  %v4195_v32 = vpop.permute.xlu0 %4194 }
 0xc31   : > { %v4145_v23 = vpop.permute.xlu1 %4144  ;;  %v4171_v60 = vpop.permute.xlu0 %4170 }
 0xc32   : > { %v4181_v59 = vsel %vm7597_vm11, %v4169_v5, %v4171_v60  ;;  %v4155_v40 = vsel %vm7599_vm14, %v4143_v14, %v4145_v23  ;;  %v4050_v5 = vsel %vm703_vm0, %v4037_v63, %v4039_v54  ;;  %vm7607_vm11 = vmmov %vm7598_vm7 }
 0xc33   : > { %4238 = vmatprep.subr.bf16.mxu0 %v4181_v59  ;;  %v4206_v59 = vsel %vm7606_vm10, %v4193_v13, %v4195_v32  ;;  %vm7608_vm7 = vmmov %vm7600_vm4  ;;  %vm7621_vm10 = vcmask 1040384  }
 0xc34   : > { %4239 = vmatpush1.bf16.msra.mxu0 %v4180_v12  ;;  %vm7611_vm14 = vmmov %vm7602_vm1 }
 0xc35   : > { %v7173_v42 = vpop.permute.xlu1 %4092  ;;  %4240 = vmatprep.subr.bf16.mxu0 %v4155_v40  ;;  %v4119_v44 = vpop.permute.xlu0 %4118 }
 0xc36   : > { %v4129_v29 = vsel %vm846_vm5, %v4117_v26, %v4119_v44  ;;  %v4103_v41 = vsel %vm790_vm9, %v4091_v47, %v7173_v42  ;;  %v4024_v26 = vsel %vm7603_vm13, %v4011_v51, %v4013_v31 }
 0xc38   : > { %4241 = vmatpush1.bf16.msra.mxu0 %v4154_v46 }
 0xc39   : > { %v7179_v11 = vpop.permute.xlu1 %4040  ;;  %4242 = vmatprep.subr.bf16.mxu0 %v4129_v29  ;;  %v4067_v6 = vpop.permute.xlu0 %4066 }
 0xc3a   : > { %2794 = vadd.xlane.f32.xlu0 %v2793_v33  ;;  %v4077_v36 = vsel %vm751_vm12, %v4065_v8, %v4067_v6  ;;  %v4051_v39 = vsel %vm703_vm0, %v4039_v54, %v7179_v11 }
 0xc3c   : > { %4243 = vmatpush1.bf16.msra.mxu0 %v4128_v49 }
 0xc3d   : > { %v7184_v10 = vpop.permute.xlu1 %4196  ;;  %4244 = vmatprep.subr.bf16.mxu0 %v4103_v41  ;;  %v4015_v17 = vpop.permute.xlu0 %4014 }
 0xc3e   : > { %v4025_v14 = vsel %vm7602_vm1, %v4013_v31, %v4015_v17  ;;  %v4207_v0 = vsel %vm7604_vm6, %v4195_v32, %v7184_v10 }
 0xc40   : > { %4245 = vmatpush1.bf16.msra.mxu0 %v4102_v28 }
 0xc41   : > { %v4173_v50 = vpop.permute.xlu1 %4172  ;;  %4246 = vmatprep.subr.bf16.mxu0 %v4077_v36 }
 0xc42   : > { %v4182_v51 = vsel %vm7607_vm11, %v4171_v60, %v4173_v50 }
 0xc44   : > { %4247 = vmatpush1.bf16.msra.mxu0 %v4076_v21 }
 0xc45   : > { %v4147_v38 = vpop.permute.xlu1 %4146  ;;  %4248 = vmatprep.subr.bf16.mxu0 %v4051_v39 }
 0xc48   : > { %4249 = vmatpush1.bf16.msra.mxu0 %v4050_v5 }
 0xc49   : > { %v4121_v19 = vpop.permute.xlu1 %4120  ;;  %4250 = vmatprep.subr.bf16.mxu0 %v4025_v14 }
 0xc4a   : > { %v4130_v60 = vsel %vm846_vm5, %v4119_v44, %v4121_v19 }
 0xc4c   : > { %4251 = vmatpush1.bf16.msra.mxu0 %v4024_v26 }
 0xc4d   : > { %v4095_v47 = vpop.permute.xlu1 %4094  ;;  %4252 = vmatprep.subr.bf16.mxu0 %v7051_v2 }
 0xc50   : > { %4672 = vmatpush1.bf16.msk.msra.mxu0 %vm5855_vm3, %v7037_v55  ;;  %vm7609_vm3 = vmmov %vm7600_vm4 }
 0xc51   : > { %v4069_v8 = vpop.permute.xlu1 %4068  ;;  %4268 = vmatprep.subr.bf16.mxu0 %v4207_v0  ;;  %v4175_v63 = vpop.permute.xlu0 %4174  ;;  %v4156_v55 = vsel %vm7609_vm3, %v4145_v23, %v4147_v38  ;;  %v4104_v23 = vsel %vm790_vm9, %v7173_v42, %v4095_v47  ;;  %vm7612_vm4 = vmmov %vm7607_vm11 }
 0xc52   : > { %v4183_v54 = vsel %vm7605_vm15, %v4173_v50, %v4175_v63  ;;  %v4078_v49 = vsel %vm751_vm12, %v4067_v6, %v4069_v8  ;;  %vm7613_vm2 = vmmov %vm7612_vm4 }
 0xc53   : > { %4278 = vmatprep.subr.bf16.mxu1 %v4183_v54  ;;  %vm7622_vm11 = vmmov %vm7621_vm10 }
 0xc54   : > { %4269 = vmatpush2.bf16.msra.mxu0 %v4206_v59  ;;  %4279 = vmatpush1.bf16.msra.mxu1 %v4182_v51 }
 0xc55   : > { %v4043_v2 = vpop.permute.xlu1 %4042  ;;  %v4149_v31 = vpop.permute.xlu0 %4148 }
 0xc56   : > { %v4157_v15 = vsel %vm7608_vm7, %v4147_v38, %v4149_v31  ;;  %v4052_v36 = vsel %vm703_vm0, %v7179_v11, %v4043_v2  ;;  %vm7623_vm7 = vmmov %vm7621_vm10 }
 0xc57   : > { %4271 = vmatmul.mubr.bf16.vlgmr.msra.gmra.mxu0 %v7098_v45  ;;  %4280 = vmatprep.subr.bf16.mxu1 %v4157_v15 }
 0xc58   : > { %4281 = vmatpush1.bf16.msra.mxu1 %v4156_v55  ;;  %4675 = vmatprep.mubr.msk.bf16.mxu0 %vm1720_vm8, %v7104_v27  ;;  %vm7610_vm8 = vmmov %vm7602_vm1 }
 0xc59   : > { %v4017_v12 = vpop.permute.xlu1 %4016  ;;  %v4123_v13 = vpop.permute.xlu0 %4122  ;;  %vm7614_vm1 = vmmov %vm7609_vm3 }
 0xc5a   : > { %v4131_v32 = vsel %vm846_vm5, %v4121_v19, %v4123_v13  ;;  %v4026_v39 = vsel %vm7611_vm14, %v4015_v17, %v4017_v12  ;;  %vm7615_vm13 = vmmov %vm7614_vm1  ;;  %vm4425_vm14 = vcmask 1046528  }
 0xc5b   : > { %4282 = vmatprep.subr.bf16.mxu1 %v4131_v32  ;;  %vm7624_vm3 = vmmov %vm7623_vm7 }
 0xc5c   : > { %4283 = vmatpush1.bf16.msra.mxu1 %v4130_v60 }
 0xc5d   : > { %v4177_v40 = vpop.permute.xlu1 %4176  ;;  %v4097_v46 = vpop.permute.xlu0 %4096 }
 0xc5e   : > { %v4105_v33 = vsel %vm790_vm9, %v4095_v47, %v4097_v46  ;;  %v4184_v5 = vsel %vm7613_vm2, %v4175_v63, %v4177_v40  ;;  %vm7627_vm2 = vmmov %vm7614_vm1 }
 0xc5f   : > { %4284 = vmatprep.subr.bf16.mxu1 %v4105_v33 }
 0xc60   : > { %4285 = vmatpush1.bf16.msra.mxu1 %v4104_v23 }
 0xc61   : > { %v4071_v29 = vpop.permute.xlu0 %4070  ;;  %v4151_v41 = vpop.permute.xlu1 %4150 }
 0xc62   : > { %v4079_v27 = vsel %vm751_vm12, %v4069_v8, %v4071_v29  ;;  %v4158_v26 = vsel %vm7615_vm13, %v4149_v31, %v4151_v41  ;;  %vm7628_vm13 = vmmov %vm7614_vm1 }
 0xc63   : > { %4286 = vmatprep.subr.bf16.mxu1 %v4079_v27 }
 0xc64   : > { %4287 = vmatpush1.bf16.msra.mxu1 %v4078_v49 }
 0xc65   : > { %v4045_v44 = vpop.permute.xlu0 %4044  ;;  %v4125_v50 = vpop.permute.xlu1 %4124 }
 0xc66   : > { %v4053_v28 = vsel %vm703_vm0, %v4043_v2, %v4045_v44  ;;  %v4132_v0 = vsel %vm846_vm5, %v4123_v13, %v4125_v50 }
 0xc67   : > { %4288 = vmatprep.subr.bf16.mxu1 %v4053_v28 }
 0xc68   : > { %4289 = vmatpush1.bf16.msra.mxu1 %v4052_v36 }
 0xc69   : > { %v4019_v42 = vpop.permute.xlu0 %4018  ;;  %v4099_v14 = vpop.permute.xlu1 %4098 }
 0xc6a   : > { %v4027_v21 = vsel %vm7610_vm8, %v4017_v12, %v4019_v42 }
 0xc6b   : > { %4290 = vmatprep.subr.bf16.mxu1 %v4027_v21 }
 0xc6c   : > { %4291 = vmatpush1.bf16.msra.mxu1 %v4026_v39 }
 0xc6d   : > { %4292 = vmatprep.subr.bf16.mxu1 %v7089_v53  ;;  %v4179_v6 = vpop.permute.xlu0 %4178  ;;  %v4073_v17 = vpop.permute.xlu1 %4072 }
 0xc6e   : > { %v4185_v38 = vsel %vm7612_vm4, %v4177_v40, %v4179_v6  ;;  %v4080_v2 = vsel %vm751_vm12, %v4071_v29, %v4073_v17  ;;  %vm7626_vm4 = vcmask 1042432  }
 0xc6f   : > { %4319 = vmatprep.subr.bf16.mxu0 %v4185_v38 }
 0xc70   : > { %4293 = vmatpush1.bf16.msra.mxu1 %v7070_v16  ;;  %4320 = vmatpush1.bf16.msra.mxu0 %v4184_v5  ;;  %v4106_v16 = vsel %vm790_vm9, %v4097_v46, %v4099_v14 }
 0xc71   : > { %v4153_v11 = vpop.permute.xlu0 %4152  ;;  %v4047_v54 = vpop.permute.xlu1 %4046 }
 0xc72   : > { %v4159_v19 = vsel %vm7614_vm1, %v4151_v41, %v4153_v11  ;;  %v4054_v12 = vsel %vm703_vm0, %v4045_v44, %v4047_v54 }
 0xc73   : > { %4321 = vmatprep.subr.bf16.mxu0 %v4159_v19 }
 0xc74   : > { %4322 = vmatpush1.bf16.msra.mxu0 %v4158_v26 }
 0xc75   : > { %v4127_v47 = vpop.permute.xlu0 %4126  ;;  %v4021_v31 = vpop.permute.xlu1 %4020 }
 0xc76   : > { %v4133_v53 = vsel %vm846_vm5, %v4125_v50, %v4127_v47  ;;  %vm7616_vm5 = vmmov %vm7610_vm8 }
 0xc77   : > { %4323 = vmatprep.subr.bf16.mxu0 %v4133_v53  ;;  %vm7625_vm8 = vmmov %vm7624_vm3 }
 0xc78   : > { %4324 = vmatpush1.bf16.msra.mxu0 %v4132_v0 }
 0xc79   : > { %v4101_v8 = vpop.permute.xlu0 %4100  ;;  %v4199_v40 = vpop.permute.xlu1 %4198 }
 0xc7a   : > { %v4107_v63 = vsel %vm790_vm9, %v4099_v14, %v4101_v8  ;;  %vm7617_vm9 = vmmov %vm7616_vm5  ;;  %v4208_v23 = vsel %vm7604_vm6, %v7184_v10, %v4199_v40 }
 0xc7b   : > { %4325 = vmatprep.subr.bf16.mxu0 %v4107_v63  ;;  %v4028_v60 = vsel %vm7617_vm9, %v4019_v42, %v4021_v31  ;;  %vm7630_vm9 = vmmov %vm7614_vm1 }
 0xc7c   : > { %4326 = vmatpush1.bf16.msra.mxu0 %v4106_v16 }
 0xc7d   : > { %v4075_v59 = vpop.permute.xlu0 %4074  ;;  %v4203_v29 = vpop.permute.xlu1 %4202 }
 0xc7e   : > { %v4081_v51 = vsel %vm751_vm12, %v4073_v17, %v4075_v59  ;;  %vm7618_vm12 = vmmov %vm7604_vm6  ;;  %v4413_v59 = vrot.slane %v6320_v25, 7  ;;  %v4412_v25 = vrot.slane %v6307_v58, 7 }
 0xc7f   : > { %4327 = vmatprep.subr.bf16.mxu0 %v4081_v51 }
 0xc80   : > { %4328 = vmatpush1.bf16.msra.mxu0 %v4080_v2 }
 0xc81   : > { %v4049_v15 = vpop.permute.xlu0 %4048 }
 0xc82   : > { %v4055_v55 = vsel %vm703_vm0, %v4047_v54, %v4049_v15  ;;  %vm7619_vm0 = vmmov %vm7604_vm6  ;;  %v4410_v54 = vrot.slane %v6298_v9, 7 }
 0xc83   : > { %4329 = vmatprep.subr.bf16.mxu0 %v4055_v55  ;;  %vm7620_vm15 = vmmov %vm7619_vm0 }
 0xc84   : > { %4330 = vmatpush1.bf16.msra.mxu0 %v4054_v12  ;;  %vm7632_vm6 = vmmov %vm7614_vm1 }
 0xc85   : > { %v4023_v13 = vpop.permute.xlu0 %4022 }
 0xc86   : > { %v4029_v32 = vsel %vm7616_vm5, %v4021_v31, %v4023_v13  ;;  %vm7629_vm5 = vmmov %vm7614_vm1 }
 0xc87   : > { %4331 = vmatprep.subr.bf16.mxu0 %v4029_v32  ;;  %v4411_v32 = vrot.slane %v6309_v52, 7 }
 0xc88   : > { %4332 = vmatpush1.bf16.msra.mxu0 %v4028_v60 }
 0xc89   : > { %4333 = vmatprep.subr.bf16.mxu0 %v7128_v7  ;;  %v4201_v46 = vpop.permute.xlu0 %4200 }
 0xc8a   : > { %v4209_v33 = vsel %vm7618_vm12, %v4199_v40, %v4201_v46  ;;  %v4210_v41 = vsel %vm7620_vm15, %v4201_v46, %v4203_v29  ;;  %v4223_v52 = vpop.permute.xlu1 %4222  ;;  %vm7631_vm12 = vmmov %vm7614_vm1 }
 0xc8b   : > { %4308 = vmatprep.subr.bf16.mxu1 %v4209_v33 }
 0xc8c   : > { %4309 = vmatpush2.bf16.msra.mxu1 %v4208_v23  ;;  %4334 = vmatpush1.bf16.msra.mxu0 %v7113_v20  ;;  %v4414_v23 = vrot.slane %v6318_v57, 7 }
 0xc8d   : > { %v4205_v27 = vpop.permute.xlu0 %4204 }
 0xc8e   : > { %v4211_v49 = vsel %vm7619_vm0, %v4203_v29, %v4205_v27  ;;  %vm7633_vm0 = vmmov %vm7626_vm4 }
 0xc8f   : > { %4311 = vmatmul.mubr.bf16.vlgmr.msra.gmra.mxu1 %v7098_v45  ;;  %4349 = vmatprep.subr.bf16.mxu0 %v4211_v49  ;;  %vm7634_vm15 = vmmov %vm7633_vm0 }
 0xc90   : > { %4350 = vmatpush2.bf16.msra.mxu0 %v4210_v41 }
 0xc93   : > { %4352 = vmatmul.mubr.bf16.vlgmr.msra.gmra.mxu0 %v7098_v45 }
 0xcc3   : > { %v2795_v7 = vpop.xlane.xlu0 %2794 }
 0xcc4   : > { %v2796_v44 = vadd.f32 0.5, %v2795_v7 }
 0xcc6   : > { %v2797_v28 = vmul.f32 0.125, %v2796_v44 }
 0xcc8   : > { %v2798_v10 = vmul.f32 %v2797_v28, %v6338_v43  ;;  %v2799_v36 = vmul.f32 %v2797_v28, %v6355_v56  ;;  %v2800_v20 = vmul.f32 %v2797_v28, %v6359_v30  ;;  %v2801_v50 = vmul.f32 %v2797_v28, %v6391_v1 }
 0xcc9   : > { %v2802_v42 = vmul.f32 %v2797_v28, %v6393_v37 }
 0xcca   : > { %v2821_v21 = vrot.slane %v2801_v50, 4  ;;  %v2803_v39 = vrot.slane %v2798_v10, 4  ;;  %v2809_v6 = vrot.slane %v2799_v36, 4  ;;  %v2815_v38 = vrot.slane %v2800_v20, 4 }
 0xccb   : > { %v2827_v5 = vrot.slane %v2802_v42, 4 }
 0xccc   : > { %v2822_v14 = vadd.f32 %v2821_v21, %v2801_v50  ;;  %v2804_v45 = vadd.f32 %v2803_v39, %v2798_v10  ;;  %v2810_v11 = vadd.f32 %v2809_v6, %v2799_v36  ;;  %v2816_v19 = vadd.f32 %v2815_v38, %v2800_v20 }
 0xccd   : > { %v2828_v26 = vadd.f32 %v2827_v5, %v2802_v42  ;;  %v4395_v36 = vrot.slane %v6351_v48, 5 }
 0xcce   : > { %v2823_v17 = vrot.slane %v2822_v14, 2  ;;  %v2805_v43 = vrot.slane %v2804_v45, 2  ;;  %v2811_v47 = vrot.slane %v2810_v11, 2  ;;  %v2817_v56 = vrot.slane %v2816_v19, 2 }
 0xccf   : > { %v2829_v1 = vrot.slane %v2828_v26, 2 }
 0xcd0   : > { %v2824_v53 = vadd.f32 %v2823_v17, %v2822_v14  ;;  %v2806_v30 = vadd.f32 %v2805_v43, %v2804_v45  ;;  %v2812_v0 = vadd.f32 %v2811_v47, %v2810_v11  ;;  %v2818_v16 = vadd.f32 %v2817_v56, %v2816_v19 }
 0xcd1   : > { %v2830_v31 = vadd.f32 %v2829_v1, %v2828_v26 }
 0xcd2   : > { %v2825_v8 = vrot.slane %v2824_v53, 1  ;;  %v2807_v37 = vrot.slane %v2806_v30, 1  ;;  %v2813_v63 = vrot.slane %v2812_v0, 1  ;;  %v2819_v13 = vrot.slane %v2818_v16, 1 }
 0xcd3   : > { %v2831_v40 = vrot.slane %v2830_v31, 1 }
 0xcd4   : > { %v2826_v51 = vadd.f32 %v2825_v8, %v2824_v53  ;;  %v2808_v2 = vadd.f32 %v2807_v37, %v2806_v30  ;;  %v2814_v12 = vadd.f32 %v2813_v63, %v2812_v0  ;;  %v2820_v9 = vadd.f32 %v2819_v13, %v2818_v16 }
 0xcd5   : > { %v2832_v33 = vadd.f32 %v2831_v40, %v2830_v31 }
 0xcd6   : > { %v4434_v15 = vsel %vm7621_vm10, %v2826_v51, %v4413_v59  ;;  %v4431_v55 = vsel %vm7622_vm11, %v2808_v2, %v4410_v54  ;;  %v4432_v60 = vsel %vm7623_vm7, %v2814_v12, %v4411_v32  ;;  %v4433_v46 = vsel %vm7624_vm3, %v2820_v9, %v4412_v25  ;;  %vm7635_vm10 = vmmov %vm7633_vm0 }
 0xcd7   : > { %4462 = vrot.lane.b32.xlu0 %v4434_v15, %s4861_s22  ;;  %4456 = vrot.lane.b32.xlu1 %v4431_v55, %s4861_s22  ;;  %v4435_v29 = vsel %vm7625_vm8, %v2832_v33, %v4414_v23  ;;  %vm7636_vm11 = vmmov %vm7633_vm0 }
 0xcd8   : > { %vm7637_vm7 = vmmov %vm7614_vm1 }
 0xcd9   : > { %vm7638_vm3 = vmmov %vm7614_vm1 }
 0xcda   : > { %vm7639_vm8 = vmmov %vm7614_vm1 }
 0xcdb   : > { %4458 = vrot.lane.b32.xlu1 %v4432_v60, %s4861_s22 }
 0xcdf   : > { %4460 = vrot.lane.b32.xlu1 %v4433_v46, %s4861_s22 }
 0xce3   : > { %4464 = vrot.lane.b32.xlu1 %v4435_v29, %s4861_s22  ;;  %v4396_v29 = vrot.slane %v6377_v22, 5 }
 0xce7   : > { %4466 = vrot.lane.b32.xlu1 %v4410_v54, %s4861_s22 }
 0xceb   : > { %4468 = vrot.lane.b32.xlu1 %v4411_v32, %s4861_s22 }
 0xcef   : > { %4470 = vrot.lane.b32.xlu1 %v4412_v25, %s4861_s22 }
 0xcf3   : > { %4472 = vrot.lane.b32.xlu1 %v4413_v59, %s4861_s22 }
 0xd17   : > { %v4272_v58 = vpop.f32.mrf.mxu0 }
 0xd19   : > { %v4273_v27 = vpop.f32.mrf.mxu0 }
 0xd1a   : > { %v4274_v49 = vadd.f32 %v4273_v27, %v4223_v52 }
 0xd1b   : > { %v4275_v41 = vpop.f32.mrf.mxu0 }
 0xd1c   : > { %v4676_v7 = vmul.f32 -1.442695, %v4274_v49 }
 0xd1d   : > { %v4276_v44 = vpop.f32.mrf.mxu0 }
 0xd1e   : > { %4812 = vpow2.f32 %v4676_v7 }
 0xd2b   : > { %v4813_v28 = vpop.eup %4812 }
 0xd2c   : > { %v4375_v10 = vadd.f32 1.0, %v4813_v28  ;;  %v4398_v28 = vrot.slane %v6407_v61, 5 }
 0xd2e   : > { %4814 = vrcp.f32 %v4375_v10  ;;  %v4399_v10 = vrot.slane %v6415_v34, 5 }
 0xd3b   : > { %v4815_v20 = vpop.eup %4814 }
 0xd3c   : > { %v4420_v50 = vsel %vm7626_vm4, %v4815_v20, %v4395_v36  ;;  %vm7641_vm4 = vmmov %vm7614_vm1 }
 0xd3d   : > { %v4426_v42 = vsel %vm4425_vm14, %v4420_v50, %v6343_v62 }
 0xd3e   : > { %4446 = vrot.lane.b32.xlu1 %v4426_v42, %s4861_s22 }
 0xd49   : > { %v4457_v21 = vpop.permute.xlu1 %4456  ;;  %v4463_v38 = vpop.permute.xlu0 %4462 }
 0xd4d   : > { %v4459_v48 = vpop.permute.xlu1 %4458 }
 0xd4e   : > { %v4481_v39 = vsel %vm7627_vm2, %v4457_v21, %v4459_v48 }
 0xd4f   : > { %4505 = vst [vmem:[%s7280_s19 + $0x20] sm:$0xff] %v4481_v39  ;;  %v4312_v6 = vpop.f32.mrf.mxu1 }
 0xd50   : > { %v4313_v5 = vadd.f32 %v4312_v6, %v4223_v52 }
 0xd51   : > { %v4314_v62 = vpop.f32.mrf.mxu1  ;;  %v4461_v14 = vpop.permute.xlu1 %4460 }
 0xd52   : > { %v4677_v45 = vmul.f32 -1.442695, %v4313_v5  ;;  %v4315_v11 = vadd.f32 %v4314_v62, %v4223_v52  ;;  %v4482_v19 = vsel %vm7614_vm1, %v4459_v48, %v4461_v14  ;;  %v4483_v26 = vsel %vm7628_vm13, %v4461_v14, %v4463_v38 }
 0xd53   : > { %4506 = vst [vmem:[%s7280_s19 + $0x28] sm:$0xff] %v4482_v19  ;;  %4507 = vst [vmem:[%s7280_s19 + $0x30] sm:$0xff] %v4483_v26  ;;  %v4316_v17 = vpop.f32.mrf.mxu1  ;;  %v4353_v43 = vpop.f32.mrf.mxu0 }
 0xd54   : > { %4816 = vpow2.f32 %v4677_v45  ;;  %v4678_v47 = vmul.f32 -1.442695, %v4315_v11  ;;  %v4354_v56 = vadd.f32 %v4353_v43, %v4223_v52 }
 0xd55   : > { %v4317_v53 = vpop.f32.mrf.mxu1  ;;  %v4355_v30 = vpop.f32.mrf.mxu0 }
 0xd56   : > { %4818 = vpow2.f32 %v4678_v47  ;;  %v4679_v0 = vmul.f32 -1.442695, %v4354_v56  ;;  %v4356_v1 = vadd.f32 %v4355_v30, %v4223_v52  ;;  %v4465_v8 = vpop.permute.xlu1 %4464  ;;  %v4397_v52 = vrot.slane %v6385_v35, 5 }
 0xd57   : > { %v4484_v37 = vsel %vm7629_vm5, %v4463_v38, %v4465_v8  ;;  %v4357_v63 = vpop.f32.mrf.mxu0 }
 0xd58   : > { %4820 = vpow2.f32 %v4679_v0  ;;  %v4680_v16 = vmul.f32 -1.442695, %v4356_v1  ;;  %4508 = vst [vmem:[%s7280_s19 + $0x38] sm:$0xff] %v4484_v37 }
 0xd59   : > { %v4358_v54 = vpop.f32.mrf.mxu0 }
 0xd5a   : > { %4822 = vpow2.f32 %v4680_v16  ;;  %v4467_v59 = vpop.permute.xlu1 %4466 }
 0xd5e   : > { %v4469_v51 = vpop.permute.xlu1 %4468 }
 0xd5f   : > { %v4485_v2 = vsel %vm7630_vm9, %v4467_v59, %v4469_v51 }
 0xd60   : > { %4509 = vst [vmem:[%s7280_s19 + $0x40] sm:$0x1] %v4485_v2 }
 0xd61   : > { %v4817_v31 = vpop.eup %4816 }
 0xd62   : > { %v4376_v15 = vadd.f32 1.0, %v4817_v31  ;;  %v4471_v55 = vpop.permute.xlu1 %4470 }
 0xd63   : > { %v4819_v12 = vpop.eup %4818  ;;  %v4486_v13 = vsel %vm7631_vm12, %v4469_v51, %v4471_v55 }
 0xd64   : > { %4824 = vrcp.f32 %v4376_v15  ;;  %v4377_v32 = vadd.f32 1.0, %v4819_v12  ;;  %4510 = vst [vmem:[%s7280_s19 + $0x48] sm:$0x1] %v4486_v13 }
 0xd65   : > { %v4821_v60 = vpop.eup %4820 }
 0xd66   : > { %4826 = vrcp.f32 %v4377_v32  ;;  %v4378_v9 = vadd.f32 1.0, %v4821_v60  ;;  %v4473_v40 = vpop.permute.xlu1 %4472 }
 0xd67   : > { %v4823_v25 = vpop.eup %4822  ;;  %v4487_v46 = vsel %vm7632_vm6, %v4471_v55, %v4473_v40 }
 0xd68   : > { %4828 = vrcp.f32 %v4378_v9  ;;  %v4379_v33 = vadd.f32 1.0, %v4823_v25  ;;  %4511 = vst [vmem:[%s7280_s19 + $0x50] sm:$0x1] %v4487_v46 }
 0xd6a   : > { %4830 = vrcp.f32 %v4379_v33 }
 0xd71   : > { %v4825_v58 = vpop.eup %4824 }
 0xd72   : > { %v4421_v27 = vsel %vm7633_vm0, %v4825_v58, %v4396_v29 }
 0xd73   : > { %v4827_v49 = vpop.eup %4826  ;;  %v4427_v41 = vsel %vm4425_vm14, %v4421_v27, %v6369_v18 }
 0xd74   : > { %4448 = vrot.lane.b32.xlu1 %v4427_v41, %s4861_s22  ;;  %v4422_v7 = vsel %vm7634_vm15, %v4827_v49, %v4397_v52 }
 0xd75   : > { %v4829_v44 = vpop.eup %4828  ;;  %v4428_v35 = vsel %vm4425_vm14, %v4422_v7, %v6373_v4 }
 0xd76   : > { %v4423_v36 = vsel %vm7635_vm10, %v4829_v44, %v4398_v28 }
 0xd77   : > { %v4831_v22 = vpop.eup %4830  ;;  %v4429_v61 = vsel %vm4425_vm14, %v4423_v36, %v6399_v3 }
 0xd78   : > { %4450 = vrot.lane.b32.xlu1 %v4428_v35, %s4861_s22  ;;  %v4424_v18 = vsel %vm7636_vm11, %v4831_v22, %v4399_v10 }
 0xd79   : > { %v4430_v20 = vsel %vm4425_vm14, %v4424_v18, %v6403_v24  ;;  %vm7640_vm14 = vmmov %vm7614_vm1 }
 0xd7c   : > { %4452 = vrot.lane.b32.xlu1 %v4429_v61, %s4861_s22 }
 0xd80   : > { %4454 = vrot.lane.b32.xlu1 %v4430_v20, %s4861_s22 }
 0xd84   : > { %4474 = vrot.lane.b32.xlu1 %v4414_v23, %s4861_s22 }
 0xdb0   : > { %v4447_v4 = vpop.permute.xlu1 %4446 }
 0xde6   : > { %v4449_v34 = vpop.permute.xlu1 %4448 }
 0xde7   : > { %v4477_v50 = vsel %vm7637_vm7, %v4447_v4, %v4449_v34 }
 0xde8   : > { %4501 = vst [vmem:[%s7280_s19] sm:$0xff] %v4477_v50 }
 0xdea   : > { %v4451_v42 = vpop.permute.xlu1 %4450 }
 0xdeb   : > { %v4478_v24 = vsel %vm7638_vm3, %v4449_v34, %v4451_v42 }
 0xdec   : > { %4502 = vst [vmem:[%s7280_s19 + $0x8] sm:$0xff] %v4478_v24 }
 0xdee   : > { %v4453_v3 = vpop.permute.xlu1 %4452 }
 0xdef   : > { %v4479_v21 = vsel %vm7639_vm8, %v4451_v42, %v4453_v3 }
 0xdf0   : > { %4503 = vst [vmem:[%s7280_s19 + $0x10] sm:$0xff] %v4479_v21 }
 0xdf2   : > { %v4455_v48 = vpop.permute.xlu1 %4454 }
 0xdf3   : > { %v4480_v39 = vsel %vm7640_vm14, %v4453_v3, %v4455_v48 }
 0xdf4   : > { %4504 = vst [vmem:[%s7280_s19 + $0x18] sm:$0xff] %v4480_v39 }
 0xdf6   : > { %v4475_v57 = vpop.permute.xlu1 %4474 }
 0xdf7   : > { %v4488_v23 = vsel %vm7641_vm4, %v4473_v40, %v4475_v57 }
 0xdf8   : > { %4512 = vst [vmem:[%s7280_s19 + $0x58] sm:$0x1] %v4488_v23 }
 0xdf9 PF: > { %s24_s15 = sadd.s32 1, %s4858_s15   ;;  %s7642_s29 = smov %s4854_s30 }
 0xdfa   : > { %p21_p5 = scmp.ge.s32.totalorder %s24_s15, 4   ;;  %s7643_s30 = smov %s7645_s16 }
 0xdfc   :  { %23 = sbr.rel (!%p21_p5) target bundleno = 2 (0x2), region = 109 }

</bundles_post_ra>
